<compile_context>
chip_gen: v5e
topology: v5e:2x2
jax: 0.10.0
libtpu: 0.0.40
codegen_flags: <defaults>
</compile_context>

<pallas_src>
import math

import jax
import jax.numpy as jnp
from jax import lax
from jax.experimental import pallas as pl
from jax.experimental.pallas import tpu as pltpu

# ---- problem sizes (small, consistent with the module) --------------------------------
B, L = 2, 8            # batch, max sequence length
D = 32                 # word_dim (768 in the real model)
E = 32                 # embed_size
H = E // 2             # GRU hidden size per direction (bidirectional)
DH = D // 2            # PIE attention hidden size (word_dim // 2)
NHEAD = 1              # num_embeds == attention heads
VOCAB = 50
LN_EPS = 1e-5          # nn.LayerNorm default eps
LANES = 128            # lane-dense packing width
NVEC = 13              # rows in the packed small-parameter slab
# dropout = 0.0 / eval mode -> identity (matches self.dropout at inference)

# row indices inside the packed vector slab
(R_LN1W, R_LN1B, R_TFCB, R_LN2W, R_LN2B,
 R_BIHF, R_BHHF, R_BIHB, R_BHHB,
 R_FCB, R_PLNW, R_PLNB, R_W2) = range(NVEC)


def _layernorm(v, w, b):
    mu = jnp.mean(v, axis=-1, keepdims=True)
    var = jnp.mean((v - mu) ** 2, axis=-1, keepdims=True)
    return (v - mu) * lax.rsqrt(var + LN_EPS) * w + b


def _softmax_last(v):
    m = jnp.max(v, axis=-1, keepdims=True)
    e = jnp.exp(v - m)
    return e * pl.reciprocal(jnp.sum(e, axis=-1, keepdims=True), approx=True)


def encoder_kernel(wemb_ref, glog_ref, vmask_ref, vec_ref, wx_ref, whh_ref, wmat_ref,
                   out_ref):
    wemb = wemb_ref[...]            # (B, L, D)   bert stand-in output
    glog = glog_ref[...]            # (B, L)      traces + gumbel noise (tau = 1)
    vmask = vmask_ref[...]          # (B, L)      1.0 where t < length, else 0.0
    vec = vec_ref[...]              # (NVEC, 128) packed LN / bias / w2 params
    wx = wx_ref[...]                # (D, 6H+DH)  [wih_f | wih_b | w1]
    whh_bd = whh_ref[...]           # (2H, 6H)    block_diag(whh_f, whh_b)
    wmat = wmat_ref[...]            # (D, D+E)    [tfc_w | fc_w]

    ln1_w, ln1_b = vec[R_LN1W, :D], vec[R_LN1B, :D]
    tfc_b = vec[R_TFCB, :D]
    ln2_w, ln2_b = vec[R_LN2W, :D], vec[R_LN2B, :D]
    bih_f, bhh_f = vec[R_BIHF, :3 * H], vec[R_BHHF, :3 * H]
    bih_b, bhh_b = vec[R_BIHB, :3 * H], vec[R_BHHB, :3 * H]
    fc_b = vec[R_FCB, :E]
    pln_w, pln_b = vec[R_PLNW, :E], vec[R_PLNB, :E]
    w2 = vec[R_W2, :DH]

    # --- fusion == 'gumbel-softmax':  wemb + softmax(traces + g).unsqueeze(2) * wemb
    gate = _softmax_last(glog)                                  # softmax over seq dim
    x = wemb * (1.0 + gate[:, :, None])                         # (B, L, D)

    # --- layernorm_1 -> trace_fc -> layernorm_2, all on the flat (B*L, D) activation
    x_flat = _layernorm(x.reshape(B * L, D), ln1_w, ln1_b)
    x_flat = jnp.dot(x_flat, wmat[:, 0:D],
                     preferred_element_type=jnp.float32) + tfc_b
    x_flat = _layernorm(x_flat, ln2_w, ln2_b)
    x3 = x_flat.reshape(B, L, D)

    # --- one fused matmul feeds both GRU directions' input gates and PIE attention hidden
    gxh = jnp.dot(x_flat, wx,
                  preferred_element_type=jnp.float32).reshape(B, L, 6 * H + DH)
    gx_f = gxh[:, :, 0:3 * H] + bih_f                           # (B, L, 3H)
    gx_b = gxh[:, :, 3 * H:6 * H] + bih_b                       # (B, L, 3H)
    h1 = jnp.tanh(gxh[:, :, 6 * H:])                            # (B, L, DH)

    # --- bidirectional GRU; length masking reproduces pack_padded_sequence semantics.
    #     Forward & backward are interleaved: one block-diagonal recurrent matmul/step.
    def gru_cell(gx, gh, h):
        r = jax.nn.sigmoid(gx[:, 0:H] + gh[:, 0:H])
        z = jax.nn.sigmoid(gx[:, H:2 * H] + gh[:, H:2 * H])
        n = jnp.tanh(gx[:, 2 * H:3 * H] + r * gh[:, 2 * H:3 * H])
        return (1.0 - z) * n + z * h

    hh = jnp.zeros((B, 2 * H), jnp.float32)                     # [h_fwd | h_bwd]
    for s in range(L):                                          # static unroll
        tf, tb = s, L - 1 - s
        gh = jnp.dot(hh, whh_bd, preferred_element_type=jnp.float32)   # (B, 6H)
        hf, hb = hh[:, 0:H], hh[:, H:2 * H]
        hf_new = gru_cell(gx_f[:, tf, :], gh[:, 0:3 * H] + bhh_f, hf)
        hb_new = gru_cell(gx_b[:, tb, :], gh[:, 3 * H:6 * H] + bhh_b, hb)
        mf = vmask[:, tf][:, None]
        mb = vmask[:, tb][:, None]
        hh = jnp.concatenate([mf * hf_new + (1.0 - mf) * hf,
                              mb * hb_new + (1.0 - mb) * hb], axis=-1)
    # h_n (2,B,H).permute(1,0,2).view(B, 2H)  ==  concat([fwd, bwd], -1)  ==  hh
    rnn_out = hh                                                # (B, E)

    # --- PIENet: self-attention pooling over x, fc+sigmoid residual, layernorm
    scores = jnp.sum(h1 * w2[None, None, :], axis=-1)           # (B, L)  (n_head == 1)
    scores = jnp.where(vmask < 0.5, -1e30, scores)              # pad mask (finite -> no NaN)
    attn = _softmax_last(scores)                                # softmax over seq dim
    pooled = jnp.sum(attn[:, :, None] * x3, axis=1)             # (B, D)
    residual = jax.nn.sigmoid(
        jnp.dot(pooled, wmat[:, D:D + E],
                preferred_element_type=jnp.float32) + fc_b)     # (B, E)

    o = _layernorm(rnn_out + residual, pln_w, pln_b)
    o = o * lax.rsqrt(jnp.sum(o * o, axis=-1, keepdims=True) + 1e-12)   # l2norm (abs=False)

    # lane-dense packed output: [ out | residual | attn | zero-pad ] -> (B, 128)
    out_ref[...] = jnp.concatenate(
        [o, residual, attn, jnp.zeros((B, LANES - 2 * E - L), jnp.float32)], axis=-1)


def _full_spec(shape):
    nd = len(shape)
    return pl.BlockSpec(shape, lambda i, nd=nd: (0,) * nd)


def _pack_vec_rows(rows):
    packed = []
    for r in rows:
        r = jnp.asarray(r, jnp.float32).reshape(-1)
        packed.append(jnp.pad(r, (0, LANES - r.shape[0])))
    return jnp.stack(packed)                                    # (NVEC, 128)


@jax.jit
def encoder_text_trace(wemb, glogits, vmask, params):
    p = params
    # pack all tiny 1-D params (LN scales/biases, GRU biases, fc bias, w2) into one slab
    vec = _pack_vec_rows([
        p["ln1_w"], p["ln1_b"], p["tfc_b"], p["ln2_w"], p["ln2_b"],
        p["bih_f"], p["bhh_f"], p["bih_b"], p["bhh_b"],
        p["fc_b"], p["pln_w"], p["pln_b"], p["w2"]])
    # fused x_flat-consuming weights and block-diagonal recurrent weight
    wx = jnp.concatenate([p["wih_f"], p["wih_b"], p["w1"]], axis=1)        # (D, 6H+DH)
    zh = jnp.zeros((H, 3 * H), jnp.float32)
    whh_bd = jnp.concatenate(
        [jnp.concatenate([p["whh_f"], zh], axis=1),
         jnp.concatenate([zh, p["whh_b"]], axis=1)], axis=0)               # (2H, 6H)
    wmat = jnp.concatenate([p["tfc_w"], p["fc_w"]], axis=1)                # (D, D+E)

    args = [wemb, glogits, vmask, vec, wx, whh_bd, wmat]
    packed = pl.pallas_call(
        encoder_kernel,
        out_shape=jax.ShapeDtypeStruct((B, LANES), jnp.float32),
        grid=(1,),
        in_specs=[_full_spec(a.shape) for a in args],
        out_specs=_full_spec((B, LANES)),
        compiler_params=pltpu.CompilerParams(dimension_semantics=("arbitrary",)),
    )(*args)

    out = packed[:, 0:E]
    residual = packed[:, E:2 * E]
    attn = packed[:, 2 * E:2 * E + L].reshape(B, L, NHEAD)
    return out, attn, residual


def init_params(key):
    ks = iter(jax.random.split(key, 16))

    def xavier(k, shape):
        lim = math.sqrt(6.0 / (shape[0] + shape[1]))
        return jax.random.uniform(k, shape, jnp.float32, -lim, lim)

    def uni(k, shape, lim):
        return jax.random.uniform(k, shape, jnp.float32, -lim, lim)

    gru_lim = 1.0 / math.sqrt(H)
    return {
        # layernorm_1 / layernorm_2 (PyTorch default init: weight=1, bias=0)
        "ln1_w": jnp.ones((D,), jnp.float32), "ln1_b": jnp.zeros((D,), jnp.float32),
        "tfc_w": xavier(next(ks), (D, D)),
        "tfc_b": uni(next(ks), (D,), 1.0 / math.sqrt(D)),
        "ln2_w": jnp.ones((D,), jnp.float32), "ln2_b": jnp.zeros((D,), jnp.float32),
        # GRU (weights stored transposed: (in, 3H); gate order r, z, n)
        "wih_f": uni(next(ks), (D, 3 * H), gru_lim), "whh_f": uni(next(ks), (H, 3 * H), gru_lim),
        "bih_f": uni(next(ks), (3 * H,), gru_lim), "bhh_f": uni(next(ks), (3 * H,), gru_lim),
        "wih_b": uni(next(ks), (D, 3 * H), gru_lim), "whh_b": uni(next(ks), (H, 3 * H), gru_lim),
        "bih_b": uni(next(ks), (3 * H,), gru_lim), "bhh_b": uni(next(ks), (3 * H,), gru_lim),
        # PIENet attention + fc + layernorm (fc bias = 0 per init_weights)
        "w1": xavier(next(ks), (D, DH)),
        "w2": xavier(next(ks), (DH, NHEAD)),
        "fc_w": xavier(next(ks), (D, E)),
        "fc_b": jnp.zeros((E,), jnp.float32),
        "pln_w": jnp.ones((E,), jnp.float32), "pln_b": jnp.zeros((E,), jnp.float32),
    }


if __name__ == "__main__":
    key = jax.random.PRNGKey(0)
    k_tok, k_emb, k_tr, k_g, k_p = jax.random.split(key, 5)

    # module inputs: token ids x, binary traces, lengths
    tokens = jax.random.randint(k_tok, (B, L), 0, VOCAB)
    traces = jax.random.bernoulli(k_tr, 0.5, (B, L)).astype(jnp.float32)
    lengths = jnp.array([L, L - 3], jnp.int32)

    # TODO(synk): stand-in for bert_model(x)[0] — deterministic embedding table lookup.
    emb_table = 0.1 * jax.random.normal(k_emb, (VOCAB, D), jnp.float32)
    wemb = emb_table[tokens]                                     # (B, L, D)

    # gumbel noise for F.gumbel_softmax(traces, tau=1, hard=False), drawn deterministically
    glogits = traces + jax.random.gumbel(k_g, (B, L), jnp.float32)

    # valid mask (1 where t < length); pad mask inside kernel is its complement
    vmask = (jnp.arange(L)[None, :] < lengths[:, None]).astype(jnp.float32)

    params = init_params(k_p)
    out, attn, residual = encoder_text_trace(wemb, glogits, vmask, params)
    jax.block_until_ready((out, attn, residual))

    assert out.shape == (B, E) and attn.shape == (B, L, NHEAD) and residual.shape == (B, E)
    assert bool(jnp.all(jnp.isfinite(out))) and bool(jnp.all(jnp.isfinite(attn)))
    print("KERNEL_OK")
</pallas_src>

<mosaic_0001>
module attributes {stable_mosaic.version = 11 : i64} {
  func.func @encoder_kernel(%arg0: i32, %arg1: memref<2x8x32xf32, #tpu.memory_space<vmem>>, %arg2: memref<2x8xf32, #tpu.memory_space<vmem>>, %arg3: memref<2x8xf32, #tpu.memory_space<vmem>>, %arg4: memref<13x128xf32, #tpu.memory_space<vmem>>, %arg5: memref<32x112xf32, #tpu.memory_space<vmem>>, %arg6: memref<32x96xf32, #tpu.memory_space<vmem>>, %arg7: memref<32x64xf32, #tpu.memory_space<vmem>>, %arg8: memref<2x128xf32, #tpu.memory_space<vmem>>) attributes {dimension_semantics = [#tpu.dimension_semantics<arbitrary>], iteration_bounds = array<i64: 1>, scalar_prefetch = 0 : i64, scratch_operands = 0 : i64, tpu.core_type = #tpu.core_type<tc>, window_params = [{pipeline_mode = #tpu.pipeline_mode<synchronous>, transform_indices = @transform_0, window_bounds = array<i64: 2, 8, 32>}, {pipeline_mode = #tpu.pipeline_mode<synchronous>, transform_indices = @transform_1, window_bounds = array<i64: 2, 8>}, {pipeline_mode = #tpu.pipeline_mode<synchronous>, transform_indices = @transform_2, window_bounds = array<i64: 2, 8>}, {pipeline_mode = #tpu.pipeline_mode<synchronous>, transform_indices = @transform_3, window_bounds = array<i64: 13, 128>}, {pipeline_mode = #tpu.pipeline_mode<synchronous>, transform_indices = @transform_4, window_bounds = array<i64: 32, 112>}, {pipeline_mode = #tpu.pipeline_mode<synchronous>, transform_indices = @transform_5, window_bounds = array<i64: 32, 96>}, {pipeline_mode = #tpu.pipeline_mode<synchronous>, transform_indices = @transform_6, window_bounds = array<i64: 32, 64>}, {pipeline_mode = #tpu.pipeline_mode<synchronous>, transform_indices = @transform_7, window_bounds = array<i64: 2, 128>}]} {
    %c0 = arith.constant 0 : index
    %c0_0 = arith.constant 0 : index
    %c0_1 = arith.constant 0 : index
    %0 = vector.load %arg1[%c0, %c0_0, %c0_1] : memref<2x8x32xf32, #tpu.memory_space<vmem>>, vector<2x8x32xf32>
    %c0_2 = arith.constant 0 : index
    %c0_3 = arith.constant 0 : index
    %1 = vector.load %arg2[%c0_2, %c0_3] : memref<2x8xf32, #tpu.memory_space<vmem>>, vector<2x8xf32>
    %c0_4 = arith.constant 0 : index
    %c0_5 = arith.constant 0 : index
    %2 = vector.load %arg3[%c0_4, %c0_5] : memref<2x8xf32, #tpu.memory_space<vmem>>, vector<2x8xf32>
    %c0_6 = arith.constant 0 : index
    %c0_7 = arith.constant 0 : index
    %3 = vector.load %arg4[%c0_6, %c0_7] : memref<13x128xf32, #tpu.memory_space<vmem>>, vector<13x128xf32>
    %c0_8 = arith.constant 0 : index
    %c0_9 = arith.constant 0 : index
    %4 = vector.load %arg5[%c0_8, %c0_9] : memref<32x112xf32, #tpu.memory_space<vmem>>, vector<32x112xf32>
    %c0_10 = arith.constant 0 : index
    %c0_11 = arith.constant 0 : index
    %5 = vector.load %arg6[%c0_10, %c0_11] : memref<32x96xf32, #tpu.memory_space<vmem>>, vector<32x96xf32>
    %c0_12 = arith.constant 0 : index
    %c0_13 = arith.constant 0 : index
    %6 = vector.load %arg7[%c0_12, %c0_13] : memref<32x64xf32, #tpu.memory_space<vmem>>, vector<32x64xf32>
    %7 = vector.extract_strided_slice %3 {offsets = [0, 0], sizes = [1, 32], strides = [1, 1]} : vector<13x128xf32> to vector<1x32xf32>
    %8 = vector.shape_cast %7 : vector<1x32xf32> to vector<32xf32>
    %9 = vector.extract_strided_slice %3 {offsets = [1, 0], sizes = [1, 32], strides = [1, 1]} : vector<13x128xf32> to vector<1x32xf32>
    %10 = vector.shape_cast %9 : vector<1x32xf32> to vector<32xf32>
    %11 = vector.extract_strided_slice %3 {offsets = [2, 0], sizes = [1, 32], strides = [1, 1]} : vector<13x128xf32> to vector<1x32xf32>
    %12 = vector.shape_cast %11 : vector<1x32xf32> to vector<32xf32>
    %13 = vector.extract_strided_slice %3 {offsets = [3, 0], sizes = [1, 32], strides = [1, 1]} : vector<13x128xf32> to vector<1x32xf32>
    %14 = vector.shape_cast %13 : vector<1x32xf32> to vector<32xf32>
    %15 = vector.extract_strided_slice %3 {offsets = [4, 0], sizes = [1, 32], strides = [1, 1]} : vector<13x128xf32> to vector<1x32xf32>
    %16 = vector.shape_cast %15 : vector<1x32xf32> to vector<32xf32>
    %17 = vector.extract_strided_slice %3 {offsets = [5, 0], sizes = [1, 48], strides = [1, 1]} : vector<13x128xf32> to vector<1x48xf32>
    %18 = vector.shape_cast %17 : vector<1x48xf32> to vector<48xf32>
    %19 = vector.extract_strided_slice %3 {offsets = [6, 0], sizes = [1, 48], strides = [1, 1]} : vector<13x128xf32> to vector<1x48xf32>
    %20 = vector.shape_cast %19 : vector<1x48xf32> to vector<48xf32>
    %21 = vector.extract_strided_slice %3 {offsets = [7, 0], sizes = [1, 48], strides = [1, 1]} : vector<13x128xf32> to vector<1x48xf32>
    %22 = vector.shape_cast %21 : vector<1x48xf32> to vector<48xf32>
    %23 = vector.extract_strided_slice %3 {offsets = [8, 0], sizes = [1, 48], strides = [1, 1]} : vector<13x128xf32> to vector<1x48xf32>
    %24 = vector.shape_cast %23 : vector<1x48xf32> to vector<48xf32>
    %25 = vector.extract_strided_slice %3 {offsets = [9, 0], sizes = [1, 32], strides = [1, 1]} : vector<13x128xf32> to vector<1x32xf32>
    %26 = vector.shape_cast %25 : vector<1x32xf32> to vector<32xf32>
    %27 = vector.extract_strided_slice %3 {offsets = [10, 0], sizes = [1, 32], strides = [1, 1]} : vector<13x128xf32> to vector<1x32xf32>
    %28 = vector.shape_cast %27 : vector<1x32xf32> to vector<32xf32>
    %29 = vector.extract_strided_slice %3 {offsets = [11, 0], sizes = [1, 32], strides = [1, 1]} : vector<13x128xf32> to vector<1x32xf32>
    %30 = vector.shape_cast %29 : vector<1x32xf32> to vector<32xf32>
    %31 = vector.extract_strided_slice %3 {offsets = [12, 0], sizes = [1, 16], strides = [1, 1]} : vector<13x128xf32> to vector<1x16xf32>
    %32 = vector.shape_cast %31 : vector<1x16xf32> to vector<16xf32>
    %cst = arith.constant dense<0xFF800000> : vector<2xf32>
    %33 = vector.multi_reduction <maximumf>, %1, %cst [1] : vector<2x8xf32> to vector<2xf32>
    %34 = vector.shape_cast %33 : vector<2xf32> to vector<2x1xf32>
    %35 = vector.broadcast %34 : vector<2x1xf32> to vector<2x8xf32>
    %36 = arith.subf %1, %35 : vector<2x8xf32>
    %37 = math.exp %36 : vector<2x8xf32>
    %cst_14 = arith.constant dense<0.000000e+00> : vector<2xf32>
    %38 = vector.multi_reduction <add>, %37, %cst_14 [1] : vector<2x8xf32> to vector<2xf32>
    %39 = vector.shape_cast %38 : vector<2xf32> to vector<2x1xf32>
    %40 = tpu.reciprocal %39 {approx = true} : vector<2x1xf32> -> vector<2x1xf32>
    %41 = vector.broadcast %40 : vector<2x1xf32> to vector<2x8xf32>
    %42 = arith.mulf %37, %41 : vector<2x8xf32>
    %43 = vector.shape_cast %42 : vector<2x8xf32> to vector<2x8x1xf32>
    %cst_15 = arith.constant 1.000000e+00 : f32
    %44 = vector.broadcast %cst_15 : f32 to vector<2x8x1xf32>
    %45 = arith.addf %44, %43 : vector<2x8x1xf32>
    %46 = vector.broadcast %45 : vector<2x8x1xf32> to vector<2x8x32xf32>
    %47 = arith.mulf %0, %46 : vector<2x8x32xf32>
    %48 = vector.shape_cast %47 : vector<2x8x32xf32> to vector<16x32xf32>
    %cst_16 = arith.constant dense<0.000000e+00> : vector<16xf32>
    %49 = vector.multi_reduction <add>, %48, %cst_16 [1] : vector<16x32xf32> to vector<16xf32>
    %50 = vector.shape_cast %49 : vector<16xf32> to vector<16x1xf32>
    %cst_17 = arith.constant 3.200000e+01 : f32
    %51 = vector.broadcast %cst_17 : f32 to vector<16x1xf32>
    %52 = arith.divf %50, %51 : vector<16x1xf32>
    %53 = vector.broadcast %52 : vector<16x1xf32> to vector<16x32xf32>
    %54 = arith.subf %48, %53 : vector<16x32xf32>
    %55 = arith.mulf %54, %54 : vector<16x32xf32>
    %cst_18 = arith.constant dense<0.000000e+00> : vector<16xf32>
    %56 = vector.multi_reduction <add>, %55, %cst_18 [1] : vector<16x32xf32> to vector<16xf32>
    %57 = vector.shape_cast %56 : vector<16xf32> to vector<16x1xf32>
    %cst_19 = arith.constant 3.200000e+01 : f32
    %58 = vector.broadcast %cst_19 : f32 to vector<16x1xf32>
    %59 = arith.divf %57, %58 : vector<16x1xf32>
    %60 = vector.broadcast %52 : vector<16x1xf32> to vector<16x32xf32>
    %61 = arith.subf %48, %60 : vector<16x32xf32>
    %cst_20 = arith.constant 9.99999974E-6 : f32
    %62 = vector.broadcast %cst_20 : f32 to vector<16x1xf32>
    %63 = arith.addf %59, %62 : vector<16x1xf32>
    %64 = math.rsqrt %63 : vector<16x1xf32>
    %65 = vector.broadcast %64 : vector<16x1xf32> to vector<16x32xf32>
    %66 = arith.mulf %61, %65 : vector<16x32xf32>
    %67 = vector.shape_cast %8 : vector<32xf32> to vector<1x32xf32>
    %68 = vector.broadcast %67 : vector<1x32xf32> to vector<16x32xf32>
    %69 = arith.mulf %66, %68 : vector<16x32xf32>
    %70 = vector.shape_cast %10 : vector<32xf32> to vector<1x32xf32>
    %71 = vector.broadcast %70 : vector<1x32xf32> to vector<16x32xf32>
    %72 = arith.addf %69, %71 : vector<16x32xf32>
    %73 = vector.extract_strided_slice %6 {offsets = [0, 0], sizes = [32, 32], strides = [1, 1]} : vector<32x64xf32> to vector<32x32xf32>
    %cst_21 = arith.constant dense<0.000000e+00> : vector<16x32xf32>
    %74 = tpu.matmul %72, %73, %cst_21 {dimension_numbers = #tpu.dot_dimension_numbers<[1], [0], [0], [1], [0, 0, 1, 1], [], []>} : vector<16x32xf32>, vector<32x32xf32>, vector<16x32xf32> -> vector<16x32xf32>
    %75 = vector.shape_cast %12 : vector<32xf32> to vector<1x32xf32>
    %76 = vector.broadcast %75 : vector<1x32xf32> to vector<16x32xf32>
    %77 = arith.addf %74, %76 : vector<16x32xf32>
    %cst_22 = arith.constant dense<0.000000e+00> : vector<16xf32>
    %78 = vector.multi_reduction <add>, %77, %cst_22 [1] : vector<16x32xf32> to vector<16xf32>
    %79 = vector.shape_cast %78 : vector<16xf32> to vector<16x1xf32>
    %cst_23 = arith.constant 3.200000e+01 : f32
    %80 = vector.broadcast %cst_23 : f32 to vector<16x1xf32>
    %81 = arith.divf %79, %80 : vector<16x1xf32>
    %82 = vector.broadcast %81 : vector<16x1xf32> to vector<16x32xf32>
    %83 = arith.subf %77, %82 : vector<16x32xf32>
    %84 = arith.mulf %83, %83 : vector<16x32xf32>
    %cst_24 = arith.constant dense<0.000000e+00> : vector<16xf32>
    %85 = vector.multi_reduction <add>, %84, %cst_24 [1] : vector<16x32xf32> to vector<16xf32>
    %86 = vector.shape_cast %85 : vector<16xf32> to vector<16x1xf32>
    %cst_25 = arith.constant 3.200000e+01 : f32
    %87 = vector.broadcast %cst_25 : f32 to vector<16x1xf32>
    %88 = arith.divf %86, %87 : vector<16x1xf32>
    %89 = vector.broadcast %81 : vector<16x1xf32> to vector<16x32xf32>
    %90 = arith.subf %77, %89 : vector<16x32xf32>
    %cst_26 = arith.constant 9.99999974E-6 : f32
    %91 = vector.broadcast %cst_26 : f32 to vector<16x1xf32>
    %92 = arith.addf %88, %91 : vector<16x1xf32>
    %93 = math.rsqrt %92 : vector<16x1xf32>
    %94 = vector.broadcast %93 : vector<16x1xf32> to vector<16x32xf32>
    %95 = arith.mulf %90, %94 : vector<16x32xf32>
    %96 = vector.shape_cast %14 : vector<32xf32> to vector<1x32xf32>
    %97 = vector.broadcast %96 : vector<1x32xf32> to vector<16x32xf32>
    %98 = arith.mulf %95, %97 : vector<16x32xf32>
    %99 = vector.shape_cast %16 : vector<32xf32> to vector<1x32xf32>
    %100 = vector.broadcast %99 : vector<1x32xf32> to vector<16x32xf32>
    %101 = arith.addf %98, %100 : vector<16x32xf32>
    %102 = vector.shape_cast %101 : vector<16x32xf32> to vector<2x8x32xf32>
    %cst_27 = arith.constant dense<0.000000e+00> : vector<16x112xf32>
    %103 = tpu.matmul %101, %4, %cst_27 {dimension_numbers = #tpu.dot_dimension_numbers<[1], [0], [0], [1], [0, 0, 1, 1], [], []>} : vector<16x32xf32>, vector<32x112xf32>, vector<16x112xf32> -> vector<16x112xf32>
    %104 = vector.shape_cast %103 : vector<16x112xf32> to vector<2x8x112xf32>
    %105 = vector.extract_strided_slice %104 {offsets = [0, 0, 0], sizes = [2, 8, 48], strides = [1, 1, 1]} : vector<2x8x112xf32> to vector<2x8x48xf32>
    %106 = vector.shape_cast %18 : vector<48xf32> to vector<1x1x48xf32>
    %107 = vector.broadcast %106 : vector<1x1x48xf32> to vector<2x8x48xf32>
    %108 = arith.addf %105, %107 : vector<2x8x48xf32>
    %109 = vector.extract_strided_slice %104 {offsets = [0, 0, 48], sizes = [2, 8, 48], strides = [1, 1, 1]} : vector<2x8x112xf32> to vector<2x8x48xf32>
    %110 = vector.shape_cast %22 : vector<48xf32> to vector<1x1x48xf32>
    %111 = vector.broadcast %110 : vector<1x1x48xf32> to vector<2x8x48xf32>
    %112 = arith.addf %109, %111 : vector<2x8x48xf32>
    %113 = vector.extract_strided_slice %104 {offsets = [0, 0, 96], sizes = [2, 8, 16], strides = [1, 1, 1]} : vector<2x8x112xf32> to vector<2x8x16xf32>
    %114 = math.tanh %113 : vector<2x8x16xf32>
    %cst_28 = arith.constant 0.000000e+00 : f32
    %115 = vector.broadcast %cst_28 : f32 to vector<2x32xf32>
    %cst_29 = arith.constant dense<0.000000e+00> : vector<2x96xf32>
    %116 = tpu.matmul %115, %5, %cst_29 {dimension_numbers = #tpu.dot_dimension_numbers<[1], [0], [0], [1], [0, 0, 1, 1], [], []>} : vector<2x32xf32>, vector<32x96xf32>, vector<2x96xf32> -> vector<2x96xf32>
    %117 = vector.extract_strided_slice %115 {offsets = [0, 0], sizes = [2, 16], strides = [1, 1]} : vector<2x32xf32> to vector<2x16xf32>
    %118 = vector.extract_strided_slice %115 {offsets = [0, 16], sizes = [2, 16], strides = [1, 1]} : vector<2x32xf32> to vector<2x16xf32>
    %119 = vector.extract_strided_slice %108 {offsets = [0, 0, 0], sizes = [2, 1, 48], strides = [1, 1, 1]} : vector<2x8x48xf32> to vector<2x1x48xf32>
    %120 = vector.shape_cast %119 : vector<2x1x48xf32> to vector<2x48xf32>
    %121 = vector.extract_strided_slice %116 {offsets = [0, 0], sizes = [2, 48], strides = [1, 1]} : vector<2x96xf32> to vector<2x48xf32>
    %122 = vector.shape_cast %20 : vector<48xf32> to vector<1x48xf32>
    %123 = vector.broadcast %122 : vector<1x48xf32> to vector<2x48xf32>
    %124 = arith.addf %121, %123 : vector<2x48xf32>
    %125 = vector.extract_strided_slice %120 {offsets = [0, 0], sizes = [2, 16], strides = [1, 1]} : vector<2x48xf32> to vector<2x16xf32>
    %126 = vector.extract_strided_slice %124 {offsets = [0, 0], sizes = [2, 16], strides = [1, 1]} : vector<2x48xf32> to vector<2x16xf32>
    %127 = arith.addf %125, %126 : vector<2x16xf32>
    %128 = arith.negf %127 : vector<2x16xf32>
    %129 = math.exp %128 : vector<2x16xf32>
    %cst_30 = arith.constant 1.000000e+00 : f32
    %130 = vector.broadcast %cst_30 : f32 to vector<2x16xf32>
    %131 = arith.addf %130, %129 : vector<2x16xf32>
    %132 = arith.divf %130, %131 : vector<2x16xf32>
    %133 = vector.extract_strided_slice %120 {offsets = [0, 16], sizes = [2, 16], strides = [1, 1]} : vector<2x48xf32> to vector<2x16xf32>
    %134 = vector.extract_strided_slice %124 {offsets = [0, 16], sizes = [2, 16], strides = [1, 1]} : vector<2x48xf32> to vector<2x16xf32>
    %135 = arith.addf %133, %134 : vector<2x16xf32>
    %136 = arith.negf %135 : vector<2x16xf32>
    %137 = math.exp %136 : vector<2x16xf32>
    %cst_31 = arith.constant 1.000000e+00 : f32
    %138 = vector.broadcast %cst_31 : f32 to vector<2x16xf32>
    %139 = arith.addf %138, %137 : vector<2x16xf32>
    %140 = arith.divf %138, %139 : vector<2x16xf32>
    %141 = vector.extract_strided_slice %120 {offsets = [0, 32], sizes = [2, 16], strides = [1, 1]} : vector<2x48xf32> to vector<2x16xf32>
    %142 = vector.extract_strided_slice %124 {offsets = [0, 32], sizes = [2, 16], strides = [1, 1]} : vector<2x48xf32> to vector<2x16xf32>
    %143 = arith.mulf %132, %142 : vector<2x16xf32>
    %144 = arith.addf %141, %143 : vector<2x16xf32>
    %145 = math.tanh %144 : vector<2x16xf32>
    %cst_32 = arith.constant 1.000000e+00 : f32
    %146 = vector.broadcast %cst_32 : f32 to vector<2x16xf32>
    %147 = arith.subf %146, %140 : vector<2x16xf32>
    %148 = arith.mulf %147, %145 : vector<2x16xf32>
    %149 = arith.mulf %140, %117 : vector<2x16xf32>
    %150 = arith.addf %148, %149 : vector<2x16xf32>
    %151 = vector.extract_strided_slice %112 {offsets = [0, 7, 0], sizes = [2, 1, 48], strides = [1, 1, 1]} : vector<2x8x48xf32> to vector<2x1x48xf32>
    %152 = vector.shape_cast %151 : vector<2x1x48xf32> to vector<2x48xf32>
    %153 = vector.extract_strided_slice %116 {offsets = [0, 48], sizes = [2, 48], strides = [1, 1]} : vector<2x96xf32> to vector<2x48xf32>
    %154 = vector.shape_cast %24 : vector<48xf32> to vector<1x48xf32>
    %155 = vector.broadcast %154 : vector<1x48xf32> to vector<2x48xf32>
    %156 = arith.addf %153, %155 : vector<2x48xf32>
    %157 = vector.extract_strided_slice %152 {offsets = [0, 0], sizes = [2, 16], strides = [1, 1]} : vector<2x48xf32> to vector<2x16xf32>
    %158 = vector.extract_strided_slice %156 {offsets = [0, 0], sizes = [2, 16], strides = [1, 1]} : vector<2x48xf32> to vector<2x16xf32>
    %159 = arith.addf %157, %158 : vector<2x16xf32>
    %160 = arith.negf %159 : vector<2x16xf32>
    %161 = math.exp %160 : vector<2x16xf32>
    %cst_33 = arith.constant 1.000000e+00 : f32
    %162 = vector.broadcast %cst_33 : f32 to vector<2x16xf32>
    %163 = arith.addf %162, %161 : vector<2x16xf32>
    %164 = arith.divf %162, %163 : vector<2x16xf32>
    %165 = vector.extract_strided_slice %152 {offsets = [0, 16], sizes = [2, 16], strides = [1, 1]} : vector<2x48xf32> to vector<2x16xf32>
    %166 = vector.extract_strided_slice %156 {offsets = [0, 16], sizes = [2, 16], strides = [1, 1]} : vector<2x48xf32> to vector<2x16xf32>
    %167 = arith.addf %165, %166 : vector<2x16xf32>
    %168 = arith.negf %167 : vector<2x16xf32>
    %169 = math.exp %168 : vector<2x16xf32>
    %cst_34 = arith.constant 1.000000e+00 : f32
    %170 = vector.broadcast %cst_34 : f32 to vector<2x16xf32>
    %171 = arith.addf %170, %169 : vector<2x16xf32>
    %172 = arith.divf %170, %171 : vector<2x16xf32>
    %173 = vector.extract_strided_slice %152 {offsets = [0, 32], sizes = [2, 16], strides = [1, 1]} : vector<2x48xf32> to vector<2x16xf32>
    %174 = vector.extract_strided_slice %156 {offsets = [0, 32], sizes = [2, 16], strides = [1, 1]} : vector<2x48xf32> to vector<2x16xf32>
    %175 = arith.mulf %164, %174 : vector<2x16xf32>
    %176 = arith.addf %173, %175 : vector<2x16xf32>
    %177 = math.tanh %176 : vector<2x16xf32>
    %cst_35 = arith.constant 1.000000e+00 : f32
    %178 = vector.broadcast %cst_35 : f32 to vector<2x16xf32>
    %179 = arith.subf %178, %172 : vector<2x16xf32>
    %180 = arith.mulf %179, %177 : vector<2x16xf32>
    %181 = arith.mulf %172, %118 : vector<2x16xf32>
    %182 = arith.addf %180, %181 : vector<2x16xf32>
    %183 = vector.extract_strided_slice %2 {offsets = [0, 0], sizes = [2, 1], strides = [1, 1]} : vector<2x8xf32> to vector<2x1xf32>
    %184 = vector.shape_cast %183 : vector<2x1xf32> to vector<2xf32>
    %185 = vector.shape_cast %184 : vector<2xf32> to vector<2x1xf32>
    %186 = vector.extract_strided_slice %2 {offsets = [0, 7], sizes = [2, 1], strides = [1, 1]} : vector<2x8xf32> to vector<2x1xf32>
    %187 = vector.shape_cast %186 : vector<2x1xf32> to vector<2xf32>
    %188 = vector.shape_cast %187 : vector<2xf32> to vector<2x1xf32>
    %189 = vector.broadcast %185 : vector<2x1xf32> to vector<2x16xf32>
    %190 = arith.mulf %189, %150 : vector<2x16xf32>
    %cst_36 = arith.constant 1.000000e+00 : f32
    %191 = vector.broadcast %cst_36 : f32 to vector<2x1xf32>
    %192 = arith.subf %191, %185 : vector<2x1xf32>
    %193 = vector.broadcast %192 : vector<2x1xf32> to vector<2x16xf32>
    %194 = arith.mulf %193, %117 : vector<2x16xf32>
    %195 = arith.addf %190, %194 : vector<2x16xf32>
    %196 = vector.broadcast %188 : vector<2x1xf32> to vector<2x16xf32>
    %197 = arith.mulf %196, %182 : vector<2x16xf32>
    %cst_37 = arith.constant 1.000000e+00 : f32
    %198 = vector.broadcast %cst_37 : f32 to vector<2x1xf32>
    %199 = arith.subf %198, %188 : vector<2x1xf32>
    %200 = vector.broadcast %199 : vector<2x1xf32> to vector<2x16xf32>
    %201 = arith.mulf %200, %118 : vector<2x16xf32>
    %202 = arith.addf %197, %201 : vector<2x16xf32>
    %203 = tpu.concatenate %195, %202 in 1 : vector<2x16xf32>, vector<2x16xf32> -> vector<2x32xf32>
    %cst_38 = arith.constant dense<0.000000e+00> : vector<2x96xf32>
    %204 = tpu.matmul %203, %5, %cst_38 {dimension_numbers = #tpu.dot_dimension_numbers<[1], [0], [0], [1], [0, 0, 1, 1], [], []>} : vector<2x32xf32>, vector<32x96xf32>, vector<2x96xf32> -> vector<2x96xf32>
    %205 = vector.extract_strided_slice %203 {offsets = [0, 0], sizes = [2, 16], strides = [1, 1]} : vector<2x32xf32> to vector<2x16xf32>
    %206 = vector.extract_strided_slice %203 {offsets = [0, 16], sizes = [2, 16], strides = [1, 1]} : vector<2x32xf32> to vector<2x16xf32>
    %207 = vector.extract_strided_slice %108 {offsets = [0, 1, 0], sizes = [2, 1, 48], strides = [1, 1, 1]} : vector<2x8x48xf32> to vector<2x1x48xf32>
    %208 = vector.shape_cast %207 : vector<2x1x48xf32> to vector<2x48xf32>
    %209 = vector.extract_strided_slice %204 {offsets = [0, 0], sizes = [2, 48], strides = [1, 1]} : vector<2x96xf32> to vector<2x48xf32>
    %210 = vector.shape_cast %20 : vector<48xf32> to vector<1x48xf32>
    %211 = vector.broadcast %210 : vector<1x48xf32> to vector<2x48xf32>
    %212 = arith.addf %209, %211 : vector<2x48xf32>
    %213 = vector.extract_strided_slice %208 {offsets = [0, 0], sizes = [2, 16], strides = [1, 1]} : vector<2x48xf32> to vector<2x16xf32>
    %214 = vector.extract_strided_slice %212 {offsets = [0, 0], sizes = [2, 16], strides = [1, 1]} : vector<2x48xf32> to vector<2x16xf32>
    %215 = arith.addf %213, %214 : vector<2x16xf32>
    %216 = arith.negf %215 : vector<2x16xf32>
    %217 = math.exp %216 : vector<2x16xf32>
    %cst_39 = arith.constant 1.000000e+00 : f32
    %218 = vector.broadcast %cst_39 : f32 to vector<2x16xf32>
    %219 = arith.addf %218, %217 : vector<2x16xf32>
    %220 = arith.divf %218, %219 : vector<2x16xf32>
    %221 = vector.extract_strided_slice %208 {offsets = [0, 16], sizes = [2, 16], strides = [1, 1]} : vector<2x48xf32> to vector<2x16xf32>
    %222 = vector.extract_strided_slice %212 {offsets = [0, 16], sizes = [2, 16], strides = [1, 1]} : vector<2x48xf32> to vector<2x16xf32>
    %223 = arith.addf %221, %222 : vector<2x16xf32>
    %224 = arith.negf %223 : vector<2x16xf32>
    %225 = math.exp %224 : vector<2x16xf32>
    %cst_40 = arith.constant 1.000000e+00 : f32
    %226 = vector.broadcast %cst_40 : f32 to vector<2x16xf32>
    %227 = arith.addf %226, %225 : vector<2x16xf32>
    %228 = arith.divf %226, %227 : vector<2x16xf32>
    %229 = vector.extract_strided_slice %208 {offsets = [0, 32], sizes = [2, 16], strides = [1, 1]} : vector<2x48xf32> to vector<2x16xf32>
    %230 = vector.extract_strided_slice %212 {offsets = [0, 32], sizes = [2, 16], strides = [1, 1]} : vector<2x48xf32> to vector<2x16xf32>
    %231 = arith.mulf %220, %230 : vector<2x16xf32>
    %232 = arith.addf %229, %231 : vector<2x16xf32>
    %233 = math.tanh %232 : vector<2x16xf32>
    %cst_41 = arith.constant 1.000000e+00 : f32
    %234 = vector.broadcast %cst_41 : f32 to vector<2x16xf32>
    %235 = arith.subf %234, %228 : vector<2x16xf32>
    %236 = arith.mulf %235, %233 : vector<2x16xf32>
    %237 = arith.mulf %228, %205 : vector<2x16xf32>
    %238 = arith.addf %236, %237 : vector<2x16xf32>
    %239 = vector.extract_strided_slice %112 {offsets = [0, 6, 0], sizes = [2, 1, 48], strides = [1, 1, 1]} : vector<2x8x48xf32> to vector<2x1x48xf32>
    %240 = vector.shape_cast %239 : vector<2x1x48xf32> to vector<2x48xf32>
    %241 = vector.extract_strided_slice %204 {offsets = [0, 48], sizes = [2, 48], strides = [1, 1]} : vector<2x96xf32> to vector<2x48xf32>
    %242 = vector.shape_cast %24 : vector<48xf32> to vector<1x48xf32>
    %243 = vector.broadcast %242 : vector<1x48xf32> to vector<2x48xf32>
    %244 = arith.addf %241, %243 : vector<2x48xf32>
    %245 = vector.extract_strided_slice %240 {offsets = [0, 0], sizes = [2, 16], strides = [1, 1]} : vector<2x48xf32> to vector<2x16xf32>
    %246 = vector.extract_strided_slice %244 {offsets = [0, 0], sizes = [2, 16], strides = [1, 1]} : vector<2x48xf32> to vector<2x16xf32>
    %247 = arith.addf %245, %246 : vector<2x16xf32>
    %248 = arith.negf %247 : vector<2x16xf32>
    %249 = math.exp %248 : vector<2x16xf32>
    %cst_42 = arith.constant 1.000000e+00 : f32
    %250 = vector.broadcast %cst_42 : f32 to vector<2x16xf32>
    %251 = arith.addf %250, %249 : vector<2x16xf32>
    %252 = arith.divf %250, %251 : vector<2x16xf32>
    %253 = vector.extract_strided_slice %240 {offsets = [0, 16], sizes = [2, 16], strides = [1, 1]} : vector<2x48xf32> to vector<2x16xf32>
    %254 = vector.extract_strided_slice %244 {offsets = [0, 16], sizes = [2, 16], strides = [1, 1]} : vector<2x48xf32> to vector<2x16xf32>
    %255 = arith.addf %253, %254 : vector<2x16xf32>
    %256 = arith.negf %255 : vector<2x16xf32>
    %257 = math.exp %256 : vector<2x16xf32>
    %cst_43 = arith.constant 1.000000e+00 : f32
    %258 = vector.broadcast %cst_43 : f32 to vector<2x16xf32>
    %259 = arith.addf %258, %257 : vector<2x16xf32>
    %260 = arith.divf %258, %259 : vector<2x16xf32>
    %261 = vector.extract_strided_slice %240 {offsets = [0, 32], sizes = [2, 16], strides = [1, 1]} : vector<2x48xf32> to vector<2x16xf32>
    %262 = vector.extract_strided_slice %244 {offsets = [0, 32], sizes = [2, 16], strides = [1, 1]} : vector<2x48xf32> to vector<2x16xf32>
    %263 = arith.mulf %252, %262 : vector<2x16xf32>
    %264 = arith.addf %261, %263 : vector<2x16xf32>
    %265 = math.tanh %264 : vector<2x16xf32>
    %cst_44 = arith.constant 1.000000e+00 : f32
    %266 = vector.broadcast %cst_44 : f32 to vector<2x16xf32>
    %267 = arith.subf %266, %260 : vector<2x16xf32>
    %268 = arith.mulf %267, %265 : vector<2x16xf32>
    %269 = arith.mulf %260, %206 : vector<2x16xf32>
    %270 = arith.addf %268, %269 : vector<2x16xf32>
    %271 = vector.extract_strided_slice %2 {offsets = [0, 1], sizes = [2, 1], strides = [1, 1]} : vector<2x8xf32> to vector<2x1xf32>
    %272 = vector.shape_cast %271 : vector<2x1xf32> to vector<2xf32>
    %273 = vector.shape_cast %272 : vector<2xf32> to vector<2x1xf32>
    %274 = vector.extract_strided_slice %2 {offsets = [0, 6], sizes = [2, 1], strides = [1, 1]} : vector<2x8xf32> to vector<2x1xf32>
    %275 = vector.shape_cast %274 : vector<2x1xf32> to vector<2xf32>
    %276 = vector.shape_cast %275 : vector<2xf32> to vector<2x1xf32>
    %277 = vector.broadcast %273 : vector<2x1xf32> to vector<2x16xf32>
    %278 = arith.mulf %277, %238 : vector<2x16xf32>
    %cst_45 = arith.constant 1.000000e+00 : f32
    %279 = vector.broadcast %cst_45 : f32 to vector<2x1xf32>
    %280 = arith.subf %279, %273 : vector<2x1xf32>
    %281 = vector.broadcast %280 : vector<2x1xf32> to vector<2x16xf32>
    %282 = arith.mulf %281, %205 : vector<2x16xf32>
    %283 = arith.addf %278, %282 : vector<2x16xf32>
    %284 = vector.broadcast %276 : vector<2x1xf32> to vector<2x16xf32>
    %285 = arith.mulf %284, %270 : vector<2x16xf32>
    %cst_46 = arith.constant 1.000000e+00 : f32
    %286 = vector.broadcast %cst_46 : f32 to vector<2x1xf32>
    %287 = arith.subf %286, %276 : vector<2x1xf32>
    %288 = vector.broadcast %287 : vector<2x1xf32> to vector<2x16xf32>
    %289 = arith.mulf %288, %206 : vector<2x16xf32>
    %290 = arith.addf %285, %289 : vector<2x16xf32>
    %291 = tpu.concatenate %283, %290 in 1 : vector<2x16xf32>, vector<2x16xf32> -> vector<2x32xf32>
    %cst_47 = arith.constant dense<0.000000e+00> : vector<2x96xf32>
    %292 = tpu.matmul %291, %5, %cst_47 {dimension_numbers = #tpu.dot_dimension_numbers<[1], [0], [0], [1], [0, 0, 1, 1], [], []>} : vector<2x32xf32>, vector<32x96xf32>, vector<2x96xf32> -> vector<2x96xf32>
    %293 = vector.extract_strided_slice %291 {offsets = [0, 0], sizes = [2, 16], strides = [1, 1]} : vector<2x32xf32> to vector<2x16xf32>
    %294 = vector.extract_strided_slice %291 {offsets = [0, 16], sizes = [2, 16], strides = [1, 1]} : vector<2x32xf32> to vector<2x16xf32>
    %295 = vector.extract_strided_slice %108 {offsets = [0, 2, 0], sizes = [2, 1, 48], strides = [1, 1, 1]} : vector<2x8x48xf32> to vector<2x1x48xf32>
    %296 = vector.shape_cast %295 : vector<2x1x48xf32> to vector<2x48xf32>
    %297 = vector.extract_strided_slice %292 {offsets = [0, 0], sizes = [2, 48], strides = [1, 1]} : vector<2x96xf32> to vector<2x48xf32>
    %298 = vector.shape_cast %20 : vector<48xf32> to vector<1x48xf32>
    %299 = vector.broadcast %298 : vector<1x48xf32> to vector<2x48xf32>
    %300 = arith.addf %297, %299 : vector<2x48xf32>
    %301 = vector.extract_strided_slice %296 {offsets = [0, 0], sizes = [2, 16], strides = [1, 1]} : vector<2x48xf32> to vector<2x16xf32>
    %302 = vector.extract_strided_slice %300 {offsets = [0, 0], sizes = [2, 16], strides = [1, 1]} : vector<2x48xf32> to vector<2x16xf32>
    %303 = arith.addf %301, %302 : vector<2x16xf32>
    %304 = arith.negf %303 : vector<2x16xf32>
    %305 = math.exp %304 : vector<2x16xf32>
    %cst_48 = arith.constant 1.000000e+00 : f32
    %306 = vector.broadcast %cst_48 : f32 to vector<2x16xf32>
    %307 = arith.addf %306, %305 : vector<2x16xf32>
    %308 = arith.divf %306, %307 : vector<2x16xf32>
    %309 = vector.extract_strided_slice %296 {offsets = [0, 16], sizes = [2, 16], strides = [1, 1]} : vector<2x48xf32> to vector<2x16xf32>
    %310 = vector.extract_strided_slice %300 {offsets = [0, 16], sizes = [2, 16], strides = [1, 1]} : vector<2x48xf32> to vector<2x16xf32>
    %311 = arith.addf %309, %310 : vector<2x16xf32>
    %312 = arith.negf %311 : vector<2x16xf32>
    %313 = math.exp %312 : vector<2x16xf32>
    %cst_49 = arith.constant 1.000000e+00 : f32
    %314 = vector.broadcast %cst_49 : f32 to vector<2x16xf32>
    %315 = arith.addf %314, %313 : vector<2x16xf32>
    %316 = arith.divf %314, %315 : vector<2x16xf32>
    %317 = vector.extract_strided_slice %296 {offsets = [0, 32], sizes = [2, 16], strides = [1, 1]} : vector<2x48xf32> to vector<2x16xf32>
    %318 = vector.extract_strided_slice %300 {offsets = [0, 32], sizes = [2, 16], strides = [1, 1]} : vector<2x48xf32> to vector<2x16xf32>
    %319 = arith.mulf %308, %318 : vector<2x16xf32>
    %320 = arith.addf %317, %319 : vector<2x16xf32>
    %321 = math.tanh %320 : vector<2x16xf32>
    %cst_50 = arith.constant 1.000000e+00 : f32
    %322 = vector.broadcast %cst_50 : f32 to vector<2x16xf32>
    %323 = arith.subf %322, %316 : vector<2x16xf32>
    %324 = arith.mulf %323, %321 : vector<2x16xf32>
    %325 = arith.mulf %316, %293 : vector<2x16xf32>
    %326 = arith.addf %324, %325 : vector<2x16xf32>
    %327 = vector.extract_strided_slice %112 {offsets = [0, 5, 0], sizes = [2, 1, 48], strides = [1, 1, 1]} : vector<2x8x48xf32> to vector<2x1x48xf32>
    %328 = vector.shape_cast %327 : vector<2x1x48xf32> to vector<2x48xf32>
    %329 = vector.extract_strided_slice %292 {offsets = [0, 48], sizes = [2, 48], strides = [1, 1]} : vector<2x96xf32> to vector<2x48xf32>
    %330 = vector.shape_cast %24 : vector<48xf32> to vector<1x48xf32>
    %331 = vector.broadcast %330 : vector<1x48xf32> to vector<2x48xf32>
    %332 = arith.addf %329, %331 : vector<2x48xf32>
    %333 = vector.extract_strided_slice %328 {offsets = [0, 0], sizes = [2, 16], strides = [1, 1]} : vector<2x48xf32> to vector<2x16xf32>
    %334 = vector.extract_strided_slice %332 {offsets = [0, 0], sizes = [2, 16], strides = [1, 1]} : vector<2x48xf32> to vector<2x16xf32>
    %335 = arith.addf %333, %334 : vector<2x16xf32>
    %336 = arith.negf %335 : vector<2x16xf32>
    %337 = math.exp %336 : vector<2x16xf32>
    %cst_51 = arith.constant 1.000000e+00 : f32
    %338 = vector.broadcast %cst_51 : f32 to vector<2x16xf32>
    %339 = arith.addf %338, %337 : vector<2x16xf32>
    %340 = arith.divf %338, %339 : vector<2x16xf32>
    %341 = vector.extract_strided_slice %328 {offsets = [0, 16], sizes = [2, 16], strides = [1, 1]} : vector<2x48xf32> to vector<2x16xf32>
    %342 = vector.extract_strided_slice %332 {offsets = [0, 16], sizes = [2, 16], strides = [1, 1]} : vector<2x48xf32> to vector<2x16xf32>
    %343 = arith.addf %341, %342 : vector<2x16xf32>
    %344 = arith.negf %343 : vector<2x16xf32>
    %345 = math.exp %344 : vector<2x16xf32>
    %cst_52 = arith.constant 1.000000e+00 : f32
    %346 = vector.broadcast %cst_52 : f32 to vector<2x16xf32>
    %347 = arith.addf %346, %345 : vector<2x16xf32>
    %348 = arith.divf %346, %347 : vector<2x16xf32>
    %349 = vector.extract_strided_slice %328 {offsets = [0, 32], sizes = [2, 16], strides = [1, 1]} : vector<2x48xf32> to vector<2x16xf32>
    %350 = vector.extract_strided_slice %332 {offsets = [0, 32], sizes = [2, 16], strides = [1, 1]} : vector<2x48xf32> to vector<2x16xf32>
    %351 = arith.mulf %340, %350 : vector<2x16xf32>
    %352 = arith.addf %349, %351 : vector<2x16xf32>
    %353 = math.tanh %352 : vector<2x16xf32>
    %cst_53 = arith.constant 1.000000e+00 : f32
    %354 = vector.broadcast %cst_53 : f32 to vector<2x16xf32>
    %355 = arith.subf %354, %348 : vector<2x16xf32>
    %356 = arith.mulf %355, %353 : vector<2x16xf32>
    %357 = arith.mulf %348, %294 : vector<2x16xf32>
    %358 = arith.addf %356, %357 : vector<2x16xf32>
    %359 = vector.extract_strided_slice %2 {offsets = [0, 2], sizes = [2, 1], strides = [1, 1]} : vector<2x8xf32> to vector<2x1xf32>
    %360 = vector.shape_cast %359 : vector<2x1xf32> to vector<2xf32>
    %361 = vector.shape_cast %360 : vector<2xf32> to vector<2x1xf32>
    %362 = vector.extract_strided_slice %2 {offsets = [0, 5], sizes = [2, 1], strides = [1, 1]} : vector<2x8xf32> to vector<2x1xf32>
    %363 = vector.shape_cast %362 : vector<2x1xf32> to vector<2xf32>
    %364 = vector.shape_cast %363 : vector<2xf32> to vector<2x1xf32>
    %365 = vector.broadcast %361 : vector<2x1xf32> to vector<2x16xf32>
    %366 = arith.mulf %365, %326 : vector<2x16xf32>
    %cst_54 = arith.constant 1.000000e+00 : f32
    %367 = vector.broadcast %cst_54 : f32 to vector<2x1xf32>
    %368 = arith.subf %367, %361 : vector<2x1xf32>
    %369 = vector.broadcast %368 : vector<2x1xf32> to vector<2x16xf32>
    %370 = arith.mulf %369, %293 : vector<2x16xf32>
    %371 = arith.addf %366, %370 : vector<2x16xf32>
    %372 = vector.broadcast %364 : vector<2x1xf32> to vector<2x16xf32>
    %373 = arith.mulf %372, %358 : vector<2x16xf32>
    %cst_55 = arith.constant 1.000000e+00 : f32
    %374 = vector.broadcast %cst_55 : f32 to vector<2x1xf32>
    %375 = arith.subf %374, %364 : vector<2x1xf32>
    %376 = vector.broadcast %375 : vector<2x1xf32> to vector<2x16xf32>
    %377 = arith.mulf %376, %294 : vector<2x16xf32>
    %378 = arith.addf %373, %377 : vector<2x16xf32>
    %379 = tpu.concatenate %371, %378 in 1 : vector<2x16xf32>, vector<2x16xf32> -> vector<2x32xf32>
    %cst_56 = arith.constant dense<0.000000e+00> : vector<2x96xf32>
    %380 = tpu.matmul %379, %5, %cst_56 {dimension_numbers = #tpu.dot_dimension_numbers<[1], [0], [0], [1], [0, 0, 1, 1], [], []>} : vector<2x32xf32>, vector<32x96xf32>, vector<2x96xf32> -> vector<2x96xf32>
    %381 = vector.extract_strided_slice %379 {offsets = [0, 0], sizes = [2, 16], strides = [1, 1]} : vector<2x32xf32> to vector<2x16xf32>
    %382 = vector.extract_strided_slice %379 {offsets = [0, 16], sizes = [2, 16], strides = [1, 1]} : vector<2x32xf32> to vector<2x16xf32>
    %383 = vector.extract_strided_slice %108 {offsets = [0, 3, 0], sizes = [2, 1, 48], strides = [1, 1, 1]} : vector<2x8x48xf32> to vector<2x1x48xf32>
    %384 = vector.shape_cast %383 : vector<2x1x48xf32> to vector<2x48xf32>
    %385 = vector.extract_strided_slice %380 {offsets = [0, 0], sizes = [2, 48], strides = [1, 1]} : vector<2x96xf32> to vector<2x48xf32>
    %386 = vector.shape_cast %20 : vector<48xf32> to vector<1x48xf32>
    %387 = vector.broadcast %386 : vector<1x48xf32> to vector<2x48xf32>
    %388 = arith.addf %385, %387 : vector<2x48xf32>
    %389 = vector.extract_strided_slice %384 {offsets = [0, 0], sizes = [2, 16], strides = [1, 1]} : vector<2x48xf32> to vector<2x16xf32>
    %390 = vector.extract_strided_slice %388 {offsets = [0, 0], sizes = [2, 16], strides = [1, 1]} : vector<2x48xf32> to vector<2x16xf32>
    %391 = arith.addf %389, %390 : vector<2x16xf32>
    %392 = arith.negf %391 : vector<2x16xf32>
    %393 = math.exp %392 : vector<2x16xf32>
    %cst_57 = arith.constant 1.000000e+00 : f32
    %394 = vector.broadcast %cst_57 : f32 to vector<2x16xf32>
    %395 = arith.addf %394, %393 : vector<2x16xf32>
    %396 = arith.divf %394, %395 : vector<2x16xf32>
    %397 = vector.extract_strided_slice %384 {offsets = [0, 16], sizes = [2, 16], strides = [1, 1]} : vector<2x48xf32> to vector<2x16xf32>
    %398 = vector.extract_strided_slice %388 {offsets = [0, 16], sizes = [2, 16], strides = [1, 1]} : vector<2x48xf32> to vector<2x16xf32>
    %399 = arith.addf %397, %398 : vector<2x16xf32>
    %400 = arith.negf %399 : vector<2x16xf32>
    %401 = math.exp %400 : vector<2x16xf32>
    %cst_58 = arith.constant 1.000000e+00 : f32
    %402 = vector.broadcast %cst_58 : f32 to vector<2x16xf32>
    %403 = arith.addf %402, %401 : vector<2x16xf32>
    %404 = arith.divf %402, %403 : vector<2x16xf32>
    %405 = vector.extract_strided_slice %384 {offsets = [0, 32], sizes = [2, 16], strides = [1, 1]} : vector<2x48xf32> to vector<2x16xf32>
    %406 = vector.extract_strided_slice %388 {offsets = [0, 32], sizes = [2, 16], strides = [1, 1]} : vector<2x48xf32> to vector<2x16xf32>
    %407 = arith.mulf %396, %406 : vector<2x16xf32>
    %408 = arith.addf %405, %407 : vector<2x16xf32>
    %409 = math.tanh %408 : vector<2x16xf32>
    %cst_59 = arith.constant 1.000000e+00 : f32
    %410 = vector.broadcast %cst_59 : f32 to vector<2x16xf32>
    %411 = arith.subf %410, %404 : vector<2x16xf32>
    %412 = arith.mulf %411, %409 : vector<2x16xf32>
    %413 = arith.mulf %404, %381 : vector<2x16xf32>
    %414 = arith.addf %412, %413 : vector<2x16xf32>
    %415 = vector.extract_strided_slice %112 {offsets = [0, 4, 0], sizes = [2, 1, 48], strides = [1, 1, 1]} : vector<2x8x48xf32> to vector<2x1x48xf32>
    %416 = vector.shape_cast %415 : vector<2x1x48xf32> to vector<2x48xf32>
    %417 = vector.extract_strided_slice %380 {offsets = [0, 48], sizes = [2, 48], strides = [1, 1]} : vector<2x96xf32> to vector<2x48xf32>
    %418 = vector.shape_cast %24 : vector<48xf32> to vector<1x48xf32>
    %419 = vector.broadcast %418 : vector<1x48xf32> to vector<2x48xf32>
    %420 = arith.addf %417, %419 : vector<2x48xf32>
    %421 = vector.extract_strided_slice %416 {offsets = [0, 0], sizes = [2, 16], strides = [1, 1]} : vector<2x48xf32> to vector<2x16xf32>
    %422 = vector.extract_strided_slice %420 {offsets = [0, 0], sizes = [2, 16], strides = [1, 1]} : vector<2x48xf32> to vector<2x16xf32>
    %423 = arith.addf %421, %422 : vector<2x16xf32>
    %424 = arith.negf %423 : vector<2x16xf32>
    %425 = math.exp %424 : vector<2x16xf32>
    %cst_60 = arith.constant 1.000000e+00 : f32
    %426 = vector.broadcast %cst_60 : f32 to vector<2x16xf32>
    %427 = arith.addf %426, %425 : vector<2x16xf32>
    %428 = arith.divf %426, %427 : vector<2x16xf32>
    %429 = vector.extract_strided_slice %416 {offsets = [0, 16], sizes = [2, 16], strides = [1, 1]} : vector<2x48xf32> to vector<2x16xf32>
    %430 = vector.extract_strided_slice %420 {offsets = [0, 16], sizes = [2, 16], strides = [1, 1]} : vector<2x48xf32> to vector<2x16xf32>
    %431 = arith.addf %429, %430 : vector<2x16xf32>
    %432 = arith.negf %431 : vector<2x16xf32>
    %433 = math.exp %432 : vector<2x16xf32>
    %cst_61 = arith.constant 1.000000e+00 : f32
    %434 = vector.broadcast %cst_61 : f32 to vector<2x16xf32>
    %435 = arith.addf %434, %433 : vector<2x16xf32>
    %436 = arith.divf %434, %435 : vector<2x16xf32>
    %437 = vector.extract_strided_slice %416 {offsets = [0, 32], sizes = [2, 16], strides = [1, 1]} : vector<2x48xf32> to vector<2x16xf32>
    %438 = vector.extract_strided_slice %420 {offsets = [0, 32], sizes = [2, 16], strides = [1, 1]} : vector<2x48xf32> to vector<2x16xf32>
    %439 = arith.mulf %428, %438 : vector<2x16xf32>
    %440 = arith.addf %437, %439 : vector<2x16xf32>
    %441 = math.tanh %440 : vector<2x16xf32>
    %cst_62 = arith.constant 1.000000e+00 : f32
    %442 = vector.broadcast %cst_62 : f32 to vector<2x16xf32>
    %443 = arith.subf %442, %436 : vector<2x16xf32>
    %444 = arith.mulf %443, %441 : vector<2x16xf32>
    %445 = arith.mulf %436, %382 : vector<2x16xf32>
    %446 = arith.addf %444, %445 : vector<2x16xf32>
    %447 = vector.extract_strided_slice %2 {offsets = [0, 3], sizes = [2, 1], strides = [1, 1]} : vector<2x8xf32> to vector<2x1xf32>
    %448 = vector.shape_cast %447 : vector<2x1xf32> to vector<2xf32>
    %449 = vector.shape_cast %448 : vector<2xf32> to vector<2x1xf32>
    %450 = vector.extract_strided_slice %2 {offsets = [0, 4], sizes = [2, 1], strides = [1, 1]} : vector<2x8xf32> to vector<2x1xf32>
    %451 = vector.shape_cast %450 : vector<2x1xf32> to vector<2xf32>
    %452 = vector.shape_cast %451 : vector<2xf32> to vector<2x1xf32>
    %453 = vector.broadcast %449 : vector<2x1xf32> to vector<2x16xf32>
    %454 = arith.mulf %453, %414 : vector<2x16xf32>
    %cst_63 = arith.constant 1.000000e+00 : f32
    %455 = vector.broadcast %cst_63 : f32 to vector<2x1xf32>
    %456 = arith.subf %455, %449 : vector<2x1xf32>
    %457 = vector.broadcast %456 : vector<2x1xf32> to vector<2x16xf32>
    %458 = arith.mulf %457, %381 : vector<2x16xf32>
    %459 = arith.addf %454, %458 : vector<2x16xf32>
    %460 = vector.broadcast %452 : vector<2x1xf32> to vector<2x16xf32>
    %461 = arith.mulf %460, %446 : vector<2x16xf32>
    %cst_64 = arith.constant 1.000000e+00 : f32
    %462 = vector.broadcast %cst_64 : f32 to vector<2x1xf32>
    %463 = arith.subf %462, %452 : vector<2x1xf32>
    %464 = vector.broadcast %463 : vector<2x1xf32> to vector<2x16xf32>
    %465 = arith.mulf %464, %382 : vector<2x16xf32>
    %466 = arith.addf %461, %465 : vector<2x16xf32>
    %467 = tpu.concatenate %459, %466 in 1 : vector<2x16xf32>, vector<2x16xf32> -> vector<2x32xf32>
    %cst_65 = arith.constant dense<0.000000e+00> : vector<2x96xf32>
    %468 = tpu.matmul %467, %5, %cst_65 {dimension_numbers = #tpu.dot_dimension_numbers<[1], [0], [0], [1], [0, 0, 1, 1], [], []>} : vector<2x32xf32>, vector<32x96xf32>, vector<2x96xf32> -> vector<2x96xf32>
    %469 = vector.extract_strided_slice %467 {offsets = [0, 0], sizes = [2, 16], strides = [1, 1]} : vector<2x32xf32> to vector<2x16xf32>
    %470 = vector.extract_strided_slice %467 {offsets = [0, 16], sizes = [2, 16], strides = [1, 1]} : vector<2x32xf32> to vector<2x16xf32>
    %471 = vector.extract_strided_slice %108 {offsets = [0, 4, 0], sizes = [2, 1, 48], strides = [1, 1, 1]} : vector<2x8x48xf32> to vector<2x1x48xf32>
    %472 = vector.shape_cast %471 : vector<2x1x48xf32> to vector<2x48xf32>
    %473 = vector.extract_strided_slice %468 {offsets = [0, 0], sizes = [2, 48], strides = [1, 1]} : vector<2x96xf32> to vector<2x48xf32>
    %474 = vector.shape_cast %20 : vector<48xf32> to vector<1x48xf32>
    %475 = vector.broadcast %474 : vector<1x48xf32> to vector<2x48xf32>
    %476 = arith.addf %473, %475 : vector<2x48xf32>
    %477 = vector.extract_strided_slice %472 {offsets = [0, 0], sizes = [2, 16], strides = [1, 1]} : vector<2x48xf32> to vector<2x16xf32>
    %478 = vector.extract_strided_slice %476 {offsets = [0, 0], sizes = [2, 16], strides = [1, 1]} : vector<2x48xf32> to vector<2x16xf32>
    %479 = arith.addf %477, %478 : vector<2x16xf32>
    %480 = arith.negf %479 : vector<2x16xf32>
    %481 = math.exp %480 : vector<2x16xf32>
    %cst_66 = arith.constant 1.000000e+00 : f32
    %482 = vector.broadcast %cst_66 : f32 to vector<2x16xf32>
    %483 = arith.addf %482, %481 : vector<2x16xf32>
    %484 = arith.divf %482, %483 : vector<2x16xf32>
    %485 = vector.extract_strided_slice %472 {offsets = [0, 16], sizes = [2, 16], strides = [1, 1]} : vector<2x48xf32> to vector<2x16xf32>
    %486 = vector.extract_strided_slice %476 {offsets = [0, 16], sizes = [2, 16], strides = [1, 1]} : vector<2x48xf32> to vector<2x16xf32>
    %487 = arith.addf %485, %486 : vector<2x16xf32>
    %488 = arith.negf %487 : vector<2x16xf32>
    %489 = math.exp %488 : vector<2x16xf32>
    %cst_67 = arith.constant 1.000000e+00 : f32
    %490 = vector.broadcast %cst_67 : f32 to vector<2x16xf32>
    %491 = arith.addf %490, %489 : vector<2x16xf32>
    %492 = arith.divf %490, %491 : vector<2x16xf32>
    %493 = vector.extract_strided_slice %472 {offsets = [0, 32], sizes = [2, 16], strides = [1, 1]} : vector<2x48xf32> to vector<2x16xf32>
    %494 = vector.extract_strided_slice %476 {offsets = [0, 32], sizes = [2, 16], strides = [1, 1]} : vector<2x48xf32> to vector<2x16xf32>
    %495 = arith.mulf %484, %494 : vector<2x16xf32>
    %496 = arith.addf %493, %495 : vector<2x16xf32>
    %497 = math.tanh %496 : vector<2x16xf32>
    %cst_68 = arith.constant 1.000000e+00 : f32
    %498 = vector.broadcast %cst_68 : f32 to vector<2x16xf32>
    %499 = arith.subf %498, %492 : vector<2x16xf32>
    %500 = arith.mulf %499, %497 : vector<2x16xf32>
    %501 = arith.mulf %492, %469 : vector<2x16xf32>
    %502 = arith.addf %500, %501 : vector<2x16xf32>
    %503 = vector.extract_strided_slice %112 {offsets = [0, 3, 0], sizes = [2, 1, 48], strides = [1, 1, 1]} : vector<2x8x48xf32> to vector<2x1x48xf32>
    %504 = vector.shape_cast %503 : vector<2x1x48xf32> to vector<2x48xf32>
    %505 = vector.extract_strided_slice %468 {offsets = [0, 48], sizes = [2, 48], strides = [1, 1]} : vector<2x96xf32> to vector<2x48xf32>
    %506 = vector.shape_cast %24 : vector<48xf32> to vector<1x48xf32>
    %507 = vector.broadcast %506 : vector<1x48xf32> to vector<2x48xf32>
    %508 = arith.addf %505, %507 : vector<2x48xf32>
    %509 = vector.extract_strided_slice %504 {offsets = [0, 0], sizes = [2, 16], strides = [1, 1]} : vector<2x48xf32> to vector<2x16xf32>
    %510 = vector.extract_strided_slice %508 {offsets = [0, 0], sizes = [2, 16], strides = [1, 1]} : vector<2x48xf32> to vector<2x16xf32>
    %511 = arith.addf %509, %510 : vector<2x16xf32>
    %512 = arith.negf %511 : vector<2x16xf32>
    %513 = math.exp %512 : vector<2x16xf32>
    %cst_69 = arith.constant 1.000000e+00 : f32
    %514 = vector.broadcast %cst_69 : f32 to vector<2x16xf32>
    %515 = arith.addf %514, %513 : vector<2x16xf32>
    %516 = arith.divf %514, %515 : vector<2x16xf32>
    %517 = vector.extract_strided_slice %504 {offsets = [0, 16], sizes = [2, 16], strides = [1, 1]} : vector<2x48xf32> to vector<2x16xf32>
    %518 = vector.extract_strided_slice %508 {offsets = [0, 16], sizes = [2, 16], strides = [1, 1]} : vector<2x48xf32> to vector<2x16xf32>
    %519 = arith.addf %517, %518 : vector<2x16xf32>
    %520 = arith.negf %519 : vector<2x16xf32>
    %521 = math.exp %520 : vector<2x16xf32>
    %cst_70 = arith.constant 1.000000e+00 : f32
    %522 = vector.broadcast %cst_70 : f32 to vector<2x16xf32>
    %523 = arith.addf %522, %521 : vector<2x16xf32>
    %524 = arith.divf %522, %523 : vector<2x16xf32>
    %525 = vector.extract_strided_slice %504 {offsets = [0, 32], sizes = [2, 16], strides = [1, 1]} : vector<2x48xf32> to vector<2x16xf32>
    %526 = vector.extract_strided_slice %508 {offsets = [0, 32], sizes = [2, 16], strides = [1, 1]} : vector<2x48xf32> to vector<2x16xf32>
    %527 = arith.mulf %516, %526 : vector<2x16xf32>
    %528 = arith.addf %525, %527 : vector<2x16xf32>
    %529 = math.tanh %528 : vector<2x16xf32>
    %cst_71 = arith.constant 1.000000e+00 : f32
    %530 = vector.broadcast %cst_71 : f32 to vector<2x16xf32>
    %531 = arith.subf %530, %524 : vector<2x16xf32>
    %532 = arith.mulf %531, %529 : vector<2x16xf32>
    %533 = arith.mulf %524, %470 : vector<2x16xf32>
    %534 = arith.addf %532, %533 : vector<2x16xf32>
    %535 = vector.extract_strided_slice %2 {offsets = [0, 4], sizes = [2, 1], strides = [1, 1]} : vector<2x8xf32> to vector<2x1xf32>
    %536 = vector.shape_cast %535 : vector<2x1xf32> to vector<2xf32>
    %537 = vector.shape_cast %536 : vector<2xf32> to vector<2x1xf32>
    %538 = vector.extract_strided_slice %2 {offsets = [0, 3], sizes = [2, 1], strides = [1, 1]} : vector<2x8xf32> to vector<2x1xf32>
    %539 = vector.shape_cast %538 : vector<2x1xf32> to vector<2xf32>
    %540 = vector.shape_cast %539 : vector<2xf32> to vector<2x1xf32>
    %541 = vector.broadcast %537 : vector<2x1xf32> to vector<2x16xf32>
    %542 = arith.mulf %541, %502 : vector<2x16xf32>
    %cst_72 = arith.constant 1.000000e+00 : f32
    %543 = vector.broadcast %cst_72 : f32 to vector<2x1xf32>
    %544 = arith.subf %543, %537 : vector<2x1xf32>
    %545 = vector.broadcast %544 : vector<2x1xf32> to vector<2x16xf32>
    %546 = arith.mulf %545, %469 : vector<2x16xf32>
    %547 = arith.addf %542, %546 : vector<2x16xf32>
    %548 = vector.broadcast %540 : vector<2x1xf32> to vector<2x16xf32>
    %549 = arith.mulf %548, %534 : vector<2x16xf32>
    %cst_73 = arith.constant 1.000000e+00 : f32
    %550 = vector.broadcast %cst_73 : f32 to vector<2x1xf32>
    %551 = arith.subf %550, %540 : vector<2x1xf32>
    %552 = vector.broadcast %551 : vector<2x1xf32> to vector<2x16xf32>
    %553 = arith.mulf %552, %470 : vector<2x16xf32>
    %554 = arith.addf %549, %553 : vector<2x16xf32>
    %555 = tpu.concatenate %547, %554 in 1 : vector<2x16xf32>, vector<2x16xf32> -> vector<2x32xf32>
    %cst_74 = arith.constant dense<0.000000e+00> : vector<2x96xf32>
    %556 = tpu.matmul %555, %5, %cst_74 {dimension_numbers = #tpu.dot_dimension_numbers<[1], [0], [0], [1], [0, 0, 1, 1], [], []>} : vector<2x32xf32>, vector<32x96xf32>, vector<2x96xf32> -> vector<2x96xf32>
    %557 = vector.extract_strided_slice %555 {offsets = [0, 0], sizes = [2, 16], strides = [1, 1]} : vector<2x32xf32> to vector<2x16xf32>
    %558 = vector.extract_strided_slice %555 {offsets = [0, 16], sizes = [2, 16], strides = [1, 1]} : vector<2x32xf32> to vector<2x16xf32>
    %559 = vector.extract_strided_slice %108 {offsets = [0, 5, 0], sizes = [2, 1, 48], strides = [1, 1, 1]} : vector<2x8x48xf32> to vector<2x1x48xf32>
    %560 = vector.shape_cast %559 : vector<2x1x48xf32> to vector<2x48xf32>
    %561 = vector.extract_strided_slice %556 {offsets = [0, 0], sizes = [2, 48], strides = [1, 1]} : vector<2x96xf32> to vector<2x48xf32>
    %562 = vector.shape_cast %20 : vector<48xf32> to vector<1x48xf32>
    %563 = vector.broadcast %562 : vector<1x48xf32> to vector<2x48xf32>
    %564 = arith.addf %561, %563 : vector<2x48xf32>
    %565 = vector.extract_strided_slice %560 {offsets = [0, 0], sizes = [2, 16], strides = [1, 1]} : vector<2x48xf32> to vector<2x16xf32>
    %566 = vector.extract_strided_slice %564 {offsets = [0, 0], sizes = [2, 16], strides = [1, 1]} : vector<2x48xf32> to vector<2x16xf32>
    %567 = arith.addf %565, %566 : vector<2x16xf32>
    %568 = arith.negf %567 : vector<2x16xf32>
    %569 = math.exp %568 : vector<2x16xf32>
    %cst_75 = arith.constant 1.000000e+00 : f32
    %570 = vector.broadcast %cst_75 : f32 to vector<2x16xf32>
    %571 = arith.addf %570, %569 : vector<2x16xf32>
    %572 = arith.divf %570, %571 : vector<2x16xf32>
    %573 = vector.extract_strided_slice %560 {offsets = [0, 16], sizes = [2, 16], strides = [1, 1]} : vector<2x48xf32> to vector<2x16xf32>
    %574 = vector.extract_strided_slice %564 {offsets = [0, 16], sizes = [2, 16], strides = [1, 1]} : vector<2x48xf32> to vector<2x16xf32>
    %575 = arith.addf %573, %574 : vector<2x16xf32>
    %576 = arith.negf %575 : vector<2x16xf32>
    %577 = math.exp %576 : vector<2x16xf32>
    %cst_76 = arith.constant 1.000000e+00 : f32
    %578 = vector.broadcast %cst_76 : f32 to vector<2x16xf32>
    %579 = arith.addf %578, %577 : vector<2x16xf32>
    %580 = arith.divf %578, %579 : vector<2x16xf32>
    %581 = vector.extract_strided_slice %560 {offsets = [0, 32], sizes = [2, 16], strides = [1, 1]} : vector<2x48xf32> to vector<2x16xf32>
    %582 = vector.extract_strided_slice %564 {offsets = [0, 32], sizes = [2, 16], strides = [1, 1]} : vector<2x48xf32> to vector<2x16xf32>
    %583 = arith.mulf %572, %582 : vector<2x16xf32>
    %584 = arith.addf %581, %583 : vector<2x16xf32>
    %585 = math.tanh %584 : vector<2x16xf32>
    %cst_77 = arith.constant 1.000000e+00 : f32
    %586 = vector.broadcast %cst_77 : f32 to vector<2x16xf32>
    %587 = arith.subf %586, %580 : vector<2x16xf32>
    %588 = arith.mulf %587, %585 : vector<2x16xf32>
    %589 = arith.mulf %580, %557 : vector<2x16xf32>
    %590 = arith.addf %588, %589 : vector<2x16xf32>
    %591 = vector.extract_strided_slice %112 {offsets = [0, 2, 0], sizes = [2, 1, 48], strides = [1, 1, 1]} : vector<2x8x48xf32> to vector<2x1x48xf32>
    %592 = vector.shape_cast %591 : vector<2x1x48xf32> to vector<2x48xf32>
    %593 = vector.extract_strided_slice %556 {offsets = [0, 48], sizes = [2, 48], strides = [1, 1]} : vector<2x96xf32> to vector<2x48xf32>
    %594 = vector.shape_cast %24 : vector<48xf32> to vector<1x48xf32>
    %595 = vector.broadcast %594 : vector<1x48xf32> to vector<2x48xf32>
    %596 = arith.addf %593, %595 : vector<2x48xf32>
    %597 = vector.extract_strided_slice %592 {offsets = [0, 0], sizes = [2, 16], strides = [1, 1]} : vector<2x48xf32> to vector<2x16xf32>
    %598 = vector.extract_strided_slice %596 {offsets = [0, 0], sizes = [2, 16], strides = [1, 1]} : vector<2x48xf32> to vector<2x16xf32>
    %599 = arith.addf %597, %598 : vector<2x16xf32>
    %600 = arith.negf %599 : vector<2x16xf32>
    %601 = math.exp %600 : vector<2x16xf32>
    %cst_78 = arith.constant 1.000000e+00 : f32
    %602 = vector.broadcast %cst_78 : f32 to vector<2x16xf32>
    %603 = arith.addf %602, %601 : vector<2x16xf32>
    %604 = arith.divf %602, %603 : vector<2x16xf32>
    %605 = vector.extract_strided_slice %592 {offsets = [0, 16], sizes = [2, 16], strides = [1, 1]} : vector<2x48xf32> to vector<2x16xf32>
    %606 = vector.extract_strided_slice %596 {offsets = [0, 16], sizes = [2, 16], strides = [1, 1]} : vector<2x48xf32> to vector<2x16xf32>
    %607 = arith.addf %605, %606 : vector<2x16xf32>
    %608 = arith.negf %607 : vector<2x16xf32>
    %609 = math.exp %608 : vector<2x16xf32>
    %cst_79 = arith.constant 1.000000e+00 : f32
    %610 = vector.broadcast %cst_79 : f32 to vector<2x16xf32>
    %611 = arith.addf %610, %609 : vector<2x16xf32>
    %612 = arith.divf %610, %611 : vector<2x16xf32>
    %613 = vector.extract_strided_slice %592 {offsets = [0, 32], sizes = [2, 16], strides = [1, 1]} : vector<2x48xf32> to vector<2x16xf32>
    %614 = vector.extract_strided_slice %596 {offsets = [0, 32], sizes = [2, 16], strides = [1, 1]} : vector<2x48xf32> to vector<2x16xf32>
    %615 = arith.mulf %604, %614 : vector<2x16xf32>
    %616 = arith.addf %613, %615 : vector<2x16xf32>
    %617 = math.tanh %616 : vector<2x16xf32>
    %cst_80 = arith.constant 1.000000e+00 : f32
    %618 = vector.broadcast %cst_80 : f32 to vector<2x16xf32>
    %619 = arith.subf %618, %612 : vector<2x16xf32>
    %620 = arith.mulf %619, %617 : vector<2x16xf32>
    %621 = arith.mulf %612, %558 : vector<2x16xf32>
    %622 = arith.addf %620, %621 : vector<2x16xf32>
    %623 = vector.extract_strided_slice %2 {offsets = [0, 5], sizes = [2, 1], strides = [1, 1]} : vector<2x8xf32> to vector<2x1xf32>
    %624 = vector.shape_cast %623 : vector<2x1xf32> to vector<2xf32>
    %625 = vector.shape_cast %624 : vector<2xf32> to vector<2x1xf32>
    %626 = vector.extract_strided_slice %2 {offsets = [0, 2], sizes = [2, 1], strides = [1, 1]} : vector<2x8xf32> to vector<2x1xf32>
    %627 = vector.shape_cast %626 : vector<2x1xf32> to vector<2xf32>
    %628 = vector.shape_cast %627 : vector<2xf32> to vector<2x1xf32>
    %629 = vector.broadcast %625 : vector<2x1xf32> to vector<2x16xf32>
    %630 = arith.mulf %629, %590 : vector<2x16xf32>
    %cst_81 = arith.constant 1.000000e+00 : f32
    %631 = vector.broadcast %cst_81 : f32 to vector<2x1xf32>
    %632 = arith.subf %631, %625 : vector<2x1xf32>
    %633 = vector.broadcast %632 : vector<2x1xf32> to vector<2x16xf32>
    %634 = arith.mulf %633, %557 : vector<2x16xf32>
    %635 = arith.addf %630, %634 : vector<2x16xf32>
    %636 = vector.broadcast %628 : vector<2x1xf32> to vector<2x16xf32>
    %637 = arith.mulf %636, %622 : vector<2x16xf32>
    %cst_82 = arith.constant 1.000000e+00 : f32
    %638 = vector.broadcast %cst_82 : f32 to vector<2x1xf32>
    %639 = arith.subf %638, %628 : vector<2x1xf32>
    %640 = vector.broadcast %639 : vector<2x1xf32> to vector<2x16xf32>
    %641 = arith.mulf %640, %558 : vector<2x16xf32>
    %642 = arith.addf %637, %641 : vector<2x16xf32>
    %643 = tpu.concatenate %635, %642 in 1 : vector<2x16xf32>, vector<2x16xf32> -> vector<2x32xf32>
    %cst_83 = arith.constant dense<0.000000e+00> : vector<2x96xf32>
    %644 = tpu.matmul %643, %5, %cst_83 {dimension_numbers = #tpu.dot_dimension_numbers<[1], [0], [0], [1], [0, 0, 1, 1], [], []>} : vector<2x32xf32>, vector<32x96xf32>, vector<2x96xf32> -> vector<2x96xf32>
    %645 = vector.extract_strided_slice %643 {offsets = [0, 0], sizes = [2, 16], strides = [1, 1]} : vector<2x32xf32> to vector<2x16xf32>
    %646 = vector.extract_strided_slice %643 {offsets = [0, 16], sizes = [2, 16], strides = [1, 1]} : vector<2x32xf32> to vector<2x16xf32>
    %647 = vector.extract_strided_slice %108 {offsets = [0, 6, 0], sizes = [2, 1, 48], strides = [1, 1, 1]} : vector<2x8x48xf32> to vector<2x1x48xf32>
    %648 = vector.shape_cast %647 : vector<2x1x48xf32> to vector<2x48xf32>
    %649 = vector.extract_strided_slice %644 {offsets = [0, 0], sizes = [2, 48], strides = [1, 1]} : vector<2x96xf32> to vector<2x48xf32>
    %650 = vector.shape_cast %20 : vector<48xf32> to vector<1x48xf32>
    %651 = vector.broadcast %650 : vector<1x48xf32> to vector<2x48xf32>
    %652 = arith.addf %649, %651 : vector<2x48xf32>
    %653 = vector.extract_strided_slice %648 {offsets = [0, 0], sizes = [2, 16], strides = [1, 1]} : vector<2x48xf32> to vector<2x16xf32>
    %654 = vector.extract_strided_slice %652 {offsets = [0, 0], sizes = [2, 16], strides = [1, 1]} : vector<2x48xf32> to vector<2x16xf32>
    %655 = arith.addf %653, %654 : vector<2x16xf32>
    %656 = arith.negf %655 : vector<2x16xf32>
    %657 = math.exp %656 : vector<2x16xf32>
    %cst_84 = arith.constant 1.000000e+00 : f32
    %658 = vector.broadcast %cst_84 : f32 to vector<2x16xf32>
    %659 = arith.addf %658, %657 : vector<2x16xf32>
    %660 = arith.divf %658, %659 : vector<2x16xf32>
    %661 = vector.extract_strided_slice %648 {offsets = [0, 16], sizes = [2, 16], strides = [1, 1]} : vector<2x48xf32> to vector<2x16xf32>
    %662 = vector.extract_strided_slice %652 {offsets = [0, 16], sizes = [2, 16], strides = [1, 1]} : vector<2x48xf32> to vector<2x16xf32>
    %663 = arith.addf %661, %662 : vector<2x16xf32>
    %664 = arith.negf %663 : vector<2x16xf32>
    %665 = math.exp %664 : vector<2x16xf32>
    %cst_85 = arith.constant 1.000000e+00 : f32
    %666 = vector.broadcast %cst_85 : f32 to vector<2x16xf32>
    %667 = arith.addf %666, %665 : vector<2x16xf32>
    %668 = arith.divf %666, %667 : vector<2x16xf32>
    %669 = vector.extract_strided_slice %648 {offsets = [0, 32], sizes = [2, 16], strides = [1, 1]} : vector<2x48xf32> to vector<2x16xf32>
    %670 = vector.extract_strided_slice %652 {offsets = [0, 32], sizes = [2, 16], strides = [1, 1]} : vector<2x48xf32> to vector<2x16xf32>
    %671 = arith.mulf %660, %670 : vector<2x16xf32>
    %672 = arith.addf %669, %671 : vector<2x16xf32>
    %673 = math.tanh %672 : vector<2x16xf32>
    %cst_86 = arith.constant 1.000000e+00 : f32
    %674 = vector.broadcast %cst_86 : f32 to vector<2x16xf32>
    %675 = arith.subf %674, %668 : vector<2x16xf32>
    %676 = arith.mulf %675, %673 : vector<2x16xf32>
    %677 = arith.mulf %668, %645 : vector<2x16xf32>
    %678 = arith.addf %676, %677 : vector<2x16xf32>
    %679 = vector.extract_strided_slice %112 {offsets = [0, 1, 0], sizes = [2, 1, 48], strides = [1, 1, 1]} : vector<2x8x48xf32> to vector<2x1x48xf32>
    %680 = vector.shape_cast %679 : vector<2x1x48xf32> to vector<2x48xf32>
    %681 = vector.extract_strided_slice %644 {offsets = [0, 48], sizes = [2, 48], strides = [1, 1]} : vector<2x96xf32> to vector<2x48xf32>
    %682 = vector.shape_cast %24 : vector<48xf32> to vector<1x48xf32>
    %683 = vector.broadcast %682 : vector<1x48xf32> to vector<2x48xf32>
    %684 = arith.addf %681, %683 : vector<2x48xf32>
    %685 = vector.extract_strided_slice %680 {offsets = [0, 0], sizes = [2, 16], strides = [1, 1]} : vector<2x48xf32> to vector<2x16xf32>
    %686 = vector.extract_strided_slice %684 {offsets = [0, 0], sizes = [2, 16], strides = [1, 1]} : vector<2x48xf32> to vector<2x16xf32>
    %687 = arith.addf %685, %686 : vector<2x16xf32>
    %688 = arith.negf %687 : vector<2x16xf32>
    %689 = math.exp %688 : vector<2x16xf32>
    %cst_87 = arith.constant 1.000000e+00 : f32
    %690 = vector.broadcast %cst_87 : f32 to vector<2x16xf32>
    %691 = arith.addf %690, %689 : vector<2x16xf32>
    %692 = arith.divf %690, %691 : vector<2x16xf32>
    %693 = vector.extract_strided_slice %680 {offsets = [0, 16], sizes = [2, 16], strides = [1, 1]} : vector<2x48xf32> to vector<2x16xf32>
    %694 = vector.extract_strided_slice %684 {offsets = [0, 16], sizes = [2, 16], strides = [1, 1]} : vector<2x48xf32> to vector<2x16xf32>
    %695 = arith.addf %693, %694 : vector<2x16xf32>
    %696 = arith.negf %695 : vector<2x16xf32>
    %697 = math.exp %696 : vector<2x16xf32>
    %cst_88 = arith.constant 1.000000e+00 : f32
    %698 = vector.broadcast %cst_88 : f32 to vector<2x16xf32>
    %699 = arith.addf %698, %697 : vector<2x16xf32>
    %700 = arith.divf %698, %699 : vector<2x16xf32>
    %701 = vector.extract_strided_slice %680 {offsets = [0, 32], sizes = [2, 16], strides = [1, 1]} : vector<2x48xf32> to vector<2x16xf32>
    %702 = vector.extract_strided_slice %684 {offsets = [0, 32], sizes = [2, 16], strides = [1, 1]} : vector<2x48xf32> to vector<2x16xf32>
    %703 = arith.mulf %692, %702 : vector<2x16xf32>
    %704 = arith.addf %701, %703 : vector<2x16xf32>
    %705 = math.tanh %704 : vector<2x16xf32>
    %cst_89 = arith.constant 1.000000e+00 : f32
    %706 = vector.broadcast %cst_89 : f32 to vector<2x16xf32>
    %707 = arith.subf %706, %700 : vector<2x16xf32>
    %708 = arith.mulf %707, %705 : vector<2x16xf32>
    %709 = arith.mulf %700, %646 : vector<2x16xf32>
    %710 = arith.addf %708, %709 : vector<2x16xf32>
    %711 = vector.extract_strided_slice %2 {offsets = [0, 6], sizes = [2, 1], strides = [1, 1]} : vector<2x8xf32> to vector<2x1xf32>
    %712 = vector.shape_cast %711 : vector<2x1xf32> to vector<2xf32>
    %713 = vector.shape_cast %712 : vector<2xf32> to vector<2x1xf32>
    %714 = vector.extract_strided_slice %2 {offsets = [0, 1], sizes = [2, 1], strides = [1, 1]} : vector<2x8xf32> to vector<2x1xf32>
    %715 = vector.shape_cast %714 : vector<2x1xf32> to vector<2xf32>
    %716 = vector.shape_cast %715 : vector<2xf32> to vector<2x1xf32>
    %717 = vector.broadcast %713 : vector<2x1xf32> to vector<2x16xf32>
    %718 = arith.mulf %717, %678 : vector<2x16xf32>
    %cst_90 = arith.constant 1.000000e+00 : f32
    %719 = vector.broadcast %cst_90 : f32 to vector<2x1xf32>
    %720 = arith.subf %719, %713 : vector<2x1xf32>
    %721 = vector.broadcast %720 : vector<2x1xf32> to vector<2x16xf32>
    %722 = arith.mulf %721, %645 : vector<2x16xf32>
    %723 = arith.addf %718, %722 : vector<2x16xf32>
    %724 = vector.broadcast %716 : vector<2x1xf32> to vector<2x16xf32>
    %725 = arith.mulf %724, %710 : vector<2x16xf32>
    %cst_91 = arith.constant 1.000000e+00 : f32
    %726 = vector.broadcast %cst_91 : f32 to vector<2x1xf32>
    %727 = arith.subf %726, %716 : vector<2x1xf32>
    %728 = vector.broadcast %727 : vector<2x1xf32> to vector<2x16xf32>
    %729 = arith.mulf %728, %646 : vector<2x16xf32>
    %730 = arith.addf %725, %729 : vector<2x16xf32>
    %731 = tpu.concatenate %723, %730 in 1 : vector<2x16xf32>, vector<2x16xf32> -> vector<2x32xf32>
    %cst_92 = arith.constant dense<0.000000e+00> : vector<2x96xf32>
    %732 = tpu.matmul %731, %5, %cst_92 {dimension_numbers = #tpu.dot_dimension_numbers<[1], [0], [0], [1], [0, 0, 1, 1], [], []>} : vector<2x32xf32>, vector<32x96xf32>, vector<2x96xf32> -> vector<2x96xf32>
    %733 = vector.extract_strided_slice %731 {offsets = [0, 0], sizes = [2, 16], strides = [1, 1]} : vector<2x32xf32> to vector<2x16xf32>
    %734 = vector.extract_strided_slice %731 {offsets = [0, 16], sizes = [2, 16], strides = [1, 1]} : vector<2x32xf32> to vector<2x16xf32>
    %735 = vector.extract_strided_slice %108 {offsets = [0, 7, 0], sizes = [2, 1, 48], strides = [1, 1, 1]} : vector<2x8x48xf32> to vector<2x1x48xf32>
    %736 = vector.shape_cast %735 : vector<2x1x48xf32> to vector<2x48xf32>
    %737 = vector.extract_strided_slice %732 {offsets = [0, 0], sizes = [2, 48], strides = [1, 1]} : vector<2x96xf32> to vector<2x48xf32>
    %738 = vector.shape_cast %20 : vector<48xf32> to vector<1x48xf32>
    %739 = vector.broadcast %738 : vector<1x48xf32> to vector<2x48xf32>
    %740 = arith.addf %737, %739 : vector<2x48xf32>
    %741 = vector.extract_strided_slice %736 {offsets = [0, 0], sizes = [2, 16], strides = [1, 1]} : vector<2x48xf32> to vector<2x16xf32>
    %742 = vector.extract_strided_slice %740 {offsets = [0, 0], sizes = [2, 16], strides = [1, 1]} : vector<2x48xf32> to vector<2x16xf32>
    %743 = arith.addf %741, %742 : vector<2x16xf32>
    %744 = arith.negf %743 : vector<2x16xf32>
    %745 = math.exp %744 : vector<2x16xf32>
    %cst_93 = arith.constant 1.000000e+00 : f32
    %746 = vector.broadcast %cst_93 : f32 to vector<2x16xf32>
    %747 = arith.addf %746, %745 : vector<2x16xf32>
    %748 = arith.divf %746, %747 : vector<2x16xf32>
    %749 = vector.extract_strided_slice %736 {offsets = [0, 16], sizes = [2, 16], strides = [1, 1]} : vector<2x48xf32> to vector<2x16xf32>
    %750 = vector.extract_strided_slice %740 {offsets = [0, 16], sizes = [2, 16], strides = [1, 1]} : vector<2x48xf32> to vector<2x16xf32>
    %751 = arith.addf %749, %750 : vector<2x16xf32>
    %752 = arith.negf %751 : vector<2x16xf32>
    %753 = math.exp %752 : vector<2x16xf32>
    %cst_94 = arith.constant 1.000000e+00 : f32
    %754 = vector.broadcast %cst_94 : f32 to vector<2x16xf32>
    %755 = arith.addf %754, %753 : vector<2x16xf32>
    %756 = arith.divf %754, %755 : vector<2x16xf32>
    %757 = vector.extract_strided_slice %736 {offsets = [0, 32], sizes = [2, 16], strides = [1, 1]} : vector<2x48xf32> to vector<2x16xf32>
    %758 = vector.extract_strided_slice %740 {offsets = [0, 32], sizes = [2, 16], strides = [1, 1]} : vector<2x48xf32> to vector<2x16xf32>
    %759 = arith.mulf %748, %758 : vector<2x16xf32>
    %760 = arith.addf %757, %759 : vector<2x16xf32>
    %761 = math.tanh %760 : vector<2x16xf32>
    %cst_95 = arith.constant 1.000000e+00 : f32
    %762 = vector.broadcast %cst_95 : f32 to vector<2x16xf32>
    %763 = arith.subf %762, %756 : vector<2x16xf32>
    %764 = arith.mulf %763, %761 : vector<2x16xf32>
    %765 = arith.mulf %756, %733 : vector<2x16xf32>
    %766 = arith.addf %764, %765 : vector<2x16xf32>
    %767 = vector.extract_strided_slice %112 {offsets = [0, 0, 0], sizes = [2, 1, 48], strides = [1, 1, 1]} : vector<2x8x48xf32> to vector<2x1x48xf32>
    %768 = vector.shape_cast %767 : vector<2x1x48xf32> to vector<2x48xf32>
    %769 = vector.extract_strided_slice %732 {offsets = [0, 48], sizes = [2, 48], strides = [1, 1]} : vector<2x96xf32> to vector<2x48xf32>
    %770 = vector.shape_cast %24 : vector<48xf32> to vector<1x48xf32>
    %771 = vector.broadcast %770 : vector<1x48xf32> to vector<2x48xf32>
    %772 = arith.addf %769, %771 : vector<2x48xf32>
    %773 = vector.extract_strided_slice %768 {offsets = [0, 0], sizes = [2, 16], strides = [1, 1]} : vector<2x48xf32> to vector<2x16xf32>
    %774 = vector.extract_strided_slice %772 {offsets = [0, 0], sizes = [2, 16], strides = [1, 1]} : vector<2x48xf32> to vector<2x16xf32>
    %775 = arith.addf %773, %774 : vector<2x16xf32>
    %776 = arith.negf %775 : vector<2x16xf32>
    %777 = math.exp %776 : vector<2x16xf32>
    %cst_96 = arith.constant 1.000000e+00 : f32
    %778 = vector.broadcast %cst_96 : f32 to vector<2x16xf32>
    %779 = arith.addf %778, %777 : vector<2x16xf32>
    %780 = arith.divf %778, %779 : vector<2x16xf32>
    %781 = vector.extract_strided_slice %768 {offsets = [0, 16], sizes = [2, 16], strides = [1, 1]} : vector<2x48xf32> to vector<2x16xf32>
    %782 = vector.extract_strided_slice %772 {offsets = [0, 16], sizes = [2, 16], strides = [1, 1]} : vector<2x48xf32> to vector<2x16xf32>
    %783 = arith.addf %781, %782 : vector<2x16xf32>
    %784 = arith.negf %783 : vector<2x16xf32>
    %785 = math.exp %784 : vector<2x16xf32>
    %cst_97 = arith.constant 1.000000e+00 : f32
    %786 = vector.broadcast %cst_97 : f32 to vector<2x16xf32>
    %787 = arith.addf %786, %785 : vector<2x16xf32>
    %788 = arith.divf %786, %787 : vector<2x16xf32>
    %789 = vector.extract_strided_slice %768 {offsets = [0, 32], sizes = [2, 16], strides = [1, 1]} : vector<2x48xf32> to vector<2x16xf32>
    %790 = vector.extract_strided_slice %772 {offsets = [0, 32], sizes = [2, 16], strides = [1, 1]} : vector<2x48xf32> to vector<2x16xf32>
    %791 = arith.mulf %780, %790 : vector<2x16xf32>
    %792 = arith.addf %789, %791 : vector<2x16xf32>
    %793 = math.tanh %792 : vector<2x16xf32>
    %cst_98 = arith.constant 1.000000e+00 : f32
    %794 = vector.broadcast %cst_98 : f32 to vector<2x16xf32>
    %795 = arith.subf %794, %788 : vector<2x16xf32>
    %796 = arith.mulf %795, %793 : vector<2x16xf32>
    %797 = arith.mulf %788, %734 : vector<2x16xf32>
    %798 = arith.addf %796, %797 : vector<2x16xf32>
    %799 = vector.extract_strided_slice %2 {offsets = [0, 7], sizes = [2, 1], strides = [1, 1]} : vector<2x8xf32> to vector<2x1xf32>
    %800 = vector.shape_cast %799 : vector<2x1xf32> to vector<2xf32>
    %801 = vector.shape_cast %800 : vector<2xf32> to vector<2x1xf32>
    %802 = vector.extract_strided_slice %2 {offsets = [0, 0], sizes = [2, 1], strides = [1, 1]} : vector<2x8xf32> to vector<2x1xf32>
    %803 = vector.shape_cast %802 : vector<2x1xf32> to vector<2xf32>
    %804 = vector.shape_cast %803 : vector<2xf32> to vector<2x1xf32>
    %805 = vector.broadcast %801 : vector<2x1xf32> to vector<2x16xf32>
    %806 = arith.mulf %805, %766 : vector<2x16xf32>
    %cst_99 = arith.constant 1.000000e+00 : f32
    %807 = vector.broadcast %cst_99 : f32 to vector<2x1xf32>
    %808 = arith.subf %807, %801 : vector<2x1xf32>
    %809 = vector.broadcast %808 : vector<2x1xf32> to vector<2x16xf32>
    %810 = arith.mulf %809, %733 : vector<2x16xf32>
    %811 = arith.addf %806, %810 : vector<2x16xf32>
    %812 = vector.broadcast %804 : vector<2x1xf32> to vector<2x16xf32>
    %813 = arith.mulf %812, %798 : vector<2x16xf32>
    %cst_100 = arith.constant 1.000000e+00 : f32
    %814 = vector.broadcast %cst_100 : f32 to vector<2x1xf32>
    %815 = arith.subf %814, %804 : vector<2x1xf32>
    %816 = vector.broadcast %815 : vector<2x1xf32> to vector<2x16xf32>
    %817 = arith.mulf %816, %734 : vector<2x16xf32>
    %818 = arith.addf %813, %817 : vector<2x16xf32>
    %819 = tpu.concatenate %811, %818 in 1 : vector<2x16xf32>, vector<2x16xf32> -> vector<2x32xf32>
    %820 = vector.shape_cast %32 : vector<16xf32> to vector<1x1x16xf32>
    %821 = vector.broadcast %820 : vector<1x1x16xf32> to vector<2x8x16xf32>
    %822 = arith.mulf %114, %821 : vector<2x8x16xf32>
    %cst_101 = arith.constant dense<0.000000e+00> : vector<2x8xf32>
    %823 = vector.multi_reduction <add>, %822, %cst_101 [2] : vector<2x8x16xf32> to vector<2x8xf32>
    %cst_102 = arith.constant 5.000000e-01 : f32
    %824 = vector.broadcast %cst_102 : f32 to vector<2x8xf32>
    %825 = arith.cmpf olt, %2, %824 : vector<2x8xf32>
    %cst_103 = arith.constant -1.000000e+30 : f32
    %826 = vector.broadcast %cst_103 : f32 to vector<2x8xf32>
    %827 = arith.select %825, %826, %823 : vector<2x8xi1>, vector<2x8xf32>
    %cst_104 = arith.constant dense<0xFF800000> : vector<2xf32>
    %828 = vector.multi_reduction <maximumf>, %827, %cst_104 [1] : vector<2x8xf32> to vector<2xf32>
    %829 = vector.shape_cast %828 : vector<2xf32> to vector<2x1xf32>
    %830 = vector.broadcast %829 : vector<2x1xf32> to vector<2x8xf32>
    %831 = arith.subf %827, %830 : vector<2x8xf32>
    %832 = math.exp %831 : vector<2x8xf32>
    %cst_105 = arith.constant dense<0.000000e+00> : vector<2xf32>
    %833 = vector.multi_reduction <add>, %832, %cst_105 [1] : vector<2x8xf32> to vector<2xf32>
    %834 = vector.shape_cast %833 : vector<2xf32> to vector<2x1xf32>
    %835 = tpu.reciprocal %834 {approx = true} : vector<2x1xf32> -> vector<2x1xf32>
    %836 = vector.broadcast %835 : vector<2x1xf32> to vector<2x8xf32>
    %837 = arith.mulf %832, %836 : vector<2x8xf32>
    %838 = vector.shape_cast %837 : vector<2x8xf32> to vector<2x8x1xf32>
    %839 = vector.broadcast %838 : vector<2x8x1xf32> to vector<2x8x32xf32>
    %840 = arith.mulf %839, %102 : vector<2x8x32xf32>
    %cst_106 = arith.constant dense<0.000000e+00> : vector<2x32xf32>
    %841 = vector.multi_reduction <add>, %840, %cst_106 [1] : vector<2x8x32xf32> to vector<2x32xf32>
    %842 = vector.extract_strided_slice %6 {offsets = [0, 32], sizes = [32, 32], strides = [1, 1]} : vector<32x64xf32> to vector<32x32xf32>
    %cst_107 = arith.constant dense<0.000000e+00> : vector<2x32xf32>
    %843 = tpu.matmul %841, %842, %cst_107 {dimension_numbers = #tpu.dot_dimension_numbers<[1], [0], [0], [1], [0, 0, 1, 1], [], []>} : vector<2x32xf32>, vector<32x32xf32>, vector<2x32xf32> -> vector<2x32xf32>
    %844 = vector.shape_cast %26 : vector<32xf32> to vector<1x32xf32>
    %845 = vector.broadcast %844 : vector<1x32xf32> to vector<2x32xf32>
    %846 = arith.addf %843, %845 : vector<2x32xf32>
    %847 = arith.negf %846 : vector<2x32xf32>
    %848 = math.exp %847 : vector<2x32xf32>
    %cst_108 = arith.constant 1.000000e+00 : f32
    %849 = vector.broadcast %cst_108 : f32 to vector<2x32xf32>
    %850 = arith.addf %849, %848 : vector<2x32xf32>
    %851 = arith.divf %849, %850 : vector<2x32xf32>
    %852 = arith.addf %819, %851 : vector<2x32xf32>
    %cst_109 = arith.constant dense<0.000000e+00> : vector<2xf32>
    %853 = vector.multi_reduction <add>, %852, %cst_109 [1] : vector<2x32xf32> to vector<2xf32>
    %854 = vector.shape_cast %853 : vector<2xf32> to vector<2x1xf32>
    %cst_110 = arith.constant 3.200000e+01 : f32
    %855 = vector.broadcast %cst_110 : f32 to vector<2x1xf32>
    %856 = arith.divf %854, %855 : vector<2x1xf32>
    %857 = vector.broadcast %856 : vector<2x1xf32> to vector<2x32xf32>
    %858 = arith.subf %852, %857 : vector<2x32xf32>
    %859 = arith.mulf %858, %858 : vector<2x32xf32>
    %cst_111 = arith.constant dense<0.000000e+00> : vector<2xf32>
    %860 = vector.multi_reduction <add>, %859, %cst_111 [1] : vector<2x32xf32> to vector<2xf32>
    %861 = vector.shape_cast %860 : vector<2xf32> to vector<2x1xf32>
    %cst_112 = arith.constant 3.200000e+01 : f32
    %862 = vector.broadcast %cst_112 : f32 to vector<2x1xf32>
    %863 = arith.divf %861, %862 : vector<2x1xf32>
    %864 = vector.broadcast %856 : vector<2x1xf32> to vector<2x32xf32>
    %865 = arith.subf %852, %864 : vector<2x32xf32>
    %cst_113 = arith.constant 9.99999974E-6 : f32
    %866 = vector.broadcast %cst_113 : f32 to vector<2x1xf32>
    %867 = arith.addf %863, %866 : vector<2x1xf32>
    %868 = math.rsqrt %867 : vector<2x1xf32>
    %869 = vector.broadcast %868 : vector<2x1xf32> to vector<2x32xf32>
    %870 = arith.mulf %865, %869 : vector<2x32xf32>
    %871 = vector.shape_cast %28 : vector<32xf32> to vector<1x32xf32>
    %872 = vector.broadcast %871 : vector<1x32xf32> to vector<2x32xf32>
    %873 = arith.mulf %870, %872 : vector<2x32xf32>
    %874 = vector.shape_cast %30 : vector<32xf32> to vector<1x32xf32>
    %875 = vector.broadcast %874 : vector<1x32xf32> to vector<2x32xf32>
    %876 = arith.addf %873, %875 : vector<2x32xf32>
    %877 = arith.mulf %876, %876 : vector<2x32xf32>
    %cst_114 = arith.constant dense<0.000000e+00> : vector<2xf32>
    %878 = vector.multi_reduction <add>, %877, %cst_114 [1] : vector<2x32xf32> to vector<2xf32>
    %879 = vector.shape_cast %878 : vector<2xf32> to vector<2x1xf32>
    %cst_115 = arith.constant 9.99999996E-13 : f32
    %880 = vector.broadcast %cst_115 : f32 to vector<2x1xf32>
    %881 = arith.addf %879, %880 : vector<2x1xf32>
    %882 = math.rsqrt %881 : vector<2x1xf32>
    %883 = vector.broadcast %882 : vector<2x1xf32> to vector<2x32xf32>
    %884 = arith.mulf %876, %883 : vector<2x32xf32>
    %cst_116 = arith.constant 0.000000e+00 : f32
    %885 = vector.broadcast %cst_116 : f32 to vector<2x56xf32>
    %886 = tpu.concatenate %884, %851, %837, %885 in 1 : vector<2x32xf32>, vector<2x32xf32>, vector<2x8xf32>, vector<2x56xf32> -> vector<2x128xf32>
    %c0_117 = arith.constant 0 : index
    %c0_118 = arith.constant 0 : index
    %887 = vector.load %arg8[%c0_117, %c0_118] : memref<2x128xf32, #tpu.memory_space<vmem>>, vector<2x128xf32>
    tpu.vector_store %arg8[%c0_117, %c0_118], %886 {strides = array<i32>} : memref<2x128xf32, #tpu.memory_space<vmem>>, vector<2x128xf32>,
    return
  }
  func.func @transform_0(%arg0: i32) -> (i32, i32, i32) {
    %c0_i32 = arith.constant 0 : i32
    %c0_i32_0 = arith.constant 0 : i32
    %c0_i32_1 = arith.constant 0 : i32
    %c0_i32_2 = arith.constant 0 : i32
    return %c0_i32, %c0_i32_0, %c0_i32_1 : i32, i32, i32
  }
  func.func @transform_1(%arg0: i32) -> (i32, i32) {
    %c0_i32 = arith.constant 0 : i32
    %c0_i32_0 = arith.constant 0 : i32
    %c0_i32_1 = arith.constant 0 : i32
    return %c0_i32, %c0_i32_0 : i32, i32
  }
  func.func @transform_2(%arg0: i32) -> (i32, i32) {
    %c0_i32 = arith.constant 0 : i32
    %c0_i32_0 = arith.constant 0 : i32
    %c0_i32_1 = arith.constant 0 : i32
    return %c0_i32, %c0_i32_0 : i32, i32
  }
  func.func @transform_3(%arg0: i32) -> (i32, i32) {
    %c0_i32 = arith.constant 0 : i32
    %c0_i32_0 = arith.constant 0 : i32
    %c0_i32_1 = arith.constant 0 : i32
    return %c0_i32, %c0_i32_0 : i32, i32
  }
  func.func @transform_4(%arg0: i32) -> (i32, i32) {
    %c0_i32 = arith.constant 0 : i32
    %c0_i32_0 = arith.constant 0 : i32
    %c0_i32_1 = arith.constant 0 : i32
    return %c0_i32, %c0_i32_0 : i32, i32
  }
  func.func @transform_5(%arg0: i32) -> (i32, i32) {
    %c0_i32 = arith.constant 0 : i32
    %c0_i32_0 = arith.constant 0 : i32
    %c0_i32_1 = arith.constant 0 : i32
    return %c0_i32, %c0_i32_0 : i32, i32
  }
  func.func @transform_6(%arg0: i32) -> (i32, i32) {
    %c0_i32 = arith.constant 0 : i32
    %c0_i32_0 = arith.constant 0 : i32
    %c0_i32_1 = arith.constant 0 : i32
    return %c0_i32, %c0_i32_0 : i32, i32
  }
  func.func @transform_7(%arg0: i32) -> (i32, i32) {
    %c0_i32 = arith.constant 0 : i32
    %c0_i32_0 = arith.constant 0 : i32
    %c0_i32_1 = arith.constant 0 : i32
    return %c0_i32, %c0_i32_0 : i32, i32
  }
}

</mosaic_0001>

<bundles_post_ra>
// kernel: encoder_text_trace.1
= control target key start
LH: loop header
LB: loop body
LE: loop exit
PB: predicated region body
PF: predicated region fallthrough
CT: control target
= control target key end

     0   :  { %vm44_vm0 = vcmask 58368   ;;  %v57_v7 = vlaneseq  ;;  %vm74_vm1 = vcmask 261120   ;;  %v2674_v24 = vmov 32.0   ;;  %s2676_s23 = smov 48   ;;  %s2678_s30 = smov 32   ;;  %s3531_s1 = inlined_call_operand.vmem [shape: f32[2,8], index: 1, kind: input, shape index: {}]   ;;  %s3532_s0 = inlined_call_operand.vmem [shape: f32[2,8,32], index: 0, kind: input, shape index: {}]   ;;  %s3533_s6 = inlined_call_operand.vmem [shape: f32[32,64], index: 6, kind: input, shape index: {}]   ;;  %s3534_s3 = inlined_call_operand.vmem [shape: f32[13,128], index: 3, kind: input, shape index: {}]   ;;  %s3535_s5 = inlined_call_operand.vmem [shape: f32[32,96], index: 5, kind: input, shape index: {}]   ;;  %s3536_s4 = inlined_call_operand.vmem [shape: f32[32,112], index: 4, kind: input, shape index: {}]   ;;  %s3537_s2 = inlined_call_operand.vmem [shape: f32[2,8], index: 2, kind: input, shape index: {}]   ;;  %s3538_s7 = inlined_call_operand.vmem [shape: f32[2,128], index: 7, kind: output, shape index: {}]  }
   0x1   :  { %v28_v0 = vld [vmem:[%s3531_s1] sm:$0x3]  ;;  %v27_v20 = vld [vmem:[%s3532_s0 + $0x8] sm:$0xff]  ;;  %v2756_v41 = vld [vmem:[%s3533_s6 + $0x18] sm:$0xff]  ;;  %s2680_s8 = smov 112   ;;  %s2682_s11 = smov 64  }
   0x2   :  { %v45_v1 = vsel %vm44_vm0, %v28_v0, -inf  ;;  %v2736_v8 = vshrl.u32 %v57_v7, 7  ;;  %v26_v15 = vld [vmem:[%s3532_s0] sm:$0xff]  ;;  %151 = vmatpush.msra.mxu0 %v2756_v41  ;;  %v2762_v42 = vld [vmem:[%s3533_s6 + $0x10] sm:$0xff]  ;;  %v2768_v43 = vld [vmem:[%s3533_s6 + $0x8] sm:$0xff]  ;;  %s2683_s12 = smov 16  }
   0x3   :  { %46 = vmax.xlane.f32.xlu0 %v45_v1  ;;  %v2774_v44 = vld [vmem:[%s3533_s6] sm:$0xff]  ;;  %v2439_v45 = vpack.i.bf16 %v2762_v42, %v2756_v41 }
   0x4   :  { %2422 = vset.pattern.permute.xlu1 %v2736_v8  ;;  %152 = vmatpush.msra.mxu0 %v2762_v42  ;;  %v2444_v46 = vpack.i.bf16 %v2774_v44, %v2768_v43  ;;  %v2786_v58 = vld [vmem:[%s3534_s3] sm:$0xff] }
   0x5   :  { %v126_v62 = vperm.slane %v2786_v58, 0 }
   0x6   :  { %153 = vmatpush.msra.mxu0 %v2768_v43 }
   0x8   :  { %154 = vmatpush.msra.mxu0 %v2774_v44 }
  0x76   :  { %v47_v2 = vpop.xlane.xlu0 %46 }
  0x77   :  { %v48_v3 = vsub.f32 %v28_v0, %v47_v2  ;;  %v129_v2 = vperm.slane %v2786_v58, 1 }
  0x79   :  { %v49_v4 = vmul.f32 1.442695, %v48_v3 }
  0x7b   :  { %2449 = vpow2.f32 %v49_v4 }
  0x81   :  { %v2450_v5 = vpop.eup %2449 }
  0x82   :  { %v51_v6 = vsel %vm44_vm0, %v2450_v5, 0.0 }
  0x83   :  { %52 = vadd.xlane.f32.xlu0 %v51_v6 }
  0xf6   :  { %v53_v9 = vpop.xlane.xlu0 %52 }
  0xf7   :  { %2451 = vrcp.f32 %v53_v9 }
  0xf8   :  { %2453 = vrcp.f32 %v2674_v24  ;;  %v2818_v24 = vld [vmem:[%s3535_s5] sm:$0xff] }
  0xfd   :  { %v2452_v10 = vpop.eup %2451 }
  0xfe   :  { %v55_v11 = vmul.f32 %v2452_v10, %v2450_v5  ;;  %v2454_v25 = vpop.eup %2453 }
  0xff   :  { %v82_v26 = vmul.f32 32.0, %v2454_v25  ;;  %vm86_vm2 = vweird.f32 %v2454_v25 }
 0x100   :  { %v56_v12 = vperm.slane %v55_v11, 0  ;;  %v63_v13 = vperm.slane %v55_v11, 1 }
 0x101   :  { %v83_v27 = vsub.f32 1.0, %v82_v26 }
 0x102   :  { %61 = vperm.xlu1 %2422, %v56_v12  }
 0x103   :  { %v84_v28 = vmul.f32 %v2454_v25, %v83_v27 }
 0x105   :  { %v85_v29 = vadd.f32 %v2454_v25, %v84_v28 }
 0x107   :  { %v2747_v30 = vsel %vm86_vm2, %v2454_v25, %v85_v29  ;;  %v2675_v25 = vmov 0.0  }
 0x10a   :  { %68 = vperm.xlu1 %2422, %v63_v13  }
 0x174   :  { %v62_v14 = vpop.permute.xlu1 %61 }
 0x175   :  { %v70_v16 = vadd.f32 1.0, %v62_v14  ;;  %v132_v14 = vperm.slane %v2786_v58, 2 }
 0x177   :  { %v72_v17 = vmul.f32 %v70_v16, %v26_v15 }
 0x179   :  { %v75_v18 = vsel %vm74_vm1, %v72_v17, 0.0 }
 0x17a   :  { %76 = vadd.xlane.f32.xlu2 %v75_v18 }
 0x17c   :  { %v69_v19 = vpop.permute.xlu1 %68 }
 0x17d   :  { %v71_v21 = vadd.f32 1.0, %v69_v19 }
 0x17f   :  { %v73_v22 = vmul.f32 %v71_v21, %v27_v20  ;;  %v2798_v21 = vld [vmem:[%s3535_s5 + $0x18] sm:$0xff] }
 0x180   :  { %268 = vmatpush.msra.mxu2 %v2798_v21  ;;  %507 = vmatpush.msra.mxu3 %v2798_v21 }
 0x181   :  { %v78_v23 = vsel %vm74_vm1, %v73_v22, 0.0  ;;  %1253 = vmatpush.msrb.mxu0 %v2798_v21 }
 0x182   :  { %79 = vadd.xlane.f32.xlu2 %v78_v23  ;;  %v2810_v23 = vld [vmem:[%s3535_s5 + $0x8] sm:$0xff] }
 0x1ed   :  { %v77_v31 = vpop.xlane.xlu2 %76 }
 0x1ee   :  { %v88_v32 = vmul.f32 %v2747_v30, %v77_v31 }
 0x1f0   :  { %v90_v33 = vsub.f32 %v72_v17, %v88_v32 }
 0x1f2   :  { %v92_v34 = vmul.f32 %v90_v33, %v90_v33 }
 0x1f4   :  { %v94_v35 = vsel %vm74_vm1, %v92_v34, 0.0 }
 0x1f5   :  { %95 = vadd.xlane.f32.xlu0 %v94_v35  ;;  %v80_v36 = vpop.xlane.xlu2 %79 }
 0x1f6   :  { %v89_v37 = vmul.f32 %v2747_v30, %v80_v36 }
 0x1f8   :  { %v91_v38 = vsub.f32 %v73_v22, %v89_v37  ;;  %v2803_v22 = vld [vmem:[%s3535_s5 + $0x10] sm:$0xff]  ;;  %v31_v37 = vld [vmem:[%s3534_s3 + $0x8] sm:$0x1f] }
 0x1f9   :  { %269 = vmatpush.msra.mxu2 %v2803_v22  ;;  %508 = vmatpush.msra.mxu3 %v2803_v22 }
 0x1fa   :  { %v93_v39 = vmul.f32 %v91_v38, %v91_v38  ;;  %1254 = vmatpush.msrb.mxu0 %v2803_v22 }
 0x1fb   :  { %270 = vmatpush.msra.mxu2 %v2810_v23  ;;  %509 = vmatpush.msra.mxu3 %v2810_v23 }
 0x1fc   :  { %v97_v40 = vsel %vm74_vm1, %v93_v39, 0.0  ;;  %1255 = vmatpush.msrb.mxu0 %v2810_v23  ;;  %v35_v39 = vld [vmem:[%s3536_s4 + $0x18] sm:$0xff] }
 0x1fd   :  { %98 = vadd.xlane.f32.xlu1 %v97_v40  ;;  %271 = vmatpush.msra.mxu2 %v2818_v24  ;;  %v34_v40 = vld [vmem:[%s3536_s4 + $0x10] sm:$0xff] }
 0x1fe   :  { %510 = vmatpush.msra.mxu3 %v2818_v24  ;;  %272 = vmatmul.f32.vlgmr.msra.gmra.mxu2 %v2675_v25 }
 0x1ff   :  { %754 = vmatpush.msrb.mxu2 %v2798_v21  ;;  %1256 = vmatpush.msrb.mxu0 %v2818_v24 }
 0x200   :  { %1004 = vmatpush.msrb.mxu3 %v2798_v21  ;;  %230 = vmatpush.msra.mxu1 %v35_v39 }
 0x201   :  { %755 = vmatpush.msrb.mxu2 %v2803_v22 }
 0x202   :  { %1005 = vmatpush.msrb.mxu3 %v2803_v22  ;;  %231 = vmatpush.msra.mxu1 %v34_v40 }
 0x203   :  { %756 = vmatpush.msrb.mxu2 %v2810_v23 }
 0x204   :  { %1006 = vmatpush.msrb.mxu3 %v2810_v23 }
 0x205   :  { %757 = vmatpush.msrb.mxu2 %v2818_v24 }
 0x206   :  { %1007 = vmatpush.msrb.mxu3 %v2818_v24 }
 0x207   :  { %1720 = vmatpush.msra.mxu2 %v2798_v21 }
 0x209   :  { %1721 = vmatpush.msra.mxu2 %v2803_v22 }
 0x20b   :  { %1722 = vmatpush.msra.mxu2 %v2810_v23 }
 0x20d   :  { %1723 = vmatpush.msra.mxu2 %v2818_v24 }
 0x268   :  { %v96_v47 = vpop.xlane.xlu0 %95 }
 0x269   :  { %v100_v48 = vmul.f32 %v96_v47, %v2747_v30  ;;  %v33_v47 = vld [vmem:[%s3536_s4 + $0x8] sm:$0xff] }
 0x26a   :  { %232 = vmatpush.msra.mxu1 %v33_v47 }
 0x26b   :  { %v102_v49 = vadd.f32 1e-05, %v100_v48  ;;  %v32_v48 = vld [vmem:[%s3536_s4] sm:$0xff]  ;;  %s2677_s4 = smov 96  }
 0x26c   :  { %233 = vmatpush.msra.mxu1 %v32_v48 }
 0x26d   :  { %2455 = vrsqrt.f32 %v102_v49  ;;  %vm110_vm4 = vweird.f32 %v102_v49 }
 0x26e   :  { %1486 = vmatpush.msrb.mxu1 %v2798_v21 }
 0x270   :  { %v99_v50 = vpop.xlane.xlu1 %98  ;;  %1487 = vmatpush.msrb.mxu1 %v2803_v22 }
 0x271   :  { %v101_v51 = vmul.f32 %v99_v50, %v2747_v30 }
 0x272   :  { %1488 = vmatpush.msrb.mxu1 %v2810_v23 }
 0x273   :  { %v2456_v52 = vpop.eup %2455  ;;  %v103_v53 = vadd.f32 1e-05, %v101_v51 }
 0x274   :  { %v105_v54 = vmul.f32 %v2456_v52, %v102_v49  ;;  %vm111_vm3 = vweird.f32 %v2456_v52  ;;  %1489 = vmatpush.msrb.mxu1 %v2818_v24 }
 0x275   :  { %2457 = vrsqrt.f32 %v103_v53  ;;  %vm112_vm5 = vmor %vm110_vm4, %vm111_vm3  ;;  %vm120_vm7 = vweird.f32 %v103_v53 }
 0x276   :  { %v106_v55 = vmul.f32 %v2456_v52, %v105_v54  ;;  %v2874_v54 = vperm.slane %v2786_v58, 6 }
 0x278   :  { %v107_v56 = vmul.f32 0.5, %v106_v55 }
 0x27a   :  { %v108_v57 = vsub.f32 1.5, %v107_v56 }
 0x27b   :  { %v2458_v59 = vpop.eup %2457 }
 0x27c   :  { %v109_v60 = vmul.f32 %v2456_v52, %v108_v57  ;;  %v115_v61 = vmul.f32 %v2458_v59, %v103_v53  ;;  %vm121_vm6 = vweird.f32 %v2458_v59 }
 0x27d   :  { %vm122_vm8 = vmor %vm120_vm7, %vm121_vm6 }
 0x27e   :  { %v116_v63 = vmul.f32 %v2458_v59, %v115_v61  ;;  %v113_v0 = vsel %vm112_vm5, %v2456_v52, %v109_v60  ;;  %v244_v52 = vperm.slane %v2786_v58, 7 }
 0x27f   :  { %v124_v1 = vmul.f32 %v113_v0, %v90_v33 }
 0x280   :  { %v117_v3 = vmul.f32 0.5, %v116_v63 }
 0x281   :  { %v127_v4 = vmul.f32 %v126_v62, %v124_v1  ;;  %v273_v53 = vpop.f32.mrf.mxu2 }
 0x282   :  { %v118_v5 = vsub.f32 1.5, %v117_v3  ;;  %v277_v55 = vadd.f32 %v2874_v54, %v273_v53 }
 0x283   :  { %v130_v6 = vadd.f32 %v129_v2, %v127_v4 }
 0x284   :  { %v119_v9 = vmul.f32 %v2458_v59, %v118_v5  ;;  %v279_v63 = vrot.slane %v277_v55, 1 }
 0x285   :  { %2361 = vmatmul.msk.f32.vlgmr.msra.gmra.mxu0 %vm74_vm1, %v130_v6 }
 0x286   :  { %v123_v10 = vsel %vm122_vm8, %v2458_v59, %v119_v9 }
 0x287   :  { %v125_v11 = vmul.f32 %v123_v10, %v91_v38  ;;  %v358_v38 = vperm.slane %v31_v37, 0 }
 0x289   :  { %v128_v12 = vmul.f32 %v126_v62, %v125_v11  ;;  %v206_v11 = vperm.slane %v2786_v58, 3 }
 0x28b   :  { %v131_v13 = vadd.f32 %v129_v2, %v128_v12 }
 0x28d   :  { %2362 = vmatmul.msk.f32.gmra.mxu0 %vm74_vm1, %v131_v13 }
 0x302   :  { %v156_v15 = vpop.f32.mrf.mxu0 }
 0x303   :  { %v157_v16 = vadd.f32 %v156_v15, %v132_v14  ;;  %v209_v15 = vperm.slane %v2786_v58, 4 }
 0x305   :  { %v162_v17 = vsel %vm74_vm1, %v157_v16, 0.0 }
 0x306   :  { %163 = vadd.xlane.f32.xlu2 %v162_v17 }
 0x30a   :  { %v159_v18 = vpop.f32.mrf.mxu0 }
 0x30b   :  { %v160_v19 = vadd.f32 %v159_v18, %v132_v14 }
 0x30d   :  { %v165_v20 = vsel %vm74_vm1, %v160_v19, 0.0 }
 0x30e   :  { %166 = vadd.xlane.f32.xlu0 %v165_v20 }
 0x379   :  { %v164_v26 = vpop.xlane.xlu2 %163 }
 0x37a   :  { %v168_v27 = vmul.f32 %v164_v26, %v2747_v30 }
 0x37c   :  { %v2838_v28 = vsub.f32 %v157_v16, %v168_v27 }
 0x37e   :  { %v172_v29 = vmul.f32 %v2838_v28, %v2838_v28 }
 0x380   :  { %v174_v31 = vsel %vm74_vm1, %v172_v29, 0.0 }
 0x381   :  { %v167_v32 = vpop.xlane.xlu0 %166  ;;  %175 = vadd.xlane.f32.xlu2 %v174_v31 }
 0x382   :  { %v169_v33 = vmul.f32 %v167_v32, %v2747_v30 }
 0x384   :  { %v2846_v34 = vsub.f32 %v160_v19, %v169_v33 }
 0x386   :  { %v173_v35 = vmul.f32 %v2846_v34, %v2846_v34 }
 0x388   :  { %v177_v36 = vsel %vm74_vm1, %v173_v35, 0.0 }
 0x389   :  { %178 = vadd.xlane.f32.xlu0 %v177_v36 }
 0x399   :  { %360 = vrot.lane.b32.xlu2 %v358_v38, %s2676_s23 }
 0x39d   :  { %246 = vrot.lane.b32.xlu0 %v244_v52, %s2676_s23 }
 0x3a5   :  { %324 = vrot.lane.b32.xlu0 %v279_v63, %s2677_s4 }
 0x3f4   :  { %v176_v49 = vpop.xlane.xlu2 %175 }
 0x3f5   :  { %v180_v50 = vmul.f32 %v176_v49, %v2747_v30 }
 0x3f7   :  { %v182_v51 = vadd.f32 1e-05, %v180_v50 }
 0x3f9   :  { %2459 = vrsqrt.f32 %v182_v51  ;;  %vm190_vm10 = vweird.f32 %v182_v51 }
 0x3fc   :  { %v179_v56 = vpop.xlane.xlu0 %178  ;;  %v2878_v57 = vpop.permute.xlu2 %360 }
 0x3fd   :  { %v181_v59 = vmul.f32 %v179_v56, %v2747_v30  ;;  %v363_v60 = vadd.f32 %v2878_v57, %v273_v53 }
 0x3ff   :  { %v2460_v61 = vpop.eup %2459  ;;  %v183_v62 = vadd.f32 1e-05, %v181_v59  ;;  %v366_v0 = vrot.slane %v363_v60, 2  ;;  %v365_v1 = vrot.slane %v363_v60, 1 }
 0x400   :  { %v185_v2 = vmul.f32 %v2460_v61, %v182_v51  ;;  %vm191_vm9 = vweird.f32 %v2460_v61 }
 0x401   :  { %2461 = vrsqrt.f32 %v183_v62  ;;  %411 = vrot.lane.b32.xlu1 %v366_v0, %s2677_s4  ;;  %409 = vrot.lane.b32.xlu2 %v365_v1, %s2677_s4  ;;  %vm192_vm11 = vmor %vm190_vm10, %vm191_vm9  ;;  %vm200_vm13 = vweird.f32 %v183_v62 }
 0x402   :  { %v186_v3 = vmul.f32 %v2460_v61, %v185_v2 }
 0x404   :  { %v187_v4 = vmul.f32 0.5, %v186_v3 }
 0x406   :  { %v188_v5 = vsub.f32 1.5, %v187_v4 }
 0x407   :  { %v2462_v6 = vpop.eup %2461 }
 0x408   :  { %v189_v9 = vmul.f32 %v2460_v61, %v188_v5  ;;  %v195_v10 = vmul.f32 %v2462_v6, %v183_v62  ;;  %vm201_vm12 = vweird.f32 %v2462_v6 }
 0x409   :  { %322 = vrot.lane.b32.xlu2 %v277_v55, %s2677_s4  ;;  %vm202_vm14 = vmor %vm200_vm13, %vm201_vm12 }
 0x40a   :  { %v196_v12 = vmul.f32 %v2462_v6, %v195_v10  ;;  %v193_v13 = vsel %vm192_vm11, %v2460_v61, %v189_v9 }
 0x40b   :  { %v204_v14 = vmul.f32 %v193_v13, %v2838_v28  ;;  %v241_v28 = vperm.slane %v2786_v58, 5 }
 0x40c   :  { %v197_v16 = vmul.f32 0.5, %v196_v12 }
 0x40d   :  { %v207_v17 = vmul.f32 %v206_v11, %v204_v14 }
 0x40e   :  { %v198_v18 = vsub.f32 1.5, %v197_v16 }
 0x40f   :  { %v2889_v19 = vadd.f32 %v209_v15, %v207_v17  ;;  %v247_v31 = vpop.permute.xlu0 %246 }
 0x410   :  { %v199_v20 = vmul.f32 %v2462_v6, %v198_v18 }
 0x411   :  { %2363 = vmatmul.msk.f32.vlgmr.msra.gmra.mxu1 %vm74_vm1, %v2889_v19 }
 0x412   :  { %v203_v25 = vsel %vm202_vm14, %v2462_v6, %v199_v20 }
 0x413   :  { %v205_v26 = vmul.f32 %v203_v25, %v2846_v34 }
 0x415   :  { %v208_v27 = vmul.f32 %v206_v11, %v205_v26 }
 0x417   :  { %v2894_v29 = vadd.f32 %v209_v15, %v208_v27 }
 0x419   :  { %2364 = vmatmul.msk.f32.gmra.mxu1 %vm74_vm1, %v2894_v29 }
 0x45b   :  { %v410_v13 = vpop.permute.xlu2 %409 }
 0x48e   :  { %v2899_v32 = vpop.f32.mrf.mxu1 }
 0x48f   :  { %v2902_v33 = vadd.f32 %v241_v28, %v2899_v32  ;;  %v2905_v35 = vadd.f32 %v247_v31, %v2899_v32 }
 0x491   :  { %v369_v36 = vadd.f32 %v365_v1, %v2905_v35  ;;  %v282_v34 = vadd.f32 %v277_v55, %v2902_v33 }
 0x493   :  { %v2367_v37 = vmul.f32 -1.442695, %v369_v36  ;;  %v2365_v38 = vmul.f32 -1.442695, %v282_v34 }
 0x495   :  { %2463 = vpow2.f32 %v2367_v37 }
 0x496   :  { %v2909_v39 = vpop.f32.mrf.mxu1  ;;  %2465 = vpow2.f32 %v2365_v38  ;;  %v325_v38 = vpop.permute.xlu0 %324 }
 0x497   :  { %v2912_v58 = vadd.f32 %v241_v28, %v2909_v39  ;;  %v2915_v40 = vadd.f32 %v247_v31, %v2909_v39 }
 0x499   :  { %v283_v47 = vadd.f32 %v279_v63, %v2912_v58  ;;  %v370_v48 = vadd.f32 %v366_v0, %v2915_v40 }
 0x49b   :  { %v2464_v49 = vpop.eup %2463  ;;  %v2366_v50 = vmul.f32 -1.442695, %v283_v47  ;;  %v2368_v53 = vmul.f32 -1.442695, %v370_v48 }
 0x49c   :  { %v2466_v51 = vpop.eup %2465  ;;  %v377_v52 = vadd.f32 1.0, %v2464_v49 }
 0x49d   :  { %2467 = vpow2.f32 %v2366_v50  ;;  %v2919_v55 = vadd.f32 1.0, %v2466_v51 }
 0x49e   :  { %2469 = vrcp.f32 %v377_v52  ;;  %v390_v1 = vand.u32 2147483648, %v377_v52  ;;  %v388_v4 = vand.u32 2147483647, %v377_v52  ;;  %vm384_vm2 = vweird.f32 %v377_v52 }
 0x49f   :  { %2471 = vpow2.f32 %v2368_v53  ;;  %v412_v53 = vpop.permute.xlu1 %411  ;;  %vm297_vm14 = vweird.f32 %v2919_v55 }
 0x4a0   :  { %2473 = vrcp.f32 %v2919_v55  ;;  %v391_v9 = vor.u32 1.1754944e-38, %v390_v1  ;;  %vm389_vm4 = vcmp.eq.f32.partialorder %v388_v4, 8.507059e+37 }
 0x4a3   :  { %v2468_v56 = vpop.eup %2467 }
 0x4a4   :  { %v2470_v59 = vpop.eup %2469  ;;  %v291_v60 = vadd.f32 1.0, %v2468_v56 }
 0x4a5   :  { %v380_v61 = vmul.f32 %v2470_v59, %v377_v52  ;;  %v2472_v62 = vpop.eup %2471  ;;  %vm385_vm15 = vweird.f32 %v2470_v59 }
 0x4a6   :  { %2475 = vrcp.f32 %v291_v60  ;;  %v378_v0 = vadd.f32 1.0, %v2472_v62  ;;  %v2922_v2 = vpop.eup %2473  ;;  %vm386_vm3 = vmor %vm384_vm2, %vm385_vm15  ;;  %v318_v18 = vand.u32 2147483648, %v291_v60  ;;  %v316_v27 = vand.u32 2147483647, %v291_v60 }
 0x4a7   :  { %v381_v63 = vsub.f32 1.0, %v380_v61  ;;  %v293_v10 = vmul.f32 %v2922_v2, %v2919_v55  ;;  %vm312_vm6 = vweird.f32 %v291_v60  ;;  %vm298_vm12 = vweird.f32 %v2922_v2 }
 0x4a8   :  { %2477 = vrcp.f32 %v378_v0  ;;  %v319_v36 = vor.u32 1.1754944e-38, %v318_v18  ;;  %v405_v34 = vand.u32 2147483648, %v378_v0  ;;  %v403_v48 = vand.u32 2147483647, %v378_v0  ;;  %vm299_vm15 = vmor %vm297_vm14, %vm298_vm12 }
 0x4a9   :  { %v382_v3 = vmul.f32 %v2470_v59, %v381_v63  ;;  %v294_v20 = vsub.f32 1.0, %v293_v10  ;;  %vm317_vm9 = vcmp.eq.f32.partialorder %v316_v27, 8.507059e+37  ;;  %vm399_vm10 = vweird.f32 %v378_v0 }
 0x4aa   :  { %v406_v56 = vor.u32 1.1754944e-38, %v405_v34  ;;  %vm404_vm13 = vcmp.eq.f32.partialorder %v403_v48, 8.507059e+37  ;;  %v303_v61 = vand.u32 2147483648, %v2919_v55  ;;  %v301_v63 = vand.u32 2147483647, %v2919_v55 }
 0x4ab   :  { %v383_v5 = vadd.f32 %v2470_v59, %v382_v3  ;;  %v295_v37 = vmul.f32 %v2922_v2, %v294_v20  ;;  %v2679_v10 = vmov 7  }
 0x4ac   :  { %v2476_v6 = vpop.eup %2475  ;;  %v304_v3 = vor.u32 1.1754944e-38, %v303_v61  ;;  %vm302_vm2 = vcmp.eq.f32.partialorder %v301_v63, 8.507059e+37  ;;  %2423 = vset.pattern.permute.xlu0 %v2679_v10  ;;  %2424 = vset.pattern.permute.xlu1 %v2679_v10 }
 0x4ad   :  { %v387_v11 = vsel %vm386_vm3, %v2470_v59, %v383_v5  ;;  %v308_v12 = vmul.f32 %v2476_v6, %v291_v60  ;;  %vm313_vm5 = vweird.f32 %v2476_v6  ;;  %v296_v59 = vadd.f32 %v2922_v2, %v295_v37  ;;  %v323_v5 = vpop.permute.xlu2 %322 }
 0x4ae   :  { %v2926_v14 = vsel %vm389_vm4, %v391_v9, %v387_v11  ;;  %v2478_v15 = vpop.eup %2477  ;;  %vm314_vm7 = vmor %vm312_vm6, %vm313_vm5  ;;  %vm453_vm3 = vcmask 1041409   ;;  %vm490_vm4 = vcmask 130048  }
 0x4af   :  { %v415_v16 = vmul.f32 %v410_v13, %v2926_v14  ;;  %v309_v17 = vsub.f32 1.0, %v308_v12  ;;  %v395_v25 = vmul.f32 %v2478_v15, %v378_v0  ;;  %vm400_vm8 = vweird.f32 %v2478_v15 }
 0x4b0   :  { %vm401_vm11 = vmor %vm399_vm10, %vm400_vm8  ;;  %v300_v1 = vsel %vm299_vm15, %v2922_v2, %v296_v59 }
 0x4b1   :  { %419 = vrot.lane.b32.xlu0 %v415_v16, %s2678_s30  ;;  %v310_v26 = vmul.f32 %v2476_v6, %v309_v17  ;;  %v396_v28 = vsub.f32 1.0, %v395_v25  ;;  %v305_v4 = vsel %vm302_vm2, %v304_v3, %v300_v1 }
 0x4b2   :  { %v342_v1 = vsub.f32 1.0, %v305_v4 }
 0x4b3   :  { %v311_v31 = vadd.f32 %v2476_v6, %v310_v26  ;;  %v397_v47 = vmul.f32 %v2478_v15, %v396_v28  ;;  %v2681_v28 = vmov 0  }
 0x4b4   :  { %2425 = vset.pattern.permute.xlu2 %v2681_v28 }
 0x4b5   :  { %v315_v49 = vsel %vm314_vm7, %v2476_v6, %v311_v31  ;;  %v398_v51 = vadd.f32 %v2478_v15, %v397_v47  ;;  %v328_v6 = vmul.f32 %v323_v5, %v305_v4  ;;  %v354_v5 = vmul.f32 0.0, %v305_v4 }
 0x4b6   :  { %v2931_v50 = vsel %vm317_vm9, %v319_v36, %v315_v49 }
 0x4b7   :  { %v329_v52 = vmul.f32 %v325_v38, %v2931_v50  ;;  %v402_v60 = vsel %vm401_vm11, %v2478_v15, %v398_v51  ;;  %v2949_v15 = vld [vmem:[%s3537_s2] sm:$0x3]  ;;  %v429_v38 = vsub.f32 1.0, %v2926_v14  ;;  %v343_v49 = vsub.f32 1.0, %v2931_v50 }
 0x4b8   :  { %v407_v62 = vsel %vm404_vm13, %v406_v56, %v402_v60  ;;  %v2958_v27 = vsub.f32 1.0, %v2949_v15  ;;  %v355_v60 = vmul.f32 0.0, %v2931_v50 }
 0x4b9   :  { %334 = vrot.lane.b32.xlu0 %v329_v52, %s2678_s30  ;;  %v416_v0 = vmul.f32 %v412_v53, %v407_v62  ;;  %v430_v36 = vsub.f32 1.0, %v407_v62  ;;  %v442_v37 = vmul.f32 0.0, %v407_v62  ;;  %v441_v52 = vmul.f32 0.0, %v2926_v14 }
 0x4bb   :  { %421 = vrot.lane.b32.xlu2 %v416_v0, %s2678_s30 }
 0x4c3   :  { %332 = vrot.lane.b32.xlu2 %v328_v6, %s2678_s30 }
 0x515   :  { %v422_v9 = vpop.permute.xlu2 %421 }
 0x516   :  { %v426_v11 = vadd.f32 %v422_v9, %v2915_v40 }
 0x518   :  { %2479 = vtanh.f32 %v426_v11 }
 0x51d   :  { %v333_v13 = vpop.permute.xlu2 %332 }
 0x51e   :  { %v2480_v55 = vpop.eup %2479  ;;  %v338_v16 = vadd.f32 %v333_v13, %v2902_v33 }
 0x51f   :  { %435 = vrot.lane.b32.xlu0 %v2480_v55, %s2680_s8 }
 0x523   :  { %v420_v2 = vpop.permute.xlu0 %419 }
 0x524   :  { %v425_v12 = vadd.f32 %v420_v2, %v2905_v35 }
 0x526   :  { %2481 = vtanh.f32 %v425_v12 }
 0x527   :  { %468 = vperm.xlu0 %2423, %v2949_v15   ;;  %2483 = vtanh.f32 %v338_v16 }
 0x52b   :  { %v335_v17 = vpop.permute.xlu0 %334 }
 0x52c   :  { %v2482_v18 = vpop.eup %2481  ;;  %v339_v20 = vadd.f32 %v335_v17, %v2912_v58 }
 0x52d   :  { %433 = vrot.lane.b32.xlu1 %v2482_v18, %s2680_s8  ;;  %v2484_v25 = vpop.eup %2483 }
 0x52e   :  { %2485 = vtanh.f32 %v339_v20 }
 0x52f   :  { %2426 = vset.pattern.permute.xlu0 %v2681_v28 }
 0x530   :  { %462 = vperm.xlu0 %2426, %v2958_v27  }
 0x534   :  { %v2486_v26 = vpop.eup %2485 }
 0x535   :  { %346 = vrot.lane.b32.xlu1 %v2484_v25, %s2680_s8  ;;  %348 = vrot.lane.b32.xlu2 %v2486_v26, %s2680_s8 }
 0x53d   :  { %481 = vperm.xlu1 %2424, %v2958_v27  }
 0x58f   :  { %v349_v47 = vpop.permute.xlu2 %348 }
 0x590   :  { %v353_v56 = vmul.f32 %v349_v47, %v343_v49 }
 0x591   :  { %v436_v31 = vpop.permute.xlu0 %435 }
 0x592   :  { %v440_v34 = vmul.f32 %v436_v31, %v430_v36  ;;  %v357_v0 = vadd.f32 %v355_v60, %v353_v56 }
 0x594   :  { %v444_v51 = vadd.f32 %v442_v37, %v440_v34  ;;  %v452_v9 = vrot.slane %v357_v0, 7 }
 0x596   :  { %v474_v61 = vrot.slane %v444_v51, 6 }
 0x599   :  { %v2973_v11 = vpop.permute.xlu0 %468 }
 0x59f   :  { %v434_v48 = vpop.permute.xlu1 %433 }
 0x5a0   :  { %v439_v53 = vmul.f32 %v434_v48, %v429_v38 }
 0x5a2   :  { %v443_v59 = vadd.f32 %v441_v52, %v439_v53  ;;  %v2978_v4 = vpop.permute.xlu0 %462 }
 0x5a3   :  { %v465_v20 = vmul.f32 0.0, %v2978_v4 }
 0x5a4   :  { %v473_v63 = vrot.slane %v443_v59, 7 }
 0x5a6   :  { %v475_v62 = vsel %vm453_vm3, %v474_v61, %v473_v63 }
 0x5a7   :  { %v347_v3 = vpop.permute.xlu1 %346  ;;  %476 = vrot.lane.b32.xlu2 %v475_v62, %s2682_s11 }
 0x5a8   :  { %v352_v6 = vmul.f32 %v347_v3, %v342_v1 }
 0x5aa   :  { %v356_v14 = vadd.f32 %v354_v5, %v352_v6 }
 0x5ac   :  { %v454_v10 = vsel %vm453_vm3, %v452_v9, %v356_v14 }
 0x5ad   :  { %455 = vrot.lane.b32.xlu1 %v454_v10, %s2680_s8 }
 0x5af   :  { %447 = vperm.xlu2 %2425, %v2949_v15   ;;  %v2971_v50 = vpop.permute.xlu1 %481 }
 0x5b0   :  { %v484_v55 = vmul.f32 0.0, %v2971_v50 }
 0x601   :  { %v477_v2 = vpop.permute.xlu2 %476 }
 0x602   :  { %v479_v12 = vmul.f32 %v477_v2, %v2973_v11 }
 0x604   :  { %v485_v13 = vadd.f32 %v484_v55, %v479_v12 }
 0x606   :  { %487 = vrot.lane.b32.xlu2 %v485_v13, %s2683_s12 }
 0x609   :  { %v2980_v17 = vpop.permute.xlu2 %447 }
 0x61f   :  { %v456_v16 = vpop.permute.xlu1 %455 }
 0x620   :  { %v458_v18 = vmul.f32 %v456_v16, %v2980_v17 }
 0x622   :  { %v466_v25 = vadd.f32 %v465_v20, %v458_v18 }
 0x660   :  { %v488_v26 = vpop.permute.xlu2 %487 }
 0x661   :  { %v2985_v28 = vsel %vm490_vm4, %v466_v25, %v488_v26 }
 0x662   :  { %2369 = vmatmul.msk.f32.vlgmr.msra.gmra.mxu3 %vm74_vm1, %v2985_v28 }
 0x663   :  { %1951 = vmatpush.msra.mxu3 %v2798_v21 }
 0x665   :  { %1952 = vmatpush.msra.mxu3 %v2803_v22 }
 0x667   :  { %1953 = vmatpush.msra.mxu3 %v2810_v23 }
 0x669   :  { %1954 = vmatpush.msra.mxu3 %v2818_v24 }
 0x6e5   :  { %v512_v31 = vpop.f32.mrf.mxu3 }
 0x6e6   :  { %v515_v36 = vadd.f32 %v512_v31, %v2874_v54  ;;  %v603_v34 = vadd.f32 %v512_v31, %v2878_v57 }
 0x6e8   :  { %v605_v37 = vrot.slane %v603_v34, 2  ;;  %v606_v38 = vrot.slane %v603_v34, 3  ;;  %562 = vrot.lane.b32.xlu0 %v515_v36, %s2677_s4  ;;  %v517_v21 = vrot.slane %v515_v36, 7  ;;  %v521_v53 = vadd.f32 %v515_v36, %v2912_v58 }
 0x6ea   :  { %651 = vrot.lane.b32.xlu2 %v606_v38, %s2677_s4  ;;  %649 = vrot.lane.b32.xlu1 %v605_v37, %s2677_s4  ;;  %v610_v22 = vadd.f32 %v606_v38, %v2915_v40  ;;  %v609_v48 = vadd.f32 %v605_v37, %v2905_v35  ;;  %v520_v56 = vadd.f32 %v517_v21, %v2902_v33  ;;  %v2371_v60 = vmul.f32 -1.442695, %v521_v53 }
 0x6ec   :  { %v2373_v23 = vmul.f32 -1.442695, %v610_v22  ;;  %v2372_v51 = vmul.f32 -1.442695, %v609_v48  ;;  %v2370_v61 = vmul.f32 -1.442695, %v520_v56 }
 0x6ee   :  { %2487 = vpow2.f32 %v2373_v23 }
 0x6f2   :  { %560 = vrot.lane.b32.xlu1 %v517_v21, %s2677_s4 }
 0x6f4   :  { %v2488_v24 = vpop.eup %2487 }
 0x6f5   :  { %v618_v47 = vadd.f32 1.0, %v2488_v24 }
 0x6f7   :  { %2489 = vrcp.f32 %v618_v47  ;;  %v645_v3 = vand.u32 2147483648, %v618_v47  ;;  %vm639_vm6 = vweird.f32 %v618_v47  ;;  %v643_v5 = vand.u32 2147483647, %v618_v47 }
 0x6f8   :  { %2491 = vpow2.f32 %v2372_v51 }
 0x6f9   :  { %2493 = vpow2.f32 %v2371_v60  ;;  %v646_v10 = vor.u32 1.1754944e-38, %v645_v3  ;;  %vm644_vm8 = vcmp.eq.f32.partialorder %v643_v5, 8.507059e+37 }
 0x6fa   :  { %2495 = vpow2.f32 %v2370_v61 }
 0x6fd   :  { %v2490_v49 = vpop.eup %2489 }
 0x6fe   :  { %v635_v52 = vmul.f32 %v2490_v49, %v618_v47  ;;  %v2492_v63 = vpop.eup %2491  ;;  %vm640_vm5 = vweird.f32 %v2490_v49 }
 0x6ff   :  { %v617_v1 = vadd.f32 1.0, %v2492_v63  ;;  %v2494_v6 = vpop.eup %2493  ;;  %vm641_vm7 = vmor %vm639_vm6, %vm640_vm5 }
 0x700   :  { %v636_v59 = vsub.f32 1.0, %v635_v52  ;;  %v2496_v9 = vpop.eup %2495  ;;  %v529_v55 = vadd.f32 1.0, %v2494_v6 }
 0x701   :  { %2497 = vrcp.f32 %v617_v1  ;;  %v528_v2 = vadd.f32 1.0, %v2496_v9  ;;  %v630_v23 = vand.u32 2147483648, %v617_v1  ;;  %vm624_vm10 = vweird.f32 %v617_v1 }
 0x702   :  { %v637_v0 = vmul.f32 %v2490_v49, %v636_v59  ;;  %2499 = vrcp.f32 %v529_v55  ;;  %v628_v24 = vand.u32 2147483647, %v617_v1  ;;  %vm550_vm15 = vweird.f32 %v529_v55 }
 0x703   :  { %2501 = vrcp.f32 %v528_v2  ;;  %v631_v51 = vor.u32 1.1754944e-38, %v630_v23  ;;  %v556_v61 = vand.u32 2147483648, %v529_v55  ;;  %v541_v63 = vand.u32 2147483648, %v528_v2 }
 0x704   :  { %v638_v62 = vadd.f32 %v2490_v49, %v637_v0  ;;  %vm629_vm12 = vcmp.eq.f32.partialorder %v628_v24, 8.507059e+37  ;;  %v554_v0 = vand.u32 2147483647, %v529_v55  ;;  %vm535_vm5 = vweird.f32 %v528_v2 }
 0x705   :  { %v557_v6 = vor.u32 1.1754944e-38, %v556_v61  ;;  %v542_v9 = vor.u32 1.1754944e-38, %v541_v63  ;;  %v592_v23 = vrot.slane %v2985_v28, 7 }
 0x706   :  { %v642_v14 = vsel %vm641_vm7, %v2490_v49, %v638_v62  ;;  %vm555_vm7 = vcmp.eq.f32.partialorder %v554_v0, 8.507059e+37 }
 0x707   :  { %v3003_v13 = vsel %vm644_vm8, %v646_v10, %v642_v14  ;;  %v2498_v18 = vpop.eup %2497 }
 0x708   :  { %v620_v20 = vmul.f32 %v2498_v18, %v617_v1  ;;  %v2500_v25 = vpop.eup %2499  ;;  %vm625_vm9 = vweird.f32 %v2498_v18  ;;  %v539_v1 = vand.u32 2147483647, %v528_v2  ;;  %v670_v63 = vsub.f32 1.0, %v3003_v13 }
 0x709   :  { %v2502_v31 = vpop.eup %2501  ;;  %v546_v36 = vmul.f32 %v2500_v25, %v529_v55  ;;  %vm626_vm11 = vmor %vm624_vm10, %vm625_vm9  ;;  %vm551_vm13 = vweird.f32 %v2500_v25 }
 0x70a   :  { %v621_v26 = vsub.f32 1.0, %v620_v20  ;;  %v531_v37 = vmul.f32 %v2502_v31, %v528_v2  ;;  %vm536_vm14 = vweird.f32 %v2502_v31  ;;  %vm552_vm2 = vmor %vm550_vm15, %vm551_vm13  ;;  %vm540_vm8 = vcmp.eq.f32.partialorder %v539_v1, 8.507059e+37 }
 0x70b   :  { %v547_v38 = vsub.f32 1.0, %v546_v36  ;;  %vm537_vm6 = vmor %vm535_vm5, %vm536_vm14  ;;  %v681_v2 = vrot.slane %v2985_v28, 2 }
 0x70c   :  { %v622_v34 = vmul.f32 %v2498_v18, %v621_v26  ;;  %v532_v22 = vsub.f32 1.0, %v531_v37 }
 0x70d   :  { %v548_v47 = vmul.f32 %v2500_v25, %v547_v38 }
 0x70e   :  { %v623_v21 = vadd.f32 %v2498_v18, %v622_v34  ;;  %v533_v49 = vmul.f32 %v2502_v31, %v532_v22 }
 0x70f   :  { %v549_v56 = vadd.f32 %v2500_v25, %v548_v47 }
 0x710   :  { %v627_v48 = vsel %vm626_vm11, %v2498_v18, %v623_v21  ;;  %v534_v60 = vadd.f32 %v2502_v31, %v533_v49  ;;  %v2684_v18 = vmov 6   ;;  %v682_v21 = vrot.slane %v2985_v28, 3 }
 0x711   :  { %v3007_v53 = vsel %vm629_vm12, %v631_v51, %v627_v48  ;;  %v553_v62 = vsel %vm552_vm2, %v2500_v25, %v549_v56  ;;  %2427 = vset.pattern.permute.xlu0 %v2684_v18  ;;  %v2685_v49 = vmov 1  }
 0x712   :  { %v538_v3 = vsel %vm537_vm6, %v2502_v31, %v534_v60  ;;  %v3011_v14 = vsel %vm555_vm7, %v557_v6, %v553_v62  ;;  %2429 = vset.pattern.permute.xlu1 %v2685_v49 }
 0x744   :  { %v652_v12 = vpop.permute.xlu2 %651 }
 0x745   :  { %v656_v16 = vmul.f32 %v652_v12, %v3003_v13  ;;  %v3013_v12 = vsel %vm540_vm8, %v542_v9, %v538_v3 }
 0x747   :  { %661 = vrot.lane.b32.xlu1 %v656_v16, %s2678_s30 }
 0x75a   :  { %v563_v5 = vpop.permute.xlu0 %562 }
 0x75b   :  { %v567_v16 = vmul.f32 %v563_v5, %v3011_v14 }
 0x75c   :  { %v650_v52 = vpop.permute.xlu1 %649 }
 0x75d   :  { %v655_v59 = vmul.f32 %v650_v52, %v3007_v53 }
 0x75f   :  { %659 = vrot.lane.b32.xlu2 %v655_v59, %s2678_s30  ;;  %v669_v59 = vsub.f32 1.0, %v3007_v53 }
 0x764   :  { %v561_v10 = vpop.permute.xlu1 %560 }
 0x765   :  { %v566_v55 = vmul.f32 %v561_v10, %v3013_v12 }
 0x767   :  { %572 = vrot.lane.b32.xlu2 %v567_v16, %s2678_s30  ;;  %570 = vrot.lane.b32.xlu0 %v566_v55, %s2678_s30 }
 0x76f   :  { %683 = vrot.lane.b32.xlu2 %v681_v2, %s2676_s23 }
 0x7b9   :  { %v660_v20 = vpop.permute.xlu2 %659  ;;  %v662_v25 = vpop.permute.xlu1 %661 }
 0x7ba   :  { %v665_v26 = vadd.f32 %v660_v20, %v2905_v35  ;;  %v666_v31 = vadd.f32 %v662_v25, %v2915_v40  ;;  %v580_v20 = vsub.f32 1.0, %v3013_v12 }
 0x7bc   :  { %2503 = vtanh.f32 %v665_v26  ;;  %v581_v26 = vsub.f32 1.0, %v3011_v14 }
 0x7bd   :  { %2505 = vtanh.f32 %v666_v31 }
 0x7c1   :  { %v573_v36 = vpop.permute.xlu2 %572 }
 0x7c2   :  { %v2504_v34 = vpop.eup %2503  ;;  %v577_v37 = vadd.f32 %v573_v36, %v2912_v58 }
 0x7c3   :  { %v2506_v38 = vpop.eup %2505  ;;  %673 = vrot.lane.b32.xlu1 %v2504_v34, %s2680_s8 }
 0x7c4   :  { %2507 = vtanh.f32 %v577_v37  ;;  %675 = vrot.lane.b32.xlu0 %v2506_v38, %s2680_s8 }
 0x7c9   :  { %v684_v56 = vpop.permute.xlu2 %683 }
 0x7ca   :  { %v2508_v22 = vpop.eup %2507  ;;  %v689_v61 = vmul.f32 %v684_v56, %v3007_v53 }
 0x7cb   :  { %586 = vrot.lane.b32.xlu2 %v2508_v22, %s2680_s8  ;;  %685 = vrot.lane.b32.xlu1 %v682_v21, %s2676_s23 }
 0x7cc   :  { %725 = vperm.xlu0 %2427, %v2958_v27  }
 0x7d3   :  { %593 = vrot.lane.b32.xlu1 %v592_v23, %s2683_s12 }
 0x7d4   :  { %712 = vperm.xlu0 %2427, %v2949_v15  }
 0x7d9   :  { %v571_v24 = vpop.permute.xlu0 %570 }
 0x7da   :  { %v576_v47 = vadd.f32 %v571_v24, %v2902_v33 }
 0x7db   :  { %595 = vrot.lane.b32.xlu1 %v2985_v28, %s2683_s12 }
 0x7dc   :  { %2509 = vtanh.f32 %v576_v47  ;;  %2428 = vset.pattern.permute.xlu0 %v2685_v49 }
 0x7dd   :  { %694 = vperm.xlu0 %2428, %v2949_v15  }
 0x7e2   :  { %v2510_v48 = vpop.eup %2509 }
 0x7e3   :  { %584 = vrot.lane.b32.xlu2 %v2510_v48, %s2680_s8 }
 0x825   :  { %v587_v6 = vpop.permute.xlu2 %586 }
 0x826   :  { %v591_v34 = vmul.f32 %v587_v6, %v581_v26 }
 0x835   :  { %v674_v51 = vpop.permute.xlu1 %673 }
 0x836   :  { %v676_v52 = vpop.permute.xlu0 %675  ;;  %v679_v60 = vmul.f32 %v674_v51, %v669_v59 }
 0x837   :  { %v680_v62 = vmul.f32 %v676_v52, %v670_v63 }
 0x838   :  { %v691_v1 = vadd.f32 %v689_v61, %v679_v60 }
 0x83a   :  { %v717_v16 = vrot.slane %v691_v1, 6 }
 0x83d   :  { %v686_v0 = vpop.permute.xlu1 %685  ;;  %v585_v18 = vpop.permute.xlu2 %584 }
 0x83e   :  { %v690_v3 = vmul.f32 %v686_v0, %v3003_v13  ;;  %v3042_v5 = vpop.permute.xlu0 %725  ;;  %v590_v25 = vmul.f32 %v585_v18, %v580_v20 }
 0x83f   :  { %v728_v9 = vmul.f32 %v3042_v5, %v2985_v28 }
 0x840   :  { %v692_v10 = vadd.f32 %v690_v3, %v680_v62 }
 0x841   :  { %730 = vrot.lane.b32.xlu1 %v728_v9, %s2680_s8 }
 0x842   :  { %v718_v55 = vrot.slane %v692_v10, 5 }
 0x844   :  { %v719_v53 = vsel %vm453_vm3, %v718_v55, %v717_v16 }
 0x845   :  { %v594_v2 = vpop.permute.xlu1 %593  ;;  %720 = vrot.lane.b32.xlu2 %v719_v53, %s2682_s11 }
 0x846   :  { %v599_v13 = vmul.f32 %v594_v2, %v3013_v12  ;;  %v3056_v24 = vpop.permute.xlu0 %712 }
 0x848   :  { %v601_v31 = vadd.f32 %v599_v13, %v590_v25 }
 0x849   :  { %706 = vperm.xlu1 %2429, %v2958_v27  }
 0x84a   :  { %v699_v38 = vrot.slane %v601_v31, 1 }
 0x84d   :  { %v596_v36 = vpop.permute.xlu1 %595 }
 0x84e   :  { %v600_v37 = vmul.f32 %v596_v36, %v3011_v14 }
 0x84f   :  { %v3062_v52 = vpop.permute.xlu0 %694 }
 0x850   :  { %v602_v21 = vadd.f32 %v600_v37, %v591_v34 }
 0x852   :  { %v700_v22 = vsel %vm453_vm3, %v602_v21, %v699_v38 }
 0x853   :  { %701 = vrot.lane.b32.xlu2 %v700_v22, %s2680_s8 }
 0x89f   :  { %v721_v23 = vpop.permute.xlu2 %720 }
 0x8a0   :  { %v723_v12 = vmul.f32 %v721_v23, %v3056_v24 }
 0x8ad   :  { %v702_v49 = vpop.permute.xlu2 %701 }
 0x8ae   :  { %v704_v56 = vmul.f32 %v702_v49, %v3062_v52 }
 0x8b3   :  { %v731_v47 = vpop.permute.xlu1 %730 }
 0x8b4   :  { %v733_v48 = vadd.f32 %v731_v47, %v723_v12 }
 0x8b6   :  { %735 = vrot.lane.b32.xlu2 %v733_v48, %s2683_s12 }
 0x8bb   :  { %v3060_v51 = vpop.permute.xlu1 %706 }
 0x8bc   :  { %v709_v14 = vmul.f32 %v3060_v51, %v2985_v28 }
 0x8be   :  { %v710_v59 = vadd.f32 %v709_v14, %v704_v56 }
 0x910   :  { %v736_v60 = vpop.permute.xlu2 %735 }
 0x911   :  { %v3068_v61 = vsel %vm490_vm4, %v710_v59, %v736_v60 }
 0x912   :  { %2374 = vmatmul.msk.f32.vlgmr.msrb.gmra.mxu2 %vm74_vm1, %v3068_v61 }
 0x995   :  { %v759_v63 = vpop.f32.mrf.mxu2 }
 0x996   :  { %v762_v0 = vadd.f32 %v759_v63, %v2874_v54  ;;  %v852_v1 = vadd.f32 %v759_v63, %v2878_v57 }
 0x998   :  { %v764_v62 = vrot.slane %v762_v0, 6  ;;  %v854_v3 = vrot.slane %v852_v1, 3  ;;  %v855_v6 = vrot.slane %v852_v1, 4  ;;  %v765_v28 = vrot.slane %v762_v0, 7 }
 0x99a   :  { %900 = vrot.lane.b32.xlu0 %v855_v6, %s2677_s4  ;;  %898 = vrot.lane.b32.xlu1 %v854_v3, %s2677_s4  ;;  %v768_v9 = vadd.f32 %v764_v62, %v2902_v33  ;;  %v859_v53 = vadd.f32 %v855_v6, %v2915_v40  ;;  %v858_v2 = vadd.f32 %v854_v3, %v2905_v35 }
 0x99b   :  { %808 = vrot.lane.b32.xlu2 %v764_v62, %s2677_s4  ;;  %v769_v26 = vadd.f32 %v765_v28, %v2912_v58 }
 0x99c   :  { %v2375_v10 = vmul.f32 -1.442695, %v768_v9  ;;  %v2378_v20 = vmul.f32 -1.442695, %v859_v53  ;;  %v2377_v13 = vmul.f32 -1.442695, %v858_v2 }
 0x99d   :  { %v2376_v36 = vmul.f32 -1.442695, %v769_v26 }
 0x99e   :  { %2511 = vpow2.f32 %v2375_v10 }
 0x9a2   :  { %810 = vrot.lane.b32.xlu1 %v765_v28, %s2677_s4 }
 0x9a4   :  { %v2512_v16 = vpop.eup %2511 }
 0x9a5   :  { %v776_v55 = vadd.f32 1.0, %v2512_v16 }
 0x9a7   :  { %2513 = vrcp.f32 %v776_v55  ;;  %v789_v12 = vand.u32 2147483648, %v776_v55  ;;  %vm783_vm10 = vweird.f32 %v776_v55  ;;  %v787_v47 = vand.u32 2147483647, %v776_v55 }
 0x9a8   :  { %2515 = vpow2.f32 %v2378_v20 }
 0x9a9   :  { %2517 = vpow2.f32 %v2377_v13  ;;  %v790_v14 = vor.u32 1.1754944e-38, %v789_v12  ;;  %vm788_vm12 = vcmp.eq.f32.partialorder %v787_v47, 8.507059e+37 }
 0x9aa   :  { %2519 = vpow2.f32 %v2376_v36 }
 0x9ad   :  { %v2514_v18 = vpop.eup %2513 }
 0x9ae   :  { %v779_v25 = vmul.f32 %v2514_v18, %v776_v55  ;;  %v2516_v34 = vpop.eup %2515  ;;  %vm784_vm9 = vweird.f32 %v2514_v18 }
 0x9af   :  { %v2518_v37 = vpop.eup %2517  ;;  %v867_v21 = vadd.f32 1.0, %v2516_v34  ;;  %vm785_vm11 = vmor %vm783_vm10, %vm784_vm9 }
 0x9b0   :  { %v780_v31 = vsub.f32 1.0, %v779_v25  ;;  %v866_v22 = vadd.f32 1.0, %v2518_v37  ;;  %v2520_v48 = vpop.eup %2519 }
 0x9b1   :  { %2521 = vrcp.f32 %v867_v21  ;;  %v777_v56 = vadd.f32 1.0, %v2520_v48  ;;  %v894_v2 = vand.u32 2147483648, %v867_v21  ;;  %vm888_vm15 = vweird.f32 %v867_v21 }
 0x9b2   :  { %v781_v38 = vmul.f32 %v2514_v18, %v780_v31  ;;  %2523 = vrcp.f32 %v866_v22  ;;  %v892_v13 = vand.u32 2147483647, %v867_v21  ;;  %v879_v25 = vand.u32 2147483648, %v866_v22 }
 0x9b3   :  { %2525 = vrcp.f32 %v777_v56  ;;  %vm873_vm5 = vweird.f32 %v866_v22  ;;  %v877_v26 = vand.u32 2147483647, %v866_v22  ;;  %v895_v36 = vor.u32 1.1754944e-38, %v894_v2 }
 0x9b4   :  { %v782_v23 = vadd.f32 %v2514_v18, %v781_v38  ;;  %vm893_vm7 = vcmp.eq.f32.partialorder %v892_v13, 8.507059e+37  ;;  %v880_v38 = vor.u32 1.1754944e-38, %v879_v25  ;;  %vm798_vm10 = vweird.f32 %v777_v56 }
 0x9b5   :  { %vm878_vm8 = vcmp.eq.f32.partialorder %v877_v26, 8.507059e+37  ;;  %v841_v2 = vrot.slane %v3068_v61, 7 }
 0x9b6   :  { %v786_v49 = vsel %vm785_vm11, %v2514_v18, %v782_v23 }
 0x9b7   :  { %v3082_v60 = vsel %vm788_vm12, %v790_v14, %v786_v49  ;;  %v2522_v63 = vpop.eup %2521 }
 0x9b8   :  { %v2524_v1 = vpop.eup %2523  ;;  %v884_v62 = vmul.f32 %v2522_v63, %v867_v21  ;;  %vm889_vm13 = vweird.f32 %v2522_v63 }
 0x9b9   :  { %v869_v3 = vmul.f32 %v2524_v1, %v866_v22  ;;  %v2526_v9 = vpop.eup %2525  ;;  %vm874_vm14 = vweird.f32 %v2524_v1  ;;  %vm890_vm2 = vmor %vm888_vm15, %vm889_vm13  ;;  %v804_v22 = vand.u32 2147483648, %v777_v56 }
 0x9ba   :  { %v885_v6 = vsub.f32 1.0, %v884_v62  ;;  %v794_v55 = vmul.f32 %v2526_v9, %v777_v56  ;;  %vm875_vm6 = vmor %vm873_vm5, %vm874_vm14  ;;  %vm799_vm9 = vweird.f32 %v2526_v9 }
 0x9bb   :  { %v870_v28 = vsub.f32 1.0, %v869_v3  ;;  %vm800_vm11 = vmor %vm798_vm10, %vm799_vm9 }
 0x9bc   :  { %v886_v10 = vmul.f32 %v2522_v63, %v885_v6  ;;  %v795_v20 = vsub.f32 1.0, %v794_v55  ;;  %v930_v6 = vrot.slane %v3068_v61, 3 }
 0x9bd   :  { %v871_v16 = vmul.f32 %v2524_v1, %v870_v28  ;;  %v2686_v28 = vmov 5  }
 0x9be   :  { %v887_v53 = vadd.f32 %v2522_v63, %v886_v10  ;;  %v796_v37 = vmul.f32 %v2526_v9, %v795_v20  ;;  %2430 = vset.pattern.permute.xlu1 %v2686_v28  ;;  %2431 = vset.pattern.permute.xlu2 %v2686_v28 }
 0x9bf   :  { %v872_v18 = vadd.f32 %v2524_v1, %v871_v16 }
 0x9c0   :  { %v891_v31 = vsel %vm890_vm2, %v2522_v63, %v887_v53  ;;  %v797_v14 = vadd.f32 %v2526_v9, %v796_v37  ;;  %v2687_v37 = vmov 2  }
 0x9c1   :  { %v876_v34 = vsel %vm875_vm6, %v2524_v1, %v872_v18  ;;  %v3086_v12 = vsel %vm893_vm7, %v895_v36, %v891_v31  ;;  %v840_v18 = vrot.slane %v3068_v61, 6  ;;  %v931_v36 = vrot.slane %v3068_v61, 4  ;;  %2433 = vset.pattern.permute.xlu0 %v2687_v37 }
 0x9c2   :  { %v881_v49 = vsel %vm878_vm8, %v880_v38, %v876_v34  ;;  %v801_v63 = vsel %vm800_vm11, %v2526_v9, %v797_v14 }
 0x9f5   :  { %v809_v59 = vpop.permute.xlu2 %808 }
 0x9f6   :  { %v814_v0 = vmul.f32 %v809_v59, %v3082_v60  ;;  %v802_v59 = vand.u32 2147483647, %v777_v56 }
 0x9f8   :  { %818 = vrot.lane.b32.xlu1 %v814_v0, %s2678_s30  ;;  %v805_v0 = vor.u32 1.1754944e-38, %v804_v22  ;;  %vm803_vm12 = vcmp.eq.f32.partialorder %v802_v59, 8.507059e+37  ;;  %v919_v59 = vsub.f32 1.0, %v3086_v12 }
 0x9fa   :  { %v3091_v62 = vsel %vm803_vm12, %v805_v0, %v801_v63 }
 0xa0c   :  { %v901_v23 = vpop.permute.xlu0 %900  ;;  %v899_v48 = vpop.permute.xlu1 %898 }
 0xa0d   :  { %v905_v47 = vmul.f32 %v901_v23, %v3086_v12  ;;  %v904_v21 = vmul.f32 %v899_v48, %v881_v49  ;;  %v918_v48 = vsub.f32 1.0, %v881_v49 }
 0xa0f   :  { %910 = vrot.lane.b32.xlu2 %v905_v47, %s2678_s30  ;;  %908 = vrot.lane.b32.xlu0 %v904_v21, %s2678_s30 }
 0xa14   :  { %v811_v1 = vpop.permute.xlu1 %810 }
 0xa15   :  { %v815_v3 = vmul.f32 %v811_v1, %v3091_v62 }
 0xa17   :  { %820 = vrot.lane.b32.xlu0 %v815_v3, %s2678_s30 }
 0xa1f   :  { %932 = vrot.lane.b32.xlu0 %v930_v6, %s2676_s23 }
 0xa69   :  { %v911_v10 = vpop.permute.xlu2 %910 }
 0xa6a   :  { %v915_v56 = vadd.f32 %v911_v10, %v2915_v40  ;;  %v819_v9 = vpop.permute.xlu1 %818 }
 0xa6b   :  { %v824_v16 = vadd.f32 %v819_v9, %v2902_v33  ;;  %v828_v9 = vsub.f32 1.0, %v3082_v60 }
 0xa6c   :  { %2527 = vtanh.f32 %v915_v56 }
 0xa6d   :  { %2529 = vtanh.f32 %v824_v16  ;;  %v829_v16 = vsub.f32 1.0, %v3091_v62 }
 0xa72   :  { %v2528_v55 = vpop.eup %2527 }
 0xa73   :  { %v2530_v53 = vpop.eup %2529  ;;  %924 = vrot.lane.b32.xlu1 %v2528_v55, %s2680_s8 }
 0xa74   :  { %832 = vrot.lane.b32.xlu0 %v2530_v53, %s2680_s8 }
 0xa7b   :  { %975 = vperm.xlu1 %2430, %v2958_v27  }
 0xa7c   :  { %844 = vrot.lane.b32.xlu0 %v841_v2, %s2683_s12 }
 0xa81   :  { %v909_v20 = vpop.permute.xlu0 %908 }
 0xa82   :  { %v914_v13 = vadd.f32 %v909_v20, %v2905_v35 }
 0xa83   :  { %842 = vrot.lane.b32.xlu1 %v840_v18, %s2683_s12 }
 0xa84   :  { %2531 = vtanh.f32 %v914_v13 }
 0xa89   :  { %v821_v26 = vpop.permute.xlu0 %820 }
 0xa8a   :  { %v2532_v25 = vpop.eup %2531  ;;  %v825_v31 = vadd.f32 %v821_v26, %v2912_v58 }
 0xa8b   :  { %922 = vrot.lane.b32.xlu2 %v2532_v25, %s2680_s8 }
 0xa8c   :  { %2533 = vtanh.f32 %v825_v31 }
 0xa91   :  { %v933_v38 = vpop.permute.xlu0 %932 }
 0xa92   :  { %v2534_v34 = vpop.eup %2533  ;;  %v938_v22 = vmul.f32 %v933_v38, %v881_v49 }
 0xa93   :  { %934 = vrot.lane.b32.xlu2 %v931_v36, %s2676_s23 }
 0xa9b   :  { %834 = vrot.lane.b32.xlu2 %v2534_v34, %s2680_s8 }
 0xaa3   :  { %962 = vperm.xlu2 %2431, %v2949_v15  }
 0xaab   :  { %2432 = vset.pattern.permute.xlu2 %v2687_v37 }
 0xaac   :  { %943 = vperm.xlu2 %2432, %v2949_v15  }
 0xae5   :  { %v925_v23 = vpop.permute.xlu1 %924  ;;  %v923_v47 = vpop.permute.xlu2 %922 }
 0xae6   :  { %v833_v21 = vpop.permute.xlu0 %832  ;;  %v928_v14 = vmul.f32 %v923_v47, %v918_v48  ;;  %v929_v6 = vmul.f32 %v925_v23, %v919_v59 }
 0xae7   :  { %v838_v2 = vmul.f32 %v833_v21, %v828_v9 }
 0xae8   :  { %v940_v3 = vadd.f32 %v938_v22, %v928_v14 }
 0xaea   :  { %v967_v10 = vrot.slane %v940_v3, 5 }
 0xaed   :  { %v3115_v63 = vpop.permute.xlu1 %975  ;;  %v935_v0 = vpop.permute.xlu2 %934 }
 0xaee   :  { %v978_v1 = vmul.f32 %v3115_v63, %v3068_v61  ;;  %v939_v28 = vmul.f32 %v935_v0, %v3086_v12  ;;  %v845_v49 = vpop.permute.xlu0 %844 }
 0xaef   :  { %v849_v12 = vmul.f32 %v845_v49, %v3091_v62 }
 0xaf0   :  { %980 = vrot.lane.b32.xlu0 %v978_v1, %s2680_s8  ;;  %v941_v15 = vadd.f32 %v939_v28, %v929_v6 }
 0xaf2   :  { %v968_v56 = vrot.slane %v941_v15, 4 }
 0xaf4   :  { %v969_v55 = vsel %vm453_vm3, %v968_v56, %v967_v10 }
 0xaf5   :  { %v843_v53 = vpop.permute.xlu1 %842  ;;  %v835_v18 = vpop.permute.xlu2 %834  ;;  %970 = vrot.lane.b32.xlu1 %v969_v55, %s2682_s11 }
 0xaf6   :  { %v848_v20 = vmul.f32 %v843_v53, %v3082_v60  ;;  %v839_v13 = vmul.f32 %v835_v18, %v829_v16 }
 0xaf8   :  { %v850_v25 = vadd.f32 %v848_v20, %v838_v2  ;;  %956 = vperm.xlu0 %2433, %v2958_v27   ;;  %v851_v26 = vadd.f32 %v849_v12, %v839_v13 }
 0xafa   :  { %v948_v31 = vrot.slane %v850_v25, 2  ;;  %v949_v36 = vrot.slane %v851_v26, 1 }
 0xafc   :  { %v950_v34 = vsel %vm453_vm3, %v949_v36, %v948_v31 }
 0xafd   :  { %951 = vrot.lane.b32.xlu1 %v950_v34, %s2680_s8  ;;  %v3130_v37 = vpop.permute.xlu2 %962 }
 0xb06   :  { %v3134_v62 = vpop.permute.xlu2 %943 }
 0xb62   :  { %v981_v47 = vpop.permute.xlu0 %980 }
 0xb67   :  { %v971_v38 = vpop.permute.xlu1 %970 }
 0xb68   :  { %v973_v23 = vmul.f32 %v971_v38, %v3130_v37 }
 0xb6a   :  { %v983_v60 = vadd.f32 %v981_v47, %v973_v23  ;;  %v3136_v21 = vpop.permute.xlu0 %956 }
 0xb6b   :  { %v959_v22 = vmul.f32 %v3136_v21, %v3068_v61 }
 0xb6c   :  { %985 = vrot.lane.b32.xlu2 %v983_v60, %s2683_s12 }
 0xb6f   :  { %v952_v48 = vpop.permute.xlu1 %951 }
 0xb70   :  { %v954_v14 = vmul.f32 %v952_v48, %v3134_v62 }
 0xb72   :  { %v960_v59 = vadd.f32 %v959_v22, %v954_v14 }
 0xbc6   :  { %v986_v0 = vpop.permute.xlu2 %985 }
 0xbc7   :  { %v3142_v1 = vsel %vm490_vm4, %v960_v59, %v986_v0 }
 0xbc8   :  { %2379 = vmatmul.msk.f32.vlgmr.msrb.gmra.mxu3 %vm74_vm1, %v3142_v1 }
 0xc4b   :  { %v1009_v3 = vpop.f32.mrf.mxu3 }
 0xc4c   :  { %v1012_v6 = vadd.f32 %v1009_v3, %v2874_v54  ;;  %v1102_v28 = vadd.f32 %v1009_v3, %v2878_v57 }
 0xc4e   :  { %v1015_v15 = vrot.slane %v1012_v6, 6  ;;  %v1104_v10 = vrot.slane %v1102_v28, 4  ;;  %v1105_v56 = vrot.slane %v1102_v28, 5  ;;  %v1014_v61 = vrot.slane %v1012_v6, 5 }
 0xc50   :  { %1150 = vrot.lane.b32.xlu2 %v1105_v56, %s2677_s4  ;;  %1148 = vrot.lane.b32.xlu1 %v1104_v10, %s2677_s4  ;;  %v1109_v9 = vadd.f32 %v1105_v56, %v2915_v40  ;;  %v1108_v53 = vadd.f32 %v1104_v10, %v2905_v35  ;;  %v1018_v12 = vadd.f32 %v1014_v61, %v2902_v33 }
 0xc51   :  { %1060 = vrot.lane.b32.xlu0 %v1015_v15, %s2677_s4  ;;  %v1019_v13 = vadd.f32 %v1015_v15, %v2912_v58 }
 0xc52   :  { %v2383_v49 = vmul.f32 -1.442695, %v1109_v9  ;;  %v2382_v18 = vmul.f32 -1.442695, %v1108_v53  ;;  %v2380_v26 = vmul.f32 -1.442695, %v1018_v12 }
 0xc53   :  { %v2381_v31 = vmul.f32 -1.442695, %v1019_v13 }
 0xc54   :  { %2535 = vpow2.f32 %v2383_v49 }
 0xc58   :  { %1058 = vrot.lane.b32.xlu1 %v1014_v61, %s2677_s4 }
 0xc5a   :  { %v2536_v16 = vpop.eup %2535 }
 0xc5b   :  { %v1117_v55 = vadd.f32 1.0, %v2536_v16 }
 0xc5d   :  { %2537 = vrcp.f32 %v1117_v55  ;;  %v1144_v47 = vand.u32 2147483648, %v1117_v55  ;;  %vm1138_vm14 = vweird.f32 %v1117_v55  ;;  %v1142_v60 = vand.u32 2147483647, %v1117_v55 }
 0xc5e   :  { %2539 = vpow2.f32 %v2382_v18 }
 0xc5f   :  { %2541 = vpow2.f32 %v2380_v26  ;;  %v1145_v59 = vor.u32 1.1754944e-38, %v1144_v47  ;;  %vm1143_vm2 = vcmp.eq.f32.partialorder %v1142_v60, 8.507059e+37 }
 0xc60   :  { %2543 = vpow2.f32 %v2381_v31 }
 0xc63   :  { %v2538_v2 = vpop.eup %2537 }
 0xc64   :  { %v1134_v20 = vmul.f32 %v2538_v2, %v1117_v55  ;;  %v2540_v34 = vpop.eup %2539  ;;  %vm1139_vm13 = vweird.f32 %v2538_v2 }
 0xc65   :  { %v1116_v38 = vadd.f32 1.0, %v2540_v34  ;;  %vm1140_vm15 = vmor %vm1138_vm14, %vm1139_vm13  ;;  %v2542_v48 = vpop.eup %2541 }
 0xc66   :  { %v1135_v25 = vsub.f32 1.0, %v1134_v20  ;;  %v2544_v22 = vpop.eup %2543  ;;  %v1026_v0 = vadd.f32 1.0, %v2542_v48 }
 0xc67   :  { %2545 = vrcp.f32 %v1116_v38  ;;  %v1027_v28 = vadd.f32 1.0, %v2544_v22  ;;  %v1129_v12 = vand.u32 2147483648, %v1116_v38  ;;  %vm1123_vm6 = vweird.f32 %v1116_v38 }
 0xc68   :  { %v1136_v36 = vmul.f32 %v2538_v2, %v1135_v25  ;;  %2547 = vrcp.f32 %v1026_v0  ;;  %v1127_v13 = vand.u32 2147483647, %v1116_v38  ;;  %vm1033_vm11 = vweird.f32 %v1026_v0 }
 0xc69   :  { %2549 = vrcp.f32 %v1027_v28  ;;  %v1039_v22 = vand.u32 2147483648, %v1026_v0  ;;  %vm1048_vm12 = vweird.f32 %v1027_v28 }
 0xc6a   :  { %v1137_v23 = vadd.f32 %v2538_v2, %v1136_v36  ;;  %v1130_v36 = vor.u32 1.1754944e-38, %v1129_v12  ;;  %vm1128_vm8 = vcmp.eq.f32.partialorder %v1127_v13, 8.507059e+37 }
 0xc6c   :  { %v1141_v14 = vsel %vm1140_vm15, %v2538_v2, %v1137_v23 }
 0xc6d   :  { %v3156_v6 = vsel %vm1143_vm2, %v1145_v59, %v1141_v14  ;;  %v2546_v10 = vpop.eup %2545  ;;  %v1054_v14 = vand.u32 2147483648, %v1027_v28  ;;  %v1037_v59 = vand.u32 2147483647, %v1026_v0 }
 0xc6e   :  { %v1119_v56 = vmul.f32 %v2546_v10, %v1116_v38  ;;  %v2548_v61 = vpop.eup %2547  ;;  %vm1124_vm5 = vweird.f32 %v2546_v10  ;;  %v1052_v38 = vand.u32 2147483647, %v1027_v28 }
 0xc6f   :  { %v2550_v49 = vpop.eup %2549  ;;  %v1029_v53 = vmul.f32 %v2548_v61, %v1026_v0  ;;  %vm1125_vm7 = vmor %vm1123_vm6, %vm1124_vm5  ;;  %vm1034_vm9 = vweird.f32 %v2548_v61  ;;  %vm1038_vm2 = vcmp.eq.f32.partialorder %v1037_v59, 8.507059e+37  ;;  %v1180_v0 = vrot.slane %v3142_v1, 4 }
 0xc70   :  { %v1120_v9 = vsub.f32 1.0, %v1119_v56  ;;  %v1044_v55 = vmul.f32 %v2550_v49, %v1027_v28  ;;  %vm1049_vm10 = vweird.f32 %v2550_v49  ;;  %vm1035_vm13 = vmor %vm1033_vm11, %vm1034_vm9  ;;  %v1055_v56 = vor.u32 1.1754944e-38, %v1054_v14 }
 0xc71   :  { %v1030_v20 = vsub.f32 1.0, %v1029_v53  ;;  %vm1050_vm14 = vmor %vm1048_vm12, %vm1049_vm10  ;;  %vm1053_vm15 = vcmp.eq.f32.partialorder %v1052_v38, 8.507059e+37  ;;  %v2689_v38 = vmov 3  }
 0xc72   :  { %v1121_v16 = vmul.f32 %v2546_v10, %v1120_v9  ;;  %v1045_v18 = vsub.f32 1.0, %v1044_v55  ;;  %v1040_v9 = vor.u32 1.1754944e-38, %v1039_v22  ;;  %2436 = vset.pattern.permute.xlu1 %v2689_v38 }
 0xc73   :  { %v1031_v31 = vmul.f32 %v2548_v61, %v1030_v20 }
 0xc74   :  { %v1122_v2 = vadd.f32 %v2546_v10, %v1121_v16  ;;  %v1046_v26 = vmul.f32 %v2550_v49, %v1045_v18 }
 0xc75   :  { %v1032_v48 = vadd.f32 %v2548_v61, %v1031_v31 }
 0xc76   :  { %v1126_v25 = vsel %vm1125_vm7, %v2546_v10, %v1122_v2  ;;  %v1047_v60 = vadd.f32 %v2550_v49, %v1046_v26 }
 0xc77   :  { %v3160_v23 = vsel %vm1128_vm8, %v1130_v36, %v1126_v25 }
 0xcaa   :  { %v1151_v3 = vpop.permute.xlu2 %1150 }
 0xcab   :  { %v1155_v15 = vmul.f32 %v1151_v3, %v3156_v6  ;;  %v1051_v3 = vsel %vm1050_vm14, %v2550_v49, %v1047_v60  ;;  %v2688_v49 = vmov 4  }
 0xcac   :  { %v3164_v16 = vsel %vm1053_vm15, %v1055_v56, %v1051_v3  ;;  %2434 = vset.pattern.permute.xlu0 %v2688_v49 }
 0xcad   :  { %1160 = vrot.lane.b32.xlu1 %v1155_v15, %s2678_s30  ;;  %v1036_v15 = vsel %vm1035_vm13, %v2548_v61, %v1032_v48  ;;  %v1090_v61 = vrot.slane %v3142_v1, 5  ;;  %v1091_v48 = vrot.slane %v3142_v1, 6 }
 0xcae   :  { %v3166_v53 = vsel %vm1038_vm2, %v1040_v9, %v1036_v15 }
 0xcc2   :  { %v1149_v34 = vpop.permute.xlu1 %1148 }
 0xcc3   :  { %v1154_v47 = vmul.f32 %v1149_v34, %v3160_v23  ;;  %v1061_v10 = vpop.permute.xlu0 %1060 }
 0xcc4   :  { %v1065_v2 = vmul.f32 %v1061_v10, %v3164_v16  ;;  %v1168_v10 = vsub.f32 1.0, %v3160_v23 }
 0xcc5   :  { %1158 = vrot.lane.b32.xlu2 %v1154_v47, %s2678_s30  ;;  %v2671_v47 = vld [vmem:[%s3537_s2] sm:$0x3] }
 0xcca   :  { %v1059_v55 = vpop.permute.xlu1 %1058 }
 0xccb   :  { %v1064_v28 = vmul.f32 %v1059_v55, %v3166_v53  ;;  %v1169_v55 = vsub.f32 1.0, %v3156_v6 }
 0xccd   :  { %1070 = vrot.lane.b32.xlu2 %v1065_v2, %s2678_s30  ;;  %1068 = vrot.lane.b32.xlu0 %v1064_v28, %s2678_s30 }
 0xcd5   :  { %1181 = vrot.lane.b32.xlu2 %v1180_v0, %s2676_s23 }
 0xcdd   :  { %1092 = vrot.lane.b32.xlu2 %v1090_v61, %s2683_s12 }
 0xd1f   :  { %v1161_v18 = vpop.permute.xlu1 %1160  ;;  %v1159_v20 = vpop.permute.xlu2 %1158 }
 0xd20   :  { %v1165_v12 = vadd.f32 %v1161_v18, %v2915_v40  ;;  %v1164_v13 = vadd.f32 %v1159_v20, %v2905_v35 }
 0xd22   :  { %2551 = vtanh.f32 %v1165_v12 }
 0xd23   :  { %2553 = vtanh.f32 %v1164_v13 }
 0xd27   :  { %v1071_v31 = vpop.permute.xlu2 %1070 }
 0xd28   :  { %v2552_v25 = vpop.eup %2551  ;;  %v1075_v36 = vadd.f32 %v1071_v31, %v2912_v58 }
 0xd29   :  { %v2554_v26 = vpop.eup %2553  ;;  %1174 = vrot.lane.b32.xlu0 %v2552_v25, %s2680_s8 }
 0xd2a   :  { %1172 = vrot.lane.b32.xlu1 %v2554_v26, %s2680_s8  ;;  %2555 = vtanh.f32 %v1075_v36  ;;  %v1078_v36 = vsub.f32 1.0, %v3166_v53 }
 0xd2f   :  { %v1182_v3 = vpop.permute.xlu2 %1181 }
 0xd30   :  { %v2556_v34 = vpop.eup %2555  ;;  %v1187_v9 = vmul.f32 %v1182_v3, %v3160_v23 }
 0xd31   :  { %1224 = vperm.xlu0 %2434, %v2958_v27  }
 0xd32   :  { %1183 = vrot.lane.b32.xlu1 %v1090_v61, %s2676_s23 }
 0xd37   :  { %v1093_v20 = vpop.permute.xlu2 %1092 }
 0xd39   :  { %1211 = vperm.xlu0 %2434, %v2671_v47  }
 0xd3a   :  { %1084 = vrot.lane.b32.xlu1 %v2556_v34, %s2680_s8 }
 0xd3f   :  { %v1069_v60 = vpop.permute.xlu0 %1068 }
 0xd40   :  { %v1074_v14 = vadd.f32 %v1069_v60, %v2902_v33 }
 0xd41   :  { %2435 = vset.pattern.permute.xlu0 %v2689_v38 }
 0xd42   :  { %1094 = vrot.lane.b32.xlu1 %v1091_v48, %s2683_s12  ;;  %2557 = vtanh.f32 %v1074_v14  ;;  %1192 = vperm.xlu0 %2435, %v2671_v47   ;;  %v1098_v47 = vmul.f32 %v1093_v20, %v3166_v53 }
 0xd48   :  { %v2558_v22 = vpop.eup %2557 }
 0xd49   :  { %1082 = vrot.lane.b32.xlu2 %v2558_v22, %s2680_s8 }
 0xd4a   :  { %2438 = vset.pattern.permute.xlu0 %v2736_v8 }
 0xd9b   :  { %v1175_v59 = vpop.permute.xlu0 %1174 }
 0xd9c   :  { %v1173_v15 = vpop.permute.xlu1 %1172  ;;  %v1179_v49 = vmul.f32 %v1175_v59, %v1169_v55 }
 0xd9d   :  { %v1178_v56 = vmul.f32 %v1173_v15, %v1168_v10 }
 0xd9f   :  { %v1189_v61 = vadd.f32 %v1187_v9, %v1178_v56 }
 0xda1   :  { %v1216_v13 = vrot.slane %v1189_v61, 4 }
 0xda3   :  { %v3195_v2 = vpop.permute.xlu0 %1224  ;;  %v1083_v31 = vpop.permute.xlu2 %1082 }
 0xda4   :  { %v1184_v28 = vpop.permute.xlu1 %1183  ;;  %v1227_v0 = vmul.f32 %v3195_v2, %v3142_v1  ;;  %v1088_v34 = vmul.f32 %v1083_v31, %v1078_v36 }
 0xda5   :  { %v1188_v18 = vmul.f32 %v1184_v28, %v3156_v6  ;;  %v1079_v6 = vsub.f32 1.0, %v3164_v16 }
 0xda6   :  { %1229 = vrot.lane.b32.xlu1 %v1227_v0, %s2680_s8  ;;  %v1100_v48 = vadd.f32 %v1098_v47, %v1088_v34 }
 0xda7   :  { %v1190_v12 = vadd.f32 %v1188_v18, %v1179_v49 }
 0xda8   :  { %v1197_v59 = vrot.slane %v1100_v48, 3 }
 0xda9   :  { %v1217_v25 = vrot.slane %v1190_v12, 3 }
 0xdab   :  { %v1218_v23 = vsel %vm453_vm3, %v1217_v25, %v1216_v13  ;;  %v3211_v10 = vpop.permute.xlu0 %1211 }
 0xdac   :  { %v1085_v26 = vpop.permute.xlu1 %1084  ;;  %1219 = vrot.lane.b32.xlu2 %v1218_v23, %s2682_s11 }
 0xdad   :  { %v1089_v14 = vmul.f32 %v1085_v26, %v1079_v6 }
 0xdae   :  { %1205 = vperm.xlu1 %2436, %v2958_v27  }
 0xdb4   :  { %v1095_v60 = vpop.permute.xlu1 %1094 }
 0xdb5   :  { %v1099_v22 = vmul.f32 %v1095_v60, %v3164_v16 }
 0xdb6   :  { %2437 = vset.pattern.permute.xlu1 %v2736_v8  ;;  %v3217_v8 = vpop.permute.xlu0 %1192 }
 0xdb7   :  { %v1101_v38 = vadd.f32 %v1099_v22, %v1089_v14 }
 0xdb9   :  { %v1198_v3 = vrot.slane %v1101_v38, 2 }
 0xdbb   :  { %v1199_v15 = vsel %vm453_vm3, %v1198_v3, %v1197_v59 }
 0xdbc   :  { %1200 = vrot.lane.b32.xlu2 %v1199_v15, %s2680_s8 }
 0xe06   :  { %v1220_v27 = vpop.permute.xlu2 %1219 }
 0xe07   :  { %v1222_v53 = vmul.f32 %v1220_v27, %v3211_v10 }
 0xe16   :  { %v1201_v55 = vpop.permute.xlu2 %1200 }
 0xe17   :  { %v1203_v0 = vmul.f32 %v1201_v55, %v3217_v8 }
 0xe18   :  { %v1230_v56 = vpop.permute.xlu1 %1229 }
 0xe19   :  { %v1232_v9 = vadd.f32 %v1230_v56, %v1222_v53 }
 0xe1b   :  { %1234 = vrot.lane.b32.xlu2 %v1232_v9, %s2683_s12 }
 0xe20   :  { %v3215_v16 = vpop.permute.xlu1 %1205 }
 0xe21   :  { %v1208_v28 = vmul.f32 %v3215_v16, %v3142_v1 }
 0xe23   :  { %v1209_v61 = vadd.f32 %v1208_v28, %v1203_v0 }
 0xe75   :  { %v1235_v49 = vpop.permute.xlu2 %1234 }
 0xe76   :  { %v3223_v18 = vsel %vm490_vm4, %v1209_v61, %v1235_v49 }
 0xe77   :  { %2384 = vmatmul.msk.f32.vlgmr.msrb.gmra.mxu0 %vm74_vm1, %v3223_v18 }
 0xef4   :  { %v1258_v20 = vpop.f32.mrf.mxu0 }
 0xef5   :  { %v1261_v12 = vadd.f32 %v1258_v20, %v2874_v54  ;;  %v1351_v13 = vadd.f32 %v1258_v20, %v2878_v57 }
 0xef7   :  { %v1263_v25 = vrot.slane %v1261_v12, 4  ;;  %v1353_v23 = vrot.slane %v1351_v13, 5  ;;  %v1354_v26 = vrot.slane %v1351_v13, 6  ;;  %v1264_v1 = vrot.slane %v1261_v12, 5 }
 0xef9   :  { %1399 = vrot.lane.b32.xlu0 %v1354_v26, %s2677_s4  ;;  %1397 = vrot.lane.b32.xlu1 %v1353_v23, %s2677_s4  ;;  %v1267_v31 = vadd.f32 %v1263_v25, %v2902_v33  ;;  %v1358_v6 = vadd.f32 %v1354_v26, %v2915_v40  ;;  %v1357_v60 = vadd.f32 %v1353_v23, %v2905_v35 }
 0xefa   :  { %1307 = vrot.lane.b32.xlu2 %v1263_v25, %s2677_s4  ;;  %v1268_v59 = vadd.f32 %v1264_v1, %v2912_v58 }
 0xefb   :  { %v2385_v36 = vmul.f32 -1.442695, %v1267_v31  ;;  %v2388_v14 = vmul.f32 -1.442695, %v1358_v6  ;;  %v2387_v22 = vmul.f32 -1.442695, %v1357_v60 }
 0xefc   :  { %v2386_v15 = vmul.f32 -1.442695, %v1268_v59 }
 0xefd   :  { %2559 = vpow2.f32 %v2385_v36 }
 0xf01   :  { %1309 = vrot.lane.b32.xlu1 %v1264_v1, %s2677_s4 }
 0xf03   :  { %v2560_v34 = vpop.eup %2559 }
 0xf04   :  { %v1275_v47 = vadd.f32 1.0, %v2560_v34 }
 0xf06   :  { %2561 = vrcp.f32 %v1275_v47  ;;  %v1288_v0 = vand.u32 2147483648, %v1275_v47  ;;  %vm1282_vm6 = vweird.f32 %v1275_v47  ;;  %v1286_v61 = vand.u32 2147483647, %v1275_v47 }
 0xf07   :  { %2563 = vpow2.f32 %v2388_v14 }
 0xf08   :  { %2565 = vpow2.f32 %v2387_v22  ;;  %v1289_v12 = vor.u32 1.1754944e-38, %v1288_v0  ;;  %vm1287_vm8 = vcmp.eq.f32.partialorder %v1286_v61, 8.507059e+37 }
 0xf09   :  { %2567 = vpow2.f32 %v2386_v15 }
 0xf0c   :  { %v2562_v48 = vpop.eup %2561 }
 0xf0d   :  { %v1278_v38 = vmul.f32 %v2562_v48, %v1275_v47  ;;  %v2564_v27 = vpop.eup %2563  ;;  %vm1283_vm5 = vweird.f32 %v2562_v48 }
 0xf0e   :  { %v2566_v53 = vpop.eup %2565  ;;  %v1366_v9 = vadd.f32 1.0, %v2564_v27  ;;  %vm1284_vm7 = vmor %vm1282_vm6, %vm1283_vm5 }
 0xf0f   :  { %v1279_v3 = vsub.f32 1.0, %v1278_v38  ;;  %v1365_v55 = vadd.f32 1.0, %v2566_v53  ;;  %v2568_v49 = vpop.eup %2567 }
 0xf10   :  { %2569 = vrcp.f32 %v1366_v9  ;;  %v1276_v13 = vadd.f32 1.0, %v2568_v49  ;;  %v1393_v59 = vand.u32 2147483648, %v1366_v9  ;;  %vm1387_vm11 = vweird.f32 %v1366_v9 }
 0xf11   :  { %v1280_v56 = vmul.f32 %v2562_v48, %v1279_v3  ;;  %2571 = vrcp.f32 %v1365_v55  ;;  %v1391_v27 = vand.u32 2147483647, %v1366_v9  ;;  %v1378_v53 = vand.u32 2147483648, %v1365_v55 }
 0xf12   :  { %2573 = vrcp.f32 %v1276_v13  ;;  %vm1372_vm13 = vweird.f32 %v1365_v55  ;;  %v1394_v0 = vor.u32 1.1754944e-38, %v1393_v59  ;;  %vm1297_vm6 = vweird.f32 %v1276_v13 }
 0xf13   :  { %v1281_v28 = vadd.f32 %v2562_v48, %v1280_v56  ;;  %v1376_v56 = vand.u32 2147483647, %v1365_v55  ;;  %vm1392_vm15 = vcmp.eq.f32.partialorder %v1391_v27, 8.507059e+37 }
 0xf15   :  { %v1285_v20 = vsel %vm1284_vm7, %v2562_v48, %v1281_v28  ;;  %vm1377_vm2 = vcmp.eq.f32.partialorder %v1376_v56, 8.507059e+37 }
 0xf16   :  { %v3237_v23 = vsel %vm1287_vm8, %v1289_v12, %v1285_v20  ;;  %v2570_v26 = vpop.eup %2569  ;;  %v1379_v20 = vor.u32 1.1754944e-38, %v1378_v53 }
 0xf17   :  { %v2572_v31 = vpop.eup %2571  ;;  %v1383_v36 = vmul.f32 %v2570_v26, %v1366_v9  ;;  %vm1388_vm9 = vweird.f32 %v2570_v26  ;;  %v1303_v9 = vand.u32 2147483648, %v1276_v13 }
 0xf18   :  { %v1368_v34 = vmul.f32 %v2572_v31, %v1365_v55  ;;  %v2574_v60 = vpop.eup %2573  ;;  %vm1373_vm10 = vweird.f32 %v2572_v31  ;;  %vm1389_vm12 = vmor %vm1387_vm11, %vm1388_vm9  ;;  %v1301_v55 = vand.u32 2147483647, %v1276_v13 }
 0xf19   :  { %v1384_v47 = vsub.f32 1.0, %v1383_v36  ;;  %v1293_v22 = vmul.f32 %v2574_v60, %v1276_v13  ;;  %vm1374_vm14 = vmor %vm1372_vm13, %vm1373_vm10  ;;  %vm1298_vm5 = vweird.f32 %v2574_v60 }
 0xf1a   :  { %v1369_v6 = vsub.f32 1.0, %v1368_v34  ;;  %vm1299_vm7 = vmor %vm1297_vm6, %vm1298_vm5  ;;  %vm1302_vm8 = vcmp.eq.f32.partialorder %v1301_v55, 8.507059e+37 }
 0xf1b   :  { %v1385_v14 = vmul.f32 %v2570_v26, %v1384_v47  ;;  %v1294_v15 = vsub.f32 1.0, %v1293_v22 }
 0xf1c   :  { %v1370_v48 = vmul.f32 %v2572_v31, %v1369_v6 }
 0xf1d   :  { %v1386_v38 = vadd.f32 %v2570_v26, %v1385_v14  ;;  %v1295_v49 = vmul.f32 %v2574_v60, %v1294_v15 }
 0xf1e   :  { %v1371_v3 = vadd.f32 %v2572_v31, %v1370_v48 }
 0xf1f   :  { %v1390_v28 = vsel %vm1389_vm12, %v2570_v26, %v1386_v38  ;;  %v1296_v6 = vadd.f32 %v2574_v60, %v1295_v49  ;;  %v1340_v38 = vrot.slane %v3223_v18, 5  ;;  %v1429_v49 = vrot.slane %v3223_v18, 6 }
 0xf20   :  { %v1375_v61 = vsel %vm1374_vm14, %v2572_v31, %v1371_v3  ;;  %v1304_v31 = vor.u32 1.1754944e-38, %v1303_v9 }
 0xf21   :  { %v1380_v34 = vsel %vm1377_vm2, %v1379_v20, %v1375_v61  ;;  %v1300_v26 = vsel %vm1299_vm7, %v2574_v60, %v1296_v6 }
 0xf22   :  { %v1305_v48 = vsel %vm1302_vm8, %v1304_v31, %v1300_v26 }
 0xf54   :  { %v1308_v25 = vpop.permute.xlu2 %1307 }
 0xf55   :  { %v1313_v1 = vmul.f32 %v1308_v25, %v3237_v23  ;;  %v1395_v25 = vsel %vm1392_vm15, %v1394_v0, %v1390_v28 }
 0xf56   :  { %v1418_v31 = vsub.f32 1.0, %v1395_v25 }
 0xf57   :  { %1317 = vrot.lane.b32.xlu1 %v1313_v1, %s2678_s30 }
 0xf6b   :  { %v1400_v12 = vpop.permute.xlu0 %1399  ;;  %v1398_v36 = vpop.permute.xlu1 %1397 }
 0xf6c   :  { %v1404_v1 = vmul.f32 %v1400_v12, %v1395_v25  ;;  %v1403_v47 = vmul.f32 %v1398_v36, %v1380_v34  ;;  %v1339_v12 = vrot.slane %v3223_v18, 4 }
 0xf6e   :  { %1409 = vrot.lane.b32.xlu2 %v1404_v1, %s2678_s30  ;;  %1407 = vrot.lane.b32.xlu0 %v1403_v47, %s2678_s30  ;;  %v1460_v1 = vmul.f32 %v3223_v18, %v3215_v16  ;;  %v1417_v47 = vsub.f32 1.0, %v1380_v34 }
 0xf73   :  { %v1310_v14 = vpop.permute.xlu1 %1309 }
 0xf74   :  { %v1314_v22 = vmul.f32 %v1310_v14, %v1305_v48 }
 0xf76   :  { %1319 = vrot.lane.b32.xlu0 %v1314_v22, %s2678_s30 }
 0xf7e   :  { %1430 = vrot.lane.b32.xlu0 %v1340_v38, %s2676_s23 }
 0xfc8   :  { %v1410_v59 = vpop.permute.xlu2 %1409 }
 0xfc9   :  { %v1414_v3 = vadd.f32 %v1410_v59, %v2915_v40  ;;  %v1318_v15 = vpop.permute.xlu1 %1317 }
 0xfca   :  { %v1323_v13 = vadd.f32 %v1318_v15, %v2902_v33 }
 0xfcb   :  { %2575 = vtanh.f32 %v1414_v3 }
 0xfcc   :  { %2577 = vtanh.f32 %v1323_v13 }
 0xfd1   :  { %v2576_v27 = vpop.eup %2575 }
 0xfd2   :  { %1423 = vrot.lane.b32.xlu1 %v2576_v27, %s2680_s8  ;;  %v2578_v60 = vpop.eup %2577 }
 0xfda   :  { %1331 = vrot.lane.b32.xlu1 %v2578_v60, %s2680_s8 }
 0xfe0   :  { %v1408_v53 = vpop.permute.xlu0 %1407 }
 0xfe1   :  { %v1413_v56 = vadd.f32 %v1408_v53, %v2905_v35  ;;  %v1327_v53 = vsub.f32 1.0, %v3237_v23 }
 0xfe2   :  { %1343 = vrot.lane.b32.xlu1 %v1340_v38, %s2683_s12 }
 0xfe3   :  { %2579 = vtanh.f32 %v1413_v56 }
 0xfe8   :  { %v1320_v28 = vpop.permute.xlu0 %1319 }
 0xfe9   :  { %v2580_v0 = vpop.eup %2579  ;;  %v1324_v61 = vadd.f32 %v1320_v28, %v2912_v58 }
 0xfea   :  { %1421 = vrot.lane.b32.xlu2 %v2580_v0, %s2680_s8  ;;  %v1328_v0 = vsub.f32 1.0, %v1305_v48 }
 0xfeb   :  { %2581 = vtanh.f32 %v1324_v61 }
 0xff0   :  { %v1431_v6 = vpop.permute.xlu0 %1430 }
 0xff1   :  { %v2582_v20 = vpop.eup %2581  ;;  %v1436_v26 = vmul.f32 %v1431_v6, %v1380_v34 }
 0xff2   :  { %1333 = vrot.lane.b32.xlu0 %v2582_v20, %s2680_s8  ;;  %1432 = vrot.lane.b32.xlu2 %v1429_v49, %s2676_s23 }
 0xffa   :  { %1341 = vrot.lane.b32.xlu2 %v1339_v12, %s2683_s12 }
0x1002   :  { %1462 = vrot.lane.b32.xlu2 %v1460_v1, %s2680_s8 }
0x1044   :  { %v1422_v36 = vpop.permute.xlu2 %1421  ;;  %v1424_v55 = vpop.permute.xlu1 %1423 }
0x1045   :  { %v1427_v9 = vmul.f32 %v1422_v36, %v1417_v47  ;;  %v1428_v38 = vmul.f32 %v1424_v55, %v1418_v31 }
0x1047   :  { %v1438_v22 = vadd.f32 %v1436_v26, %v1427_v9 }
0x1049   :  { %v1453_v15 = vrot.slane %v1438_v22, 3 }
0x104c   :  { %v1433_v14 = vpop.permute.xlu2 %1432  ;;  %v1332_v16 = vpop.permute.xlu1 %1331 }
0x104d   :  { %v1437_v59 = vmul.f32 %v1433_v14, %v1395_v25  ;;  %v1337_v34 = vmul.f32 %v1332_v16, %v1327_v53 }
0x104f   :  { %v1439_v3 = vadd.f32 %v1437_v59, %v1428_v38 }
0x1051   :  { %v1454_v13 = vrot.slane %v1439_v3, 2 }
0x1053   :  { %v1455_v27 = vsel %vm453_vm3, %v1454_v13, %v1453_v15 }
0x1054   :  { %1456 = vrot.lane.b32.xlu0 %v1455_v27, %s2682_s11  ;;  %v1342_v60 = vpop.permute.xlu2 %1341  ;;  %v1344_v28 = vpop.permute.xlu1 %1343 }
0x1055   :  { %v1347_v56 = vmul.f32 %v1342_v60, %v3237_v23  ;;  %v1348_v20 = vmul.f32 %v1344_v28, %v1305_v48  ;;  %v1449_v48 = vmul.f32 %v3223_v18, %v3195_v2 }
0x1057   :  { %v1349_v49 = vadd.f32 %v1347_v56, %v1337_v34 }
0x1059   :  { %v1442_v1 = vrot.slane %v1349_v49, 4 }
0x105c   :  { %v1463_v55 = vpop.permute.xlu2 %1462 }
0x1064   :  { %v1334_v61 = vpop.permute.xlu0 %1333 }
0x1065   :  { %v1338_v25 = vmul.f32 %v1334_v61, %v1328_v0 }
0x1067   :  { %v1350_v12 = vadd.f32 %v1348_v20, %v1338_v25 }
0x1069   :  { %v1443_v36 = vrot.slane %v1350_v12, 3 }
0x106b   :  { %v1444_v47 = vsel %vm453_vm3, %v1443_v36, %v1442_v1 }
0x106c   :  { %1445 = vrot.lane.b32.xlu1 %v1444_v47, %s2680_s8 }
0x10c6   :  { %v1457_v6 = vpop.permute.xlu0 %1456 }
0x10c7   :  { %v1459_v9 = vmul.f32 %v1457_v6, %v3217_v8 }
0x10c9   :  { %v1465_v26 = vadd.f32 %v1463_v55, %v1459_v9 }
0x10cb   :  { %1467 = vrot.lane.b32.xlu0 %v1465_v26, %s2683_s12 }
0x10de   :  { %v1446_v23 = vpop.permute.xlu1 %1445 }
0x10df   :  { %v1448_v31 = vmul.f32 %v1446_v23, %v3211_v10 }
0x10e1   :  { %v1450_v14 = vadd.f32 %v1449_v48, %v1448_v31 }
0x113d   :  { %v1468_v22 = vpop.permute.xlu0 %1467 }
0x113e   :  { %v3274_v38 = vsel %vm490_vm4, %v1450_v14, %v1468_v22 }
0x113f   :  { %2389 = vmatmul.msk.f32.vlgmr.msrb.gmra.mxu1 %vm74_vm1, %v3274_v38 }
0x11bc   :  { %v1491_v59 = vpop.f32.mrf.mxu1 }
0x11bd   :  { %v1494_v8 = vadd.f32 %v1491_v59, %v2874_v54  ;;  %v1584_v3 = vadd.f32 %v1491_v59, %v2878_v57 }
0x11bf   :  { %v1496_v15 = vrot.slane %v1494_v8, 3  ;;  %v1586_v13 = vrot.slane %v1584_v3, 6  ;;  %v1587_v27 = vrot.slane %v1584_v3, 7  ;;  %v1497_v2 = vrot.slane %v1494_v8, 4 }
0x11c1   :  { %1632 = vrot.lane.b32.xlu1 %v1587_v27, %s2677_s4  ;;  %1630 = vrot.lane.b32.xlu2 %v1586_v13, %s2677_s4  ;;  %v1590_v10 = vadd.f32 %v1586_v13, %v2905_v35  ;;  %v1501_v16 = vadd.f32 %v1497_v2, %v2912_v58  ;;  %v1591_v34 = vadd.f32 %v1587_v27, %v2915_v40 }
0x11c2   :  { %1540 = vrot.lane.b32.xlu0 %v1496_v15, %s2677_s4  ;;  %v1500_v0 = vadd.f32 %v1496_v15, %v2902_v33 }
0x11c3   :  { %v2392_v18 = vmul.f32 -1.442695, %v1590_v10  ;;  %v2391_v60 = vmul.f32 -1.442695, %v1501_v16  ;;  %v2393_v20 = vmul.f32 -1.442695, %v1591_v34 }
0x11c4   :  { %v2390_v25 = vmul.f32 -1.442695, %v1500_v0 }
0x11c5   :  { %2583 = vpow2.f32 %v2392_v18 }
0x11c6   :  { %2585 = vpow2.f32 %v2391_v60 }
0x11c9   :  { %1542 = vrot.lane.b32.xlu2 %v1497_v2, %s2677_s4 }
0x11cb   :  { %v2584_v53 = vpop.eup %2583 }
0x11cc   :  { %v1598_v56 = vadd.f32 1.0, %v2584_v53  ;;  %v2586_v28 = vpop.eup %2585 }
0x11cd   :  { %v1509_v61 = vadd.f32 1.0, %v2586_v28 }
0x11ce   :  { %2587 = vrcp.f32 %v1598_v56  ;;  %v1611_v14 = vand.u32 2147483648, %v1598_v56  ;;  %vm1605_vm10 = vweird.f32 %v1598_v56  ;;  %v1609_v22 = vand.u32 2147483647, %v1598_v56 }
0x11cf   :  { %2589 = vrcp.f32 %v1509_v61  ;;  %v1536_v16 = vand.u32 2147483648, %v1509_v61  ;;  %vm1530_vm14 = vweird.f32 %v1509_v61  ;;  %v1534_v60 = vand.u32 2147483647, %v1509_v61 }
0x11d0   :  { %2591 = vpow2.f32 %v2393_v20  ;;  %v1612_v3 = vor.u32 1.1754944e-38, %v1611_v14  ;;  %vm1610_vm12 = vcmp.eq.f32.partialorder %v1609_v22, 8.507059e+37 }
0x11d1   :  { %2593 = vpow2.f32 %v2390_v25  ;;  %v1537_v34 = vor.u32 1.1754944e-38, %v1536_v16  ;;  %vm1535_vm2 = vcmp.eq.f32.partialorder %v1534_v60, 8.507059e+37 }
0x11d4   :  { %v2588_v49 = vpop.eup %2587 }
0x11d5   :  { %v1601_v12 = vmul.f32 %v2588_v49, %v1598_v56  ;;  %v2590_v36 = vpop.eup %2589  ;;  %vm1606_vm9 = vweird.f32 %v2588_v49 }
0x11d6   :  { %v2592_v47 = vpop.eup %2591  ;;  %v1526_v55 = vmul.f32 %v2590_v36, %v1509_v61  ;;  %vm1607_vm11 = vmor %vm1605_vm10, %vm1606_vm9  ;;  %vm1531_vm13 = vweird.f32 %v2590_v36  ;;  %v1662_v61 = vrot.slane %v3274_v38, 6 }
0x11d7   :  { %v1602_v1 = vsub.f32 1.0, %v1601_v12  ;;  %v2594_v6 = vpop.eup %2593  ;;  %v1599_v26 = vadd.f32 1.0, %v2592_v47  ;;  %vm1532_vm15 = vmor %vm1530_vm14, %vm1531_vm13 }
0x11d8   :  { %v1508_v23 = vadd.f32 1.0, %v2594_v6  ;;  %v1527_v48 = vsub.f32 1.0, %v1526_v55 }
0x11d9   :  { %v1603_v9 = vmul.f32 %v2588_v49, %v1602_v1  ;;  %2595 = vrcp.f32 %v1599_v26  ;;  %vm1620_vm7 = vweird.f32 %v1599_v26  ;;  %v1624_v55 = vand.u32 2147483647, %v1599_v26 }
0x11da   :  { %2597 = vrcp.f32 %v1508_v23  ;;  %v1528_v8 = vmul.f32 %v2590_v36, %v1527_v48  ;;  %vm1515_vm9 = vweird.f32 %v1508_v23  ;;  %v1519_v48 = vand.u32 2147483647, %v1508_v23 }
0x11db   :  { %v1604_v31 = vadd.f32 %v2588_v49, %v1603_v9  ;;  %v1626_v9 = vand.u32 2147483648, %v1599_v26 }
0x11dc   :  { %v1529_v10 = vadd.f32 %v2590_v36, %v1528_v8 }
0x11dd   :  { %v1608_v59 = vsel %vm1607_vm11, %v2588_v49, %v1604_v31  ;;  %v1521_v31 = vand.u32 2147483648, %v1508_v23  ;;  %v1627_v22 = vor.u32 1.1754944e-38, %v1626_v9  ;;  %vm1625_vm11 = vcmp.eq.f32.partialorder %v1624_v55, 8.507059e+37 }
0x11de   :  { %v3288_v13 = vsel %vm1610_vm12, %v1612_v3, %v1608_v59  ;;  %v1533_v56 = vsel %vm1532_vm15, %v2590_v36, %v1529_v10  ;;  %vm1520_vm12 = vcmp.eq.f32.partialorder %v1519_v48, 8.507059e+37 }
0x11df   :  { %v2596_v27 = vpop.eup %2595  ;;  %v3292_v49 = vsel %vm1535_vm2, %v1537_v34, %v1533_v56  ;;  %v1522_v8 = vor.u32 1.1754944e-38, %v1521_v31  ;;  %v1663_v56 = vrot.slane %v3274_v38, 7  ;;  %v1650_v55 = vsub.f32 1.0, %v3288_v13 }
0x11e0   :  { %v2598_v18 = vpop.eup %2597  ;;  %v1616_v53 = vmul.f32 %v2596_v27, %v1599_v26  ;;  %vm1621_vm5 = vweird.f32 %v2596_v27 }
0x11e1   :  { %v1511_v28 = vmul.f32 %v2598_v18, %v1508_v23  ;;  %vm1516_vm6 = vweird.f32 %v2598_v18  ;;  %vm1622_vm8 = vmor %vm1620_vm7, %vm1621_vm5 }
0x11e2   :  { %v1617_v20 = vsub.f32 1.0, %v1616_v53  ;;  %vm1517_vm10 = vmor %vm1515_vm9, %vm1516_vm6 }
0x11e3   :  { %v1512_v12 = vsub.f32 1.0, %v1511_v28 }
0x11e4   :  { %v1618_v1 = vmul.f32 %v2596_v27, %v1617_v20  ;;  %v1572_v20 = vrot.slane %v3274_v38, 3 }
0x11e5   :  { %v1513_v47 = vmul.f32 %v2598_v18, %v1512_v12 }
0x11e6   :  { %v1619_v6 = vadd.f32 %v2596_v27, %v1618_v1 }
0x11e7   :  { %v1514_v36 = vadd.f32 %v2598_v18, %v1513_v47  ;;  %v1694_v47 = vmul.f32 %v3274_v38, %v3136_v21 }
0x11e8   :  { %v1623_v14 = vsel %vm1622_vm8, %v2596_v27, %v1619_v6 }
0x11e9   :  { %v1518_v59 = vsel %vm1517_vm10, %v2598_v18, %v1514_v36 }
0x11ea   :  { %v1523_v16 = vsel %vm1520_vm12, %v1522_v8, %v1518_v59 }
0x121b   :  { %v1631_v15 = vpop.permute.xlu2 %1630 }
0x121c   :  { %v1636_v2 = vmul.f32 %v1631_v15, %v3288_v13  ;;  %v1628_v15 = vsel %vm1625_vm11, %v1627_v22, %v1623_v14 }
0x121d   :  { %v1651_v14 = vsub.f32 1.0, %v1628_v15 }
0x121e   :  { %1640 = vrot.lane.b32.xlu1 %v1636_v2, %s2678_s30 }
0x1223   :  { %v1543_v0 = vpop.permute.xlu2 %1542 }
0x1224   :  { %v1547_v25 = vmul.f32 %v1543_v0, %v3292_v49 }
0x1226   :  { %1552 = vrot.lane.b32.xlu1 %v1547_v25, %s2678_s30 }
0x122e   :  { %1664 = vrot.lane.b32.xlu1 %v1662_v61, %s2676_s23  ;;  %v1573_v61 = vrot.slane %v3274_v38, 4 }
0x1233   :  { %v1633_v3 = vpop.permute.xlu1 %1632 }
0x1234   :  { %v1637_v2 = vmul.f32 %v1633_v3, %v1628_v15  ;;  %v1541_v10 = vpop.permute.xlu0 %1540 }
0x1235   :  { %v1546_v60 = vmul.f32 %v1541_v10, %v1523_v16 }
0x1236   :  { %1642 = vrot.lane.b32.xlu0 %v1637_v2, %s2678_s30 }
0x1237   :  { %1550 = vrot.lane.b32.xlu2 %v1546_v60, %s2678_s30 }
0x1290   :  { %v1641_v26 = vpop.permute.xlu1 %1640 }
0x1291   :  { %v1646_v23 = vadd.f32 %v1641_v26, %v2905_v35  ;;  %v1551_v25 = vpop.permute.xlu2 %1550 }
0x1292   :  { %v1556_v12 = vadd.f32 %v1551_v25, %v2902_v33 }
0x1293   :  { %2599 = vtanh.f32 %v1646_v23 }
0x1298   :  { %v1553_v27 = vpop.permute.xlu1 %1552 }
0x1299   :  { %v2600_v53 = vpop.eup %2599  ;;  %v1557_v18 = vadd.f32 %v1553_v27, %v2912_v58  ;;  %v1561_v27 = vsub.f32 1.0, %v3292_v49 }
0x129a   :  { %1654 = vrot.lane.b32.xlu0 %v2600_v53, %s2680_s8  ;;  %v1560_v53 = vsub.f32 1.0, %v1523_v16 }
0x129b   :  { %2601 = vtanh.f32 %v1557_v18 }
0x12a0   :  { %v1665_v31 = vpop.permute.xlu1 %1664 }
0x12a1   :  { %v2602_v28 = vpop.eup %2601  ;;  %v1670_v21 = vmul.f32 %v1665_v31, %v3288_v13 }
0x12a2   :  { %1566 = vrot.lane.b32.xlu1 %v2602_v28, %s2680_s8  ;;  %1666 = vrot.lane.b32.xlu0 %v1663_v56, %s2676_s23 }
0x12a8   :  { %v1643_v34 = vpop.permute.xlu0 %1642 }
0x12a9   :  { %v1647_v0 = vadd.f32 %v1643_v34, %v2915_v40 }
0x12aa   :  { %1574 = vrot.lane.b32.xlu0 %v1572_v20, %s2683_s12 }
0x12ab   :  { %2603 = vtanh.f32 %v1647_v0 }
0x12ac   :  { %2605 = vtanh.f32 %v1556_v12 }
0x12b1   :  { %v2604_v1 = vpop.eup %2603 }
0x12b2   :  { %1656 = vrot.lane.b32.xlu2 %v2604_v1, %s2680_s8  ;;  %1696 = vrot.lane.b32.xlu0 %v1694_v47, %s2680_s8  ;;  %v2606_v6 = vpop.eup %2605 }
0x12ba   :  { %1564 = vrot.lane.b32.xlu2 %v2606_v6, %s2680_s8 }
0x12c2   :  { %1576 = vrot.lane.b32.xlu2 %v1573_v61, %s2683_s12 }
0x130c   :  { %v1657_v9 = vpop.permute.xlu2 %1656  ;;  %v1655_v36 = vpop.permute.xlu0 %1654 }
0x130d   :  { %v1660_v48 = vmul.f32 %v1655_v36, %v1650_v55  ;;  %v1661_v3 = vmul.f32 %v1657_v9, %v1651_v14 }
0x130f   :  { %v1672_v8 = vadd.f32 %v1670_v21, %v1660_v48 }
0x1311   :  { %v1687_v60 = vrot.slane %v1672_v8, 2 }
0x1314   :  { %v1565_v22 = vpop.permute.xlu2 %1564  ;;  %v1667_v59 = vpop.permute.xlu0 %1666 }
0x1315   :  { %v1671_v2 = vmul.f32 %v1667_v59, %v1628_v15  ;;  %v1567_v26 = vpop.permute.xlu1 %1566  ;;  %v1570_v0 = vmul.f32 %v1565_v22, %v1560_v53 }
0x1316   :  { %v1571_v28 = vmul.f32 %v1567_v26, %v1561_v27 }
0x1317   :  { %v1673_v10 = vadd.f32 %v1671_v2, %v1661_v3 }
0x1319   :  { %v1688_v23 = vrot.slane %v1673_v10, 1 }
0x131b   :  { %v1689_v18 = vsel %vm453_vm3, %v1688_v23, %v1687_v60 }
0x131c   :  { %v1577_v56 = vpop.permute.xlu2 %1576  ;;  %v1575_v34 = vpop.permute.xlu0 %1574  ;;  %1690 = vrot.lane.b32.xlu1 %v1689_v18, %s2682_s11 }
0x131d   :  { %v1581_v13 = vmul.f32 %v1577_v56, %v3292_v49  ;;  %v1580_v20 = vmul.f32 %v1575_v34, %v1523_v16  ;;  %v1683_v16 = vmul.f32 %v3274_v38, %v3115_v63 }
0x131f   :  { %v1583_v25 = vadd.f32 %v1581_v13, %v1571_v28  ;;  %v1582_v15 = vadd.f32 %v1580_v20, %v1570_v0 }
0x1321   :  { %v1677_v12 = vrot.slane %v1583_v25, 4  ;;  %v1676_v1 = vrot.slane %v1582_v15, 5 }
0x1323   :  { %v1678_v47 = vsel %vm453_vm3, %v1677_v12, %v1676_v1 }
0x1324   :  { %1679 = vrot.lane.b32.xlu2 %v1678_v47, %s2680_s8  ;;  %v1697_v9 = vpop.permute.xlu0 %1696 }
0x137e   :  { %v1680_v55 = vpop.permute.xlu2 %1679 }
0x137f   :  { %v1682_v49 = vmul.f32 %v1680_v55, %v3130_v37 }
0x1381   :  { %v1684_v31 = vadd.f32 %v1683_v16, %v1682_v49 }
0x138e   :  { %v1691_v6 = vpop.permute.xlu1 %1690 }
0x138f   :  { %v1693_v61 = vmul.f32 %v1691_v6, %v3134_v62 }
0x1391   :  { %v1699_v36 = vadd.f32 %v1697_v9, %v1693_v61 }
0x1393   :  { %1701 = vrot.lane.b32.xlu1 %v1699_v36, %s2683_s12 }
0x1405   :  { %v1702_v48 = vpop.permute.xlu1 %1701 }
0x1406   :  { %v3331_v21 = vsel %vm490_vm4, %v1684_v31, %v1702_v48 }
0x1407   :  { %2394 = vmatmul.msk.f32.vlgmr.msra.gmra.mxu2 %vm74_vm1, %v3331_v21 }
0x148a   :  { %v1725_v14 = vpop.f32.mrf.mxu2 }
0x148b   :  { %v1728_v62 = vadd.f32 %v1725_v14, %v2874_v54  ;;  %v1818_v22 = vadd.f32 %v1725_v14, %v2878_v57 }
0x148d   :  { %v1730_v59 = vrot.slane %v1728_v62, 2  ;;  %1865 = vrot.lane.b32.xlu2 %v1818_v22, %s2677_s4  ;;  %v1820_v37 = vrot.slane %v1818_v22, 7  ;;  %v1731_v63 = vrot.slane %v1728_v62, 3  ;;  %v1824_v38 = vadd.f32 %v1818_v22, %v2915_v40 }
0x148f   :  { %1863 = vrot.lane.b32.xlu0 %v1820_v37, %s2677_s4  ;;  %1774 = vrot.lane.b32.xlu1 %v1730_v59, %s2677_s4  ;;  %v2398_v8 = vmul.f32 -1.442695, %v1824_v38  ;;  %v1734_v10 = vadd.f32 %v1730_v59, %v2902_v33  ;;  %v1823_v60 = vadd.f32 %v1820_v37, %v2905_v35  ;;  %v1735_v18 = vadd.f32 %v1731_v63, %v2912_v58 }
0x1491   :  { %2607 = vpow2.f32 %v2398_v8  ;;  %v2395_v23 = vmul.f32 -1.442695, %v1734_v10  ;;  %v2397_v27 = vmul.f32 -1.442695, %v1823_v60  ;;  %v2396_v28 = vmul.f32 -1.442695, %v1735_v18 }
0x1497   :  { %1776 = vrot.lane.b32.xlu0 %v1731_v63, %s2677_s4  ;;  %v2608_v3 = vpop.eup %2607 }
0x1498   :  { %v1832_v2 = vadd.f32 1.0, %v2608_v3 }
0x149a   :  { %2609 = vrcp.f32 %v1832_v2  ;;  %v1859_v12 = vand.u32 2147483648, %v1832_v2  ;;  %vm1853_vm14 = vweird.f32 %v1832_v2  ;;  %v1857_v1 = vand.u32 2147483647, %v1832_v2 }
0x149b   :  { %2611 = vpow2.f32 %v2395_v23 }
0x149c   :  { %2613 = vpow2.f32 %v2397_v27  ;;  %v1860_v6 = vor.u32 1.1754944e-38, %v1859_v12  ;;  %vm1858_vm2 = vcmp.eq.f32.partialorder %v1857_v1, 8.507059e+37 }
0x149d   :  { %2615 = vpow2.f32 %v2396_v28 }
0x14a0   :  { %v2610_v26 = vpop.eup %2609 }
0x14a1   :  { %v1849_v53 = vmul.f32 %v2610_v26, %v1832_v2  ;;  %v2612_v13 = vpop.eup %2611  ;;  %vm1854_vm13 = vweird.f32 %v2610_v26 }
0x14a2   :  { %v2614_v0 = vpop.eup %2613  ;;  %v1742_v20 = vadd.f32 1.0, %v2612_v13  ;;  %vm1855_vm15 = vmor %vm1853_vm14, %vm1854_vm13 }
0x14a3   :  { %v1850_v56 = vsub.f32 1.0, %v1849_v53  ;;  %v1831_v15 = vadd.f32 1.0, %v2614_v0  ;;  %v2616_v61 = vpop.eup %2615 }
0x14a4   :  { %2617 = vrcp.f32 %v1742_v20  ;;  %v1743_v49 = vadd.f32 1.0, %v2616_v61  ;;  %vm1749_vm7 = vweird.f32 %v1742_v20  ;;  %v1755_v60 = vand.u32 2147483648, %v1742_v20 }
0x14a5   :  { %v1851_v34 = vmul.f32 %v2610_v26, %v1850_v56  ;;  %2619 = vrcp.f32 %v1831_v15  ;;  %v1844_v10 = vand.u32 2147483648, %v1831_v15  ;;  %vm1838_vm8 = vweird.f32 %v1831_v15 }
0x14a6   :  { %2621 = vrcp.f32 %v1743_v49  ;;  %v1753_v23 = vand.u32 2147483647, %v1742_v20  ;;  %v1756_v28 = vor.u32 1.1754944e-38, %v1755_v60  ;;  %vm1764_vm14 = vweird.f32 %v1743_v49 }
0x14a7   :  { %v1852_v25 = vadd.f32 %v2610_v26, %v1851_v34  ;;  %v1845_v56 = vor.u32 1.1754944e-38, %v1844_v10  ;;  %v1806_v10 = vrot.slane %v3331_v21, 2 }
0x14a8   :  { %vm1754_vm12 = vcmp.eq.f32.partialorder %v1753_v23, 8.507059e+37  ;;  %v1807_v23 = vrot.slane %v3331_v21, 3 }
0x14a9   :  { %v1856_v47 = vsel %vm1855_vm15, %v2610_v26, %v1852_v25  ;;  %v1842_v26 = vand.u32 2147483647, %v1831_v15 }
0x14aa   :  { %v3345_v36 = vsel %vm1858_vm2, %v1860_v6, %v1856_v47  ;;  %v2618_v16 = vpop.eup %2617  ;;  %v1768_v47 = vand.u32 2147483647, %v1743_v49 }
0x14ab   :  { %v2620_v31 = vpop.eup %2619  ;;  %v1745_v14 = vmul.f32 %v2618_v16, %v1742_v20  ;;  %vm1750_vm5 = vweird.f32 %v2618_v16  ;;  %vm1843_vm11 = vcmp.eq.f32.partialorder %v1842_v26, 8.507059e+37  ;;  %v1770_v20 = vand.u32 2147483648, %v1743_v49 }
0x14ac   :  { %v1834_v48 = vmul.f32 %v2620_v31, %v1831_v15  ;;  %v2622_v59 = vpop.eup %2621  ;;  %vm1839_vm6 = vweird.f32 %v2620_v31  ;;  %vm1751_vm9 = vmor %vm1749_vm7, %vm1750_vm5  ;;  %vm1769_vm2 = vcmp.eq.f32.partialorder %v1768_v47, 8.507059e+37 }
0x14ad   :  { %v1746_v22 = vsub.f32 1.0, %v1745_v14  ;;  %v1760_v38 = vmul.f32 %v2622_v59, %v1743_v49  ;;  %vm1840_vm10 = vmor %vm1838_vm8, %vm1839_vm6  ;;  %vm1765_vm13 = vweird.f32 %v2622_v59  ;;  %v1771_v61 = vor.u32 1.1754944e-38, %v1770_v20 }
0x14ae   :  { %v1835_v62 = vsub.f32 1.0, %v1834_v48  ;;  %vm1766_vm15 = vmor %vm1764_vm14, %vm1765_vm13 }
0x14af   :  { %v1747_v63 = vmul.f32 %v2618_v16, %v1746_v22  ;;  %v1761_v2 = vsub.f32 1.0, %v1760_v38 }
0x14b0   :  { %v1836_v37 = vmul.f32 %v2620_v31, %v1835_v62 }
0x14b1   :  { %v1748_v3 = vadd.f32 %v2618_v16, %v1747_v63  ;;  %v1762_v18 = vmul.f32 %v2622_v59, %v1761_v2 }
0x14b2   :  { %v1837_v8 = vadd.f32 %v2620_v31, %v1836_v37 }
0x14b3   :  { %v1752_v53 = vsel %vm1751_vm9, %v2618_v16, %v1748_v3  ;;  %v1763_v1 = vadd.f32 %v2622_v59, %v1762_v18 }
0x14b4   :  { %v1841_v27 = vsel %vm1840_vm10, %v2620_v31, %v1837_v8  ;;  %v3351_v25 = vsel %vm1754_vm12, %v1756_v28, %v1752_v53  ;;  %v1895_v31 = vrot.slane %v3331_v21, 7  ;;  %v3374_v8 = vld [vmem:[%s3534_s3 + $0x8] sm:$0x1f] }
0x14b5   :  { %v3349_v13 = vsel %vm1843_vm11, %v1845_v56, %v1841_v27  ;;  %v1767_v6 = vsel %vm1766_vm15, %v2622_v59, %v1763_v1  ;;  %v2166_v3 = vperm.slane %v3374_v8, 4  ;;  %v1925_v27 = vmul.f32 %v3331_v21, %v3060_v51 }
0x14b6   :  { %v1884_v51 = vsub.f32 1.0, %v3345_v36 }
0x14e7   :  { %v1866_v9 = vpop.permute.xlu2 %1865 }
0x14e8   :  { %v1870_v55 = vmul.f32 %v1866_v9, %v3345_v36 }
0x14ea   :  { %1875 = vrot.lane.b32.xlu1 %v1870_v55, %s2678_s30  ;;  %v3357_v55 = vsel %vm1769_vm2, %v1771_v61, %v1767_v6 }
0x1501   :  { %v1864_v34 = vpop.permute.xlu0 %1863  ;;  %v1775_v0 = vpop.permute.xlu1 %1774 }
0x1502   :  { %v1869_v12 = vmul.f32 %v1864_v34, %v3349_v13  ;;  %v1780_v15 = vmul.f32 %v1775_v0, %v3351_v25 }
0x1504   :  { %1873 = vrot.lane.b32.xlu2 %v1869_v12, %s2678_s30  ;;  %1784 = vrot.lane.b32.xlu0 %v1780_v15, %s2678_s30  ;;  %v1883_v12 = vsub.f32 1.0, %v3349_v13 }
0x1509   :  { %v1777_v9 = vpop.permute.xlu0 %1776 }
0x150a   :  { %v1781_v16 = vmul.f32 %v1777_v9, %v3357_v55 }
0x150c   :  { %1786 = vrot.lane.b32.xlu2 %v1781_v16, %s2678_s30  ;;  %1896 = vrot.lane.b32.xlu0 %v1895_v31, %s2676_s23 }
0x155c   :  { %v1876_v48 = vpop.permute.xlu1 %1875 }
0x155d   :  { %v1880_v14 = vadd.f32 %v1876_v48, %v2915_v40 }
0x155e   :  { %v1874_v62 = vpop.permute.xlu2 %1873 }
0x155f   :  { %2623 = vtanh.f32 %v1880_v14  ;;  %v1879_v49 = vadd.f32 %v1874_v62, %v2905_v35  ;;  %v1794_v62 = vsub.f32 1.0, %v3351_v25 }
0x1561   :  { %2625 = vtanh.f32 %v1879_v49 }
0x1565   :  { %v2624_v22 = vpop.eup %2623 }
0x1566   :  { %v1787_v59 = vpop.permute.xlu2 %1786  ;;  %1889 = vrot.lane.b32.xlu2 %v2624_v22, %s2680_s8 }
0x1567   :  { %v2626_v37 = vpop.eup %2625  ;;  %v1791_v63 = vadd.f32 %v1787_v59, %v2912_v58  ;;  %v1795_v59 = vsub.f32 1.0, %v3357_v55 }
0x1568   :  { %1887 = vrot.lane.b32.xlu1 %v2626_v37, %s2680_s8 }
0x1569   :  { %2627 = vtanh.f32 %v1791_v63 }
0x156f   :  { %v2628_v38 = vpop.eup %2627 }
0x1570   :  { %1898 = vrot.lane.b32.xlu1 %v3331_v21, %s2676_s23  ;;  %1800 = vrot.lane.b32.xlu2 %v2628_v38, %s2680_s8 }
0x1576   :  { %v1785_v2 = vpop.permute.xlu0 %1784 }
0x1577   :  { %v1790_v60 = vadd.f32 %v1785_v2, %v2902_v33 }
0x1578   :  { %1808 = vrot.lane.b32.xlu1 %v1806_v10, %s2683_s12  ;;  %2168 = vrot.lane.b32.xlu2 %v2166_v3, %s2677_s4 }
0x1579   :  { %2629 = vtanh.f32 %v1790_v60 }
0x157a   :  { %2631 = vtanh.f32 %v2899_v32 }
0x157b   :  { %2633 = vtanh.f32 %v2909_v39 }
0x157e   :  { %v1897_v15 = vpop.permute.xlu0 %1896 }
0x157f   :  { %v2630_v26 = vpop.eup %2629  ;;  %v1902_v20 = vmul.f32 %v1897_v15, %v3349_v13 }
0x1580   :  { %1798 = vrot.lane.b32.xlu0 %v2630_v26, %s2680_s8  ;;  %v2632_v56 = vpop.eup %2631 }
0x1581   :  { %v2634_v48 = vpop.eup %2633 }
0x1588   :  { %1810 = vrot.lane.b32.xlu0 %v1807_v23, %s2683_s12 }
0x1590   :  { %1927 = vrot.lane.b32.xlu0 %v1925_v27, %s2680_s8 }
0x15c0   :  { %v1890_v53 = vpop.permute.xlu2 %1889 }
0x15c1   :  { %v1894_v61 = vmul.f32 %v1890_v53, %v1884_v51 }
0x15ca   :  { %v1801_v18 = vpop.permute.xlu2 %1800 }
0x15cb   :  { %v1805_v63 = vmul.f32 %v1801_v18, %v1795_v59 }
0x15d2   :  { %v2169_v28 = vpop.permute.xlu2 %2168 }
0x15d3   :  { %v2171_v34 = vmul.f32 %v2632_v56, %v2169_v28  ;;  %v2172_v14 = vmul.f32 %v2634_v48, %v2169_v28 }
0x15d5   :  { %2175 = vrot.lane.b32.xlu2 %v2171_v34, %s2678_s30 }
0x15da   :  { %v1888_v0 = vpop.permute.xlu1 %1887 }
0x15db   :  { %v1893_v1 = vmul.f32 %v1888_v0, %v1883_v12  ;;  %v1915_v0 = vmul.f32 %v3331_v21, %v3042_v5 }
0x15dd   :  { %v1904_v47 = vadd.f32 %v1902_v20, %v1893_v1 }
0x15df   :  { %v1919_v32 = vrot.slane %v1904_v47, 1 }
0x15e2   :  { %v1899_v6 = vpop.permute.xlu1 %1898 }
0x15e3   :  { %v1903_v9 = vmul.f32 %v1899_v6, %v3345_v36 }
0x15e5   :  { %v1905_v16 = vadd.f32 %v1903_v9, %v1894_v61 }
0x15e7   :  { %v1920_v31 = vsel %vm453_vm3, %v1905_v16, %v1919_v32 }
0x15e8   :  { %1921 = vrot.lane.b32.xlu1 %v1920_v31, %s2682_s11 }
0x15ea   :  { %v1809_v49 = vpop.permute.xlu1 %1808 }
0x15eb   :  { %v1814_v36 = vmul.f32 %v1809_v49, %v3351_v25 }
0x15f0   :  { %2177 = vrot.lane.b32.xlu1 %v2172_v14, %s2678_s30 }
0x15f2   :  { %v1799_v13 = vpop.permute.xlu0 %1798 }
0x15f3   :  { %v1804_v22 = vmul.f32 %v1799_v13, %v1794_v62 }
0x15f5   :  { %v1816_v39 = vadd.f32 %v1814_v36, %v1804_v22 }
0x15f7   :  { %v1908_v2 = vrot.slane %v1816_v39, 6 }
0x15fa   :  { %v1811_v37 = vpop.permute.xlu0 %1810 }
0x15fb   :  { %v1815_v38 = vmul.f32 %v1811_v37, %v3357_v55 }
0x15fd   :  { %v1817_v3 = vadd.f32 %v1815_v38, %v1805_v63 }
0x15ff   :  { %v1909_v10 = vrot.slane %v1817_v3, 5 }
0x1601   :  { %v1910_v60 = vsel %vm453_vm3, %v1909_v10, %v1908_v2 }
0x1602   :  { %1911 = vrot.lane.b32.xlu0 %v1910_v60, %s2680_s8  ;;  %v1928_v25 = vpop.permute.xlu0 %1927 }
0x162f   :  { %v2176_v26 = vpop.permute.xlu2 %2175 }
0x1630   :  { %v2181_v23 = vsel %vm490_vm4, %v2176_v26, 0.0 }
0x1631   :  { %2182 = vadd.xlane.f32.xlu1 %v2181_v23 }
0x165a   :  { %v1922_v27 = vpop.permute.xlu1 %1921 }
0x165b   :  { %v1924_v53 = vmul.f32 %v1922_v27, %v3062_v52  ;;  %v2191_v52 = vand.u32 127, %v57_v7 }
0x165d   :  { %v1930_v56 = vadd.f32 %v1928_v25, %v1924_v53 }
0x165f   :  { %1932 = vrot.lane.b32.xlu2 %v1930_v56, %s2683_s12 }
0x1662   :  { %v2178_v18 = vpop.permute.xlu1 %2177 }
0x1663   :  { %v2184_v55 = vsel %vm490_vm4, %v2178_v18, 0.0 }
0x1664   :  { %2185 = vadd.xlane.f32.xlu0 %v2184_v55 }
0x1674   :  { %v1912_v28 = vpop.permute.xlu0 %1911 }
0x1675   :  { %v1914_v34 = vmul.f32 %v1912_v28, %v3056_v24  ;;  %v2673_v24 = vld [vmem:[%s3537_s2] sm:$0x3] }
0x1676   :  { %vm2187_vm5 = vcmp.lt.f32.partialorder %v2673_v24, 0.5 }
0x1677   :  { %v1916_v12 = vadd.f32 %v1915_v0, %v1914_v34 }
0x16a4   :  { %v2183_v20 = vpop.xlane.xlu1 %2182 }
0x16a5   :  { %v2192_v47 = vperm.slane %v2183_v20, %v2191_v52 }
0x16b9   :  { %v1933_v15 = vpop.permute.xlu2 %1932 }
0x16ba   :  { %v3411_v1 = vsel %vm490_vm4, %v1916_v12, %v1933_v15 }
0x16bb   :  { %2399 = vmatmul.msk.f32.vlgmr.msra.gmra.mxu3 %vm74_vm1, %v3411_v1  ;;  %v2037_v44 = vrot.slane %v3411_v1, 1 }
0x16d7   :  { %v2186_v51 = vpop.xlane.xlu0 %2185 }
0x16d8   :  { %v2193_v6 = vperm.slane %v2186_v51, %v2191_v52 }
0x16da   :  { %v2194_v5 = vsel %vm453_vm3, %v2193_v6, %v2192_v47 }
0x16db   :  { %v2196_v21 = vsel %vm2187_vm5, -1e+30, %v2194_v5 }
0x16dc   :  { %v2197_v61 = vsel %vm44_vm0, %v2196_v21, -inf }
0x16dd   :  { %2198 = vmax.xlane.f32.xlu2 %v2197_v61 }
0x173e   :  { %v1956_v9 = vpop.f32.mrf.mxu3 }
0x173f   :  { %v2049_v32 = vadd.f32 %v1956_v9, %v2878_v57  ;;  %v3429_v7 = vadd.f32 %v1956_v9, %v2874_v54 }
0x1741   :  { %v2051_v16 = vrot.slane %v2049_v32, 1  ;;  %2094 = vrot.lane.b32.xlu2 %v2049_v32, %s2677_s4  ;;  %v1961_v31 = vrot.slane %v3429_v7, 1  ;;  %v2054_v49 = vadd.f32 %v2049_v32, %v2905_v35 }
0x1743   :  { %2096 = vrot.lane.b32.xlu0 %v2051_v16, %s2677_s4  ;;  %v2402_v22 = vmul.f32 -1.442695, %v2054_v49  ;;  %v1965_v53 = vadd.f32 %v1961_v31, %v2902_v33  ;;  %v2055_v25 = vadd.f32 %v2051_v16, %v2915_v40  ;;  %v1962_v16 = vrot.slane %v3429_v7, 2 }
0x1745   :  { %v2400_v56 = vmul.f32 -1.442695, %v1965_v53  ;;  %v2403_v18 = vmul.f32 -1.442695, %v2055_v25 }
0x1749   :  { %2440 = vrot.lane.b32.xlu2 %v2439_v45, %s2677_s4 }
0x1750   :  { %v2199_v48 = vpop.xlane.xlu2 %2198 }
0x1751   :  { %v2200_v14 = vsub.f32 %v2196_v21, %v2199_v48  ;;  %2005 = vrot.lane.b32.xlu2 %v1961_v31, %s2677_s4 }
0x1753   :  { %v2201_v57 = vmul.f32 1.442695, %v2200_v14 }
0x1755   :  { %2635 = vpow2.f32 %v2201_v57 }
0x1756   :  { %2637 = vpow2.f32 %v2402_v22 }
0x175b   :  { %v2636_v13 = vpop.eup %2635 }
0x175c   :  { %v2203_v62 = vsel %vm44_vm0, %v2636_v13, 0.0  ;;  %v2638_v41 = vpop.eup %2637 }
0x175d   :  { %2204 = vadd.xlane.f32.xlu1 %v2203_v62  ;;  %v2062_v42 = vadd.f32 1.0, %v2638_v41 }
0x175f   :  { %2639 = vrcp.f32 %v2062_v42  ;;  %v2075_v63 = vand.u32 2147483648, %v2062_v42  ;;  %vm2069_vm7 = vweird.f32 %v2062_v42  ;;  %v2073_v39 = vand.u32 2147483647, %v2062_v42 }
0x1760   :  { %2641 = vpow2.f32 %v2400_v56 }
0x1761   :  { %v2076_v3 = vor.u32 1.1754944e-38, %v2075_v63  ;;  %vm2074_vm0 = vcmp.eq.f32.partialorder %v2073_v39, 8.507059e+37  ;;  %2643 = vpow2.f32 %v2403_v18 }
0x1765   :  { %v2640_v45 = vpop.eup %2639 }
0x1766   :  { %v2065_v54 = vmul.f32 %v2640_v45, %v2062_v42  ;;  %vm2070_vm6 = vweird.f32 %v2640_v45  ;;  %v2642_v55 = vpop.eup %2641 }
0x1767   :  { %vm2071_vm8 = vmor %vm2069_vm7, %vm2070_vm6  ;;  %v2644_v28 = vpop.eup %2643  ;;  %v1973_v34 = vadd.f32 1.0, %v2642_v55 }
0x1768   :  { %v2066_v59 = vsub.f32 1.0, %v2065_v54  ;;  %v2063_v0 = vadd.f32 1.0, %v2644_v28 }
0x1769   :  { %2645 = vrcp.f32 %v1973_v34  ;;  %vm1980_vm11 = vweird.f32 %v1973_v34  ;;  %v1986_v14 = vand.u32 2147483648, %v1973_v34  ;;  %v1984_v62 = vand.u32 2147483647, %v1973_v34 }
0x176a   :  { %v2067_v36 = vmul.f32 %v2640_v45, %v2066_v59  ;;  %2647 = vrcp.f32 %v2063_v0  ;;  %v2090_v57 = vand.u32 2147483648, %v2063_v0  ;;  %vm2084_vm13 = vweird.f32 %v2063_v0 }
0x176b   :  { %v2088_v49 = vand.u32 2147483647, %v2063_v0  ;;  %v1987_v41 = vor.u32 1.1754944e-38, %v1986_v14  ;;  %vm1985_vm15 = vcmp.eq.f32.partialorder %v1984_v62, 8.507059e+37 }
0x176c   :  { %v2068_v37 = vadd.f32 %v2640_v45, %v2067_v36 }
0x176d   :  { %vm2089_vm2 = vcmp.eq.f32.partialorder %v2088_v49, 8.507059e+37 }
0x176e   :  { %v2072_v38 = vsel %vm2071_vm8, %v2640_v45, %v2068_v37  ;;  %v2091_v45 = vor.u32 1.1754944e-38, %v2090_v57 }
0x176f   :  { %v3435_v2 = vsel %vm2074_vm0, %v2076_v3, %v2072_v38  ;;  %v2646_v15 = vpop.eup %2645 }
0x1770   :  { %v2648_v52 = vpop.eup %2647  ;;  %v1976_v20 = vmul.f32 %v2646_v15, %v1973_v34  ;;  %vm1981_vm9 = vweird.f32 %v2646_v15 }
0x1771   :  { %v2080_v51 = vmul.f32 %v2648_v52, %v2063_v0  ;;  %vm2085_vm10 = vweird.f32 %v2648_v52  ;;  %vm3446_vm12 = vmor %vm1980_vm11, %vm1981_vm9  ;;  %vm2300_vm11 = vcmask 254976  }
0x1772   :  { %v1977_v24 = vsub.f32 1.0, %v1976_v20  ;;  %vm2086_vm14 = vmor %vm2084_vm13, %vm2085_vm10 }
0x1773   :  { %v2081_v5 = vsub.f32 1.0, %v2080_v51 }
0x1774   :  { %v1978_v9 = vmul.f32 %v2646_v15, %v1977_v24 }
0x1775   :  { %v2082_v32 = vmul.f32 %v2648_v52, %v2081_v5 }
0x1776   :  { %v1979_v31 = vadd.f32 %v2646_v15, %v1978_v9 }
0x1777   :  { %v2083_v48 = vadd.f32 %v2648_v52, %v2082_v32 }
0x1778   :  { %v1983_v7 = vsel %vm3446_vm12, %v2646_v15, %v1979_v31 }
0x1779   :  { %v2087_v22 = vsel %vm2086_vm14, %v2648_v52, %v2083_v48  ;;  %v3457_v59 = vsel %vm1985_vm15, %v1987_v41, %v1983_v7 }
0x177a   :  { %v3459_v36 = vsel %vm2089_vm2, %v2091_v45, %v2087_v22 }
0x179b   :  { %v2095_v10 = vpop.permute.xlu2 %2094 }
0x179c   :  { %v2100_v60 = vmul.f32 %v2095_v10, %v3435_v2 }
0x179e   :  { %2104 = vrot.lane.b32.xlu2 %v2100_v60, %s2678_s30 }
0x17a3   :  { %v2441_v26 = vpop.permute.xlu2 %2440 }
0x17a4   :  { %v2443_v23 = vunpack.i.h.bf16 %v2441_v26  ;;  %v2442_v27 = vunpack.i.l.bf16 %v2441_v26 }
0x17a6   :  { %2272 = vmatpush.msra.mxu0 %v2442_v27 }
0x17a8   :  { %2273 = vmatpush.msra.mxu0 %v2443_v23 }
0x17ab   :  { %v2006_v42 = vpop.permute.xlu2 %2005 }
0x17ac   :  { %v2011_v37 = vmul.f32 %v2006_v42, %v3457_v59 }
0x17b5   :  { %v2097_v54 = vpop.permute.xlu0 %2096 }
0x17b6   :  { %v2101_v43 = vmul.f32 %v2097_v54, %v3459_v36 }
0x17d0   :  { %v2205_v12 = vpop.xlane.xlu1 %2204 }
0x17d1   :  { %2649 = vrcp.f32 %v2205_v12 }
0x17d7   :  { %v2650_v47 = vpop.eup %2649 }
0x17d8   :  { %v3441_v6 = vmul.f32 %v2650_v47, %v2636_v13 }
0x17da   :  { %v2215_v21 = vperm.slane %v3441_v6, 1  ;;  %v2208_v61 = vperm.slane %v3441_v6, 0 }
0x17dc   :  { %2220 = vperm.xlu0 %2438, %v2215_v21   ;;  %2213 = vperm.xlu1 %2437, %v2208_v61  }
0x17e4   :  { %2007 = vrot.lane.b32.xlu0 %v1962_v16, %s2677_s4  ;;  %2445 = vrot.lane.b32.xlu1 %v2444_v46, %s2677_s4  ;;  %v1966_v46 = vadd.f32 %v1962_v16, %v2912_v58 }
0x17e6   :  { %v2401_v63 = vmul.f32 -1.442695, %v1966_v46 }
0x17e8   :  { %2651 = vpow2.f32 %v2401_v63  ;;  %v2115_v63 = vsub.f32 1.0, %v3459_v36 }
0x17ec   :  { %2015 = vrot.lane.b32.xlu0 %v2011_v37, %s2678_s30  ;;  %2106 = vrot.lane.b32.xlu1 %v2101_v43, %s2678_s30  ;;  %v2038_v37 = vrot.slane %v3411_v1, 2 }
0x17ee   :  { %v2652_v39 = vpop.eup %2651 }
0x17ef   :  { %v1974_v38 = vadd.f32 1.0, %v2652_v39 }
0x17f1   :  { %2653 = vrcp.f32 %v1974_v38  ;;  %v2001_v18 = vand.u32 2147483648, %v1974_v38  ;;  %vm1995_vm6 = vweird.f32 %v1974_v38  ;;  %v1999_v34 = vand.u32 2147483647, %v1974_v38 }
0x17f3   :  { %v2002_v47 = vor.u32 1.1754944e-38, %v2001_v18  ;;  %vm2000_vm8 = vcmp.eq.f32.partialorder %v1999_v34, 8.507059e+37  ;;  %v2025_v18 = vsub.f32 1.0, %v3457_v59 }
0x17f4   :  { %2128 = vrot.lane.b32.xlu0 %v2037_v44, %s2676_s23 }
0x17f7   :  { %v2654_v3 = vpop.eup %2653 }
0x17f8   :  { %v1991_v10 = vmul.f32 %v2654_v3, %v1974_v38  ;;  %vm1996_vm5 = vweird.f32 %v2654_v3  ;;  %v2105_v15 = vpop.permute.xlu2 %2104 }
0x17f9   :  { %vm1997_vm7 = vmor %vm1995_vm6, %vm1996_vm5  ;;  %vm2352_vm5 = vcmask 523264   ;;  %vm2354_vm6 = vcmask 588800  }
0x17fa   :  { %v1992_v60 = vsub.f32 1.0, %v1991_v10 }
0x17fc   :  { %v1993_v26 = vmul.f32 %v2654_v3, %v1992_v60 }
0x17fe   :  { %v1994_v56 = vadd.f32 %v2654_v3, %v1993_v26 }
0x1800   :  { %v1998_v52 = vsel %vm1997_vm7, %v2654_v3, %v1994_v56  ;;  %v2114_v3 = vsub.f32 1.0, %v3435_v2 }
0x1801   :  { %v3475_v21 = vsel %vm2000_vm8, %v2002_v47, %v1998_v52 }
0x184e   :  { %v2214_v23 = vpop.permute.xlu1 %2213  ;;  %v2221_v27 = vpop.permute.xlu0 %2220 }
0x184f   :  { %v2222_v53 = vmul.f32 %v2214_v23, %v2889_v19  ;;  %v2223_v25 = vmul.f32 %v2221_v27, %v2894_v29  ;;  %v2110_v19 = vadd.f32 %v2105_v15, %v2905_v35 }
0x1851   :  { %v2224_v55 = vsel %vm74_vm1, %v2222_v53, 0.0  ;;  %v2231_v28 = vsel %vm74_vm1, %v2223_v25, 0.0  ;;  %2655 = vtanh.f32 %v2110_v19 }
0x1852   :  { %v2225_v0 = vrot.slane %v2224_v55, 4  ;;  %v2232_v12 = vrot.slane %v2231_v28, 4 }
0x1854   :  { %v2226_v20 = vadd.f32 %v2225_v0, %v2224_v55  ;;  %v2233_v51 = vadd.f32 %v2232_v12, %v2231_v28  ;;  %v2026_v0 = vsub.f32 1.0, %v3475_v21 }
0x1856   :  { %v2227_v29 = vrot.slane %v2226_v20, 2  ;;  %v2234_v24 = vrot.slane %v2233_v51, 2  ;;  %v2446_v5 = vpop.permute.xlu1 %2445  ;;  %v2008_v61 = vpop.permute.xlu0 %2007 }
0x1857   :  { %v2448_v9 = vunpack.i.h.bf16 %v2446_v5  ;;  %v2447_v32 = vunpack.i.l.bf16 %v2446_v5  ;;  %v2012_v16 = vmul.f32 %v2008_v61, %v3475_v21  ;;  %v2656_v42 = vpop.eup %2655 }
0x1858   :  { %v2228_v31 = vadd.f32 %v2227_v29, %v2226_v20  ;;  %v2235_v48 = vadd.f32 %v2234_v24, %v2233_v51 }
0x1859   :  { %2017 = vrot.lane.b32.xlu1 %v2012_v16, %s2678_s30  ;;  %2274 = vmatpush.msra.mxu0 %v2447_v32 }
0x185a   :  { %v2229_v14 = vrot.slane %v2228_v31, 1  ;;  %v2236_v57 = vrot.slane %v2235_v48, 1 }
0x185b   :  { %2275 = vmatpush.msra.mxu0 %v2448_v9 }
0x185c   :  { %v2230_v35 = vadd.f32 %v2229_v14, %v2228_v31  ;;  %v2237_v13 = vadd.f32 %v2236_v57, %v2235_v48 }
0x185e   :  { %v2107_v62 = vpop.permute.xlu1 %2106  ;;  %v2016_v49 = vpop.permute.xlu0 %2015  ;;  %v2241_v7 = vsel %vm453_vm3, %v2237_v13, %v2230_v35 }
0x185f   :  { %v2111_v22 = vadd.f32 %v2107_v62, %v2915_v40  ;;  %v2021_v41 = vadd.f32 %v2016_v49, %v2902_v33  ;;  %2404 = vmatmul.msk.f32.vlgmr.msra.gmra.mxu0 %vm74_vm1, %v2241_v7  ;;  %v2155_v33 = vmul.f32 %v3411_v1, %v2978_v4  ;;  %v2145_v49 = vmul.f32 %v3411_v1, %v2971_v50 }
0x1861   :  { %2657 = vtanh.f32 %v2111_v22  ;;  %2118 = vrot.lane.b32.xlu1 %v2656_v42, %s2680_s8 }
0x1862   :  { %2659 = vtanh.f32 %v2021_v41 }
0x1866   :  { %v2129_v39 = vpop.permute.xlu0 %2128 }
0x1867   :  { %v2658_v45 = vpop.eup %2657 }
0x1868   :  { %v2660_v54 = vpop.eup %2659  ;;  %2120 = vrot.lane.b32.xlu2 %v2658_v45, %s2680_s8 }
0x1869   :  { %2029 = vrot.lane.b32.xlu0 %v2660_v54, %s2680_s8 }
0x1870   :  { %2126 = vrot.lane.b32.xlu2 %v3411_v1, %s2676_s23 }
0x1871   :  { %2041 = vrot.lane.b32.xlu0 %v2038_v37, %s2683_s12 }
0x1878   :  { %2039 = vrot.lane.b32.xlu2 %v2037_v44, %s2683_s12  ;;  %v2133_v44 = vmul.f32 %v2129_v39, %v3459_v36 }
0x1880   :  { %2157 = vrot.lane.b32.xlu2 %v2155_v33, %s2680_s8 }
0x18c2   :  { %v2121_v40 = vpop.permute.xlu2 %2120 }
0x18c3   :  { %v2125_v38 = vmul.f32 %v2121_v40, %v2115_v63 }
0x18c5   :  { %v2135_v4 = vadd.f32 %v2133_v44, %v2125_v38 }
0x18ca   :  { %v2127_v10 = vpop.permute.xlu2 %2126 }
0x18cb   :  { %v2018_v43 = vpop.permute.xlu1 %2017  ;;  %v2132_v27 = vmul.f32 %v2127_v10, %v3435_v2 }
0x18cc   :  { %v2022_v46 = vadd.f32 %v2018_v43, %v2912_v58  ;;  %v2149_v58 = vrot.slane %v2135_v4, 7 }
0x18ce   :  { %2661 = vtanh.f32 %v2022_v46 }
0x18d2   :  { %v2040_v55 = vpop.permute.xlu2 %2039 }
0x18d3   :  { %v2119_v60 = vpop.permute.xlu1 %2118  ;;  %v2045_v36 = vmul.f32 %v2040_v55, %v3457_v59  ;;  %v2238_v59 = vperm.slane %v3374_v8, 1 }
0x18d4   :  { %v2662_v26 = vpop.eup %2661  ;;  %v2124_v23 = vmul.f32 %v2119_v60, %v2114_v3 }
0x18d5   :  { %2031 = vrot.lane.b32.xlu1 %v2662_v26, %s2680_s8 }
0x18d6   :  { %v2134_v53 = vadd.f32 %v2132_v27, %v2124_v23  ;;  %v2323_v27 = vperm.slane %v3374_v8, 2 }
0x18d8   :  { %v2150_v25 = vsel %vm453_vm3, %v2149_v58, %v2134_v53 }
0x18da   :  { %v2158_v5 = vpop.permute.xlu2 %2157 }
0x18db   :  { %v2030_v56 = vpop.permute.xlu0 %2029 }
0x18dc   :  { %v2035_v28 = vmul.f32 %v2030_v56, %v2025_v18  ;;  %v2277_v9 = vpop.f32.mrf.mxu0 }
0x18dd   :  { %2151 = vrot.lane.b32.xlu1 %v2150_v25, %s2682_s11  ;;  %v2278_v32 = vadd.f32 %v2277_v9, %v2238_v59 }
0x18de   :  { %v2047_v15 = vadd.f32 %v2045_v36, %v2035_v28 }
0x18e0   :  { %v2138_v51 = vrot.slane %v2047_v15, 7 }
0x18e3   :  { %v2042_v34 = vpop.permute.xlu0 %2041 }
0x18e4   :  { %v2046_v2 = vmul.f32 %v2042_v34, %v3475_v21  ;;  %v2405_v21 = vmul.f32 -1.442695, %v2278_v32 }
0x18e6   :  { %2663 = vpow2.f32 %v2405_v21 }
0x18ec   :  { %v2664_v16 = vpop.eup %2663 }
0x18ed   :  { %v2283_v31 = vadd.f32 1.0, %v2664_v16 }
0x18ef   :  { %2665 = vrcp.f32 %v2283_v31  ;;  %v2295_v62 = vand.u32 2147483648, %v2283_v31  ;;  %vm2289_vm0 = vweird.f32 %v2283_v31  ;;  %v2293_v22 = vand.u32 2147483647, %v2283_v31 }
0x18f1   :  { %v2296_v45 = vor.u32 1.1754944e-38, %v2295_v62  ;;  %vm2294_vm10 = vcmp.eq.f32.partialorder %v2293_v22, 8.507059e+37 }
0x18f5   :  { %v2666_v48 = vpop.eup %2665 }
0x18f6   :  { %v2285_v14 = vmul.f32 %v2666_v48, %v2283_v31 }
0x18f8   :  { %v2286_v57 = vsub.f32 1.0, %v2285_v14 }
0x18fa   :  { %v2287_v35 = vmul.f32 %v2666_v48, %v2286_v57 }
0x18fc   :  { %v2288_v13 = vadd.f32 %v2666_v48, %v2287_v35 }
0x1947   :  { %v2032_v12 = vpop.permute.xlu1 %2031 }
0x1948   :  { %v2036_v52 = vmul.f32 %v2032_v12, %v2026_v0 }
0x194a   :  { %v2048_v20 = vadd.f32 %v2046_v2, %v2036_v52 }
0x194c   :  { %v2139_v47 = vrot.slane %v2048_v20, 6 }
0x194e   :  { %v2140_v19 = vsel %vm453_vm3, %v2139_v47, %v2138_v51  ;;  %vm2290_vm3 = vweird.f32 %v2666_v48 }
0x194f   :  { %v2152_v29 = vpop.permute.xlu1 %2151  ;;  %2141 = vrot.lane.b32.xlu0 %v2140_v19, %s2680_s8  ;;  %vm2291_vm9 = vmor %vm2289_vm0, %vm2290_vm3 }
0x1950   :  { %v2154_v24 = vmul.f32 %v2152_v29, %v2980_v17  ;;  %v2292_v42 = vsel %vm2291_vm9, %v2666_v48, %v2288_v13 }
0x1951   :  { %v2297_v37 = vsel %vm2294_vm10, %v2296_v45, %v2292_v42 }
0x1952   :  { %v2160_v61 = vadd.f32 %v2158_v5, %v2154_v24 }
0x1954   :  { %2162 = vrot.lane.b32.xlu1 %v2160_v61, %s2683_s12 }
0x19c1   :  { %v2142_v17 = vpop.permute.xlu0 %2141 }
0x19c2   :  { %v2144_v7 = vmul.f32 %v2142_v17, %v2973_v11 }
0x19c4   :  { %v2146_v41 = vadd.f32 %v2145_v49, %v2144_v7 }
0x19c6   :  { %v2163_v54 = vpop.permute.xlu1 %2162 }
0x19c7   :  { %v2165_v33 = vsel %vm490_vm4, %v2146_v41, %v2163_v54 }
0x19c8   :  { %v2299_v40 = vadd.f32 %v2297_v37, %v2165_v33 }
0x19ca   :  { %v2301_v43 = vsel %vm2300_vm11, %v2299_v40, 0.0 }
0x19cb   :  { %2302 = vadd.xlane.f32.xlu2 %v2301_v43 }
0x19e3   :  { %2344 = vrot.lane.b32.xlu2 %v2297_v37, %s2678_s30 }
0x1a3e   :  { %v2303_v50 = vpop.xlane.xlu2 %2302 }
0x1a3f   :  { %v2304_v11 = vmul.f32 %v2303_v50, %v2747_v30 }
0x1a41   :  { %v2305_v1 = vsub.f32 %v2299_v40, %v2304_v11 }
0x1a43   :  { %v2306_v46 = vmul.f32 %v2305_v1, %v2305_v1 }
0x1a45   :  { %v2307_v63 = vsel %vm2300_vm11, %v2306_v46, 0.0 }
0x1a46   :  { %2308 = vadd.xlane.f32.xlu0 %v2307_v63  ;;  %v2345_v20 = vpop.permute.xlu2 %2344 }
0x1a5a   :  { %2348 = vrot.lane.b32.xlu0 %v3441_v6, %s2682_s11  ;;  %v2325_v6 = vperm.slane %v3374_v8, 3 }
0x1ab9   :  { %v2309_v39 = vpop.xlane.xlu0 %2308 }
0x1aba   :  { %v2310_v38 = vmul.f32 %v2309_v39, %v2747_v30 }
0x1abc   :  { %v2311_v3 = vadd.f32 1e-05, %v2310_v38 }
0x1abe   :  { %2667 = vrsqrt.f32 %v2311_v3  ;;  %vm2318_vm12 = vweird.f32 %v2311_v3 }
0x1ac4   :  { %v2668_v10 = vpop.eup %2667 }
0x1ac5   :  { %v2313_v60 = vmul.f32 %v2668_v10, %v2311_v3  ;;  %vm2319_vm4 = vweird.f32 %v2668_v10 }
0x1ac6   :  { %vm2320_vm13 = vmor %vm2318_vm12, %vm2319_vm4 }
0x1ac7   :  { %v2314_v26 = vmul.f32 %v2668_v10, %v2313_v60 }
0x1ac9   :  { %v2315_v44 = vmul.f32 0.5, %v2314_v26 }
0x1acb   :  { %v2316_v23 = vsub.f32 1.5, %v2315_v44 }
0x1acc   :  { %v2349_v51 = vpop.permute.xlu0 %2348 }
0x1acd   :  { %v2317_v4 = vmul.f32 %v2668_v10, %v2316_v23 }
0x1acf   :  { %v2321_v53 = vsel %vm2320_vm13, %v2668_v10, %v2317_v4 }
0x1ad0   :  { %v2322_v58 = vmul.f32 %v2321_v53, %v2305_v1 }
0x1ad2   :  { %v2324_v25 = vmul.f32 %v2323_v27, %v2322_v58 }
0x1ad4   :  { %v2326_v56 = vadd.f32 %v2325_v6, %v2324_v25 }
0x1ad6   :  { %v2327_v30 = vmul.f32 %v2326_v56, %v2326_v56 }
0x1ad8   :  { %v2328_v18 = vsel %vm2300_vm11, %v2327_v30, 0.0 }
0x1ad9   :  { %2329 = vadd.xlane.f32.xlu1 %v2328_v18 }
0x1b4c   :  { %v2330_v55 = vpop.xlane.xlu1 %2329 }
0x1b4d   :  { %v2331_v28 = vadd.f32 1e-12, %v2330_v55 }
0x1b4f   :  { %2669 = vrsqrt.f32 %v2331_v28  ;;  %vm2338_vm15 = vweird.f32 %v2331_v28 }
0x1b55   :  { %v2670_v34 = vpop.eup %2669 }
0x1b56   :  { %v2333_v36 = vmul.f32 %v2670_v34, %v2331_v28  ;;  %vm2339_vm14 = vweird.f32 %v2670_v34 }
0x1b57   :  { %vm2340_vm2 = vmor %vm2338_vm15, %vm2339_vm14 }
0x1b58   :  { %v2334_v0 = vmul.f32 %v2670_v34, %v2333_v36 }
0x1b5a   :  { %v2335_v12 = vmul.f32 0.5, %v2334_v0 }
0x1b5c   :  { %v2336_v15 = vsub.f32 1.5, %v2335_v12 }
0x1b5e   :  { %v2337_v2 = vmul.f32 %v2670_v34, %v2336_v15 }
0x1b60   :  { %v2341_v52 = vsel %vm2340_vm2, %v2670_v34, %v2337_v2 }
0x1b61   :  { %v2342_v8 = vmul.f32 %v2341_v52, %v2326_v56 }
0x1b63   :  { %v2351_v47 = vsel %vm74_vm1, %v2342_v8, %v2345_v20 }
0x1b64   :  { %v2353_v19 = vsel %vm2352_vm5, %v2351_v47, %v2349_v51 }
0x1b65   :  { %v2355_v29 = vsel %vm2354_vm6, %v2353_v19, 0.0 }
0x1b66   :  { %2356 = vst [vmem:[%s3538_s7] sm:$0x3] %v2355_v29 }

</bundles_post_ra>
